<compile_context>
chip_gen: v7x
topology: tpu7x:2x2x1
jax: 0.10.0
libtpu: 0.0.40
codegen_flags: <defaults>
</compile_context>

<pallas_src>
import jax
import jax.numpy as jnp
from jax import lax
from jax.experimental import pallas as pl
from jax.experimental.pallas import tpu as pltpu


def _double_conv_kernel(x_ref, w1_ref, w2_ref, o_ref, xpad_ref, ypad_ref):
    """Fused 3x3 conv -> ReLU -> 3x3 conv -> ReLU for one batch element.

    x_ref   : (1, Cin, H, W)    f32  input tile (NCHW, consumed directly)
    w1_ref  : (Cout, 9*Cin)     f32  conv1 weights, col index = (ky*3+kx)*Cin + ci
    w2_ref  : (Cout, 9*Cout)    f32  conv2 weights, same K ordering
    o_ref   : (1, Cout, H*W)    f32  output tile (channel-major, lane-dense)
    xpad_ref: (Cin, H+2, W+2)   f32  VMEM scratch, zero halo for conv1
    ypad_ref: (Cout, H+2, W+2)  f32  VMEM scratch, zero halo for conv2
    """
    Cin, Hp2, Wp2 = xpad_ref.shape
    H, W = Hp2 - 2, Wp2 - 2
    Cout = w1_ref.shape[0]
    HW = H * W

    # ---- conv1: SAME padding via a zero halo ring in VMEM -------------------
    # Only the ring is (re)zeroed each step; the interior is fully overwritten.
    xpad_ref[:, 0:1, :] = jnp.zeros((Cin, 1, Wp2), jnp.float32)
    xpad_ref[:, H + 1:H + 2, :] = jnp.zeros((Cin, 1, Wp2), jnp.float32)
    xpad_ref[:, :, 0:1] = jnp.zeros((Cin, Hp2, 1), jnp.float32)
    xpad_ref[:, :, W + 1:W + 2] = jnp.zeros((Cin, Hp2, 1), jnp.float32)
    xpad_ref[:, 1:H + 1, 1:W + 1] = x_ref[0]

    # Channel-major im2col: rows ordered as (tap, ci) with tap = ky*3 + kx,
    # matching the weight-matrix column ordering produced by _channel_major().
    patch1 = jnp.concatenate(
        [xpad_ref[:, dy:dy + H, dx:dx + W] for dy in range(3) for dx in range(3)],
        axis=0,
    ).reshape(9 * Cin, HW)
    # dot(W^T, patch): the MXU emits the channel-major (Cout, HW) result directly,
    # so no in-kernel transpose and the output store is lane-dense (HW on lanes).
    y = jnp.dot(w1_ref[...], patch1, preferred_element_type=jnp.float32)   # (Cout, HW)
    y = jnp.maximum(y, 0.0)                                                # ReLU #1

    # ---- conv2: the intermediate activation never leaves VMEM ---------------
    ypad_ref[:, 0:1, :] = jnp.zeros((Cout, 1, Wp2), jnp.float32)
    ypad_ref[:, H + 1:H + 2, :] = jnp.zeros((Cout, 1, Wp2), jnp.float32)
    ypad_ref[:, :, 0:1] = jnp.zeros((Cout, Hp2, 1), jnp.float32)
    ypad_ref[:, :, W + 1:W + 2] = jnp.zeros((Cout, Hp2, 1), jnp.float32)
    ypad_ref[:, 1:H + 1, 1:W + 1] = y.reshape(Cout, H, W)

    patch2 = jnp.concatenate(
        [ypad_ref[:, dy:dy + H, dx:dx + W] for dy in range(3) for dx in range(3)],
        axis=0,
    ).reshape(9 * Cout, HW)
    z = jnp.dot(w2_ref[...], patch2, preferred_element_type=jnp.float32)   # (Cout, HW)
    o_ref[0] = jnp.maximum(z, 0.0)                                         # ReLU #2


def _channel_major(w_oihw):
    """PyTorch OIHW -> (Cout, 9*Cin) with column index = (ky*3+kx)*Cin + ci."""
    Cout, Cin, KH, KW = w_oihw.shape
    return jnp.transpose(w_oihw, (0, 2, 3, 1)).reshape(Cout, KH * KW * Cin)


@jax.jit
def double_conv(x_nchw, w1_oihw, w2_oihw):
    """DoubleConv forward. Input/output NCHW f32 (PyTorch convention)."""
    B, Cin, H, W = x_nchw.shape
    Cout = w1_oihw.shape[0]

    w1_mat = _channel_major(w1_oihw)   # (Cout, 9*Cin)
    w2_mat = _channel_major(w2_oihw)   # (Cout, 9*Cout)

    out = pl.pallas_call(
        _double_conv_kernel,
        out_shape=jax.ShapeDtypeStruct((B, Cout, H * W), jnp.float32),
        grid=(B,),
        in_specs=[
            pl.BlockSpec((1, Cin, H, W), lambda b: (b, 0, 0, 0)),
            # Weight index_maps are grid-invariant, so their tiles stay resident.
            pl.BlockSpec((Cout, 9 * Cin), lambda b: (0, 0)),
            pl.BlockSpec((Cout, 9 * Cout), lambda b: (0, 0)),
        ],
        out_specs=pl.BlockSpec((1, Cout, H * W), lambda b: (b, 0, 0)),
        scratch_shapes=[
            pltpu.VMEM((Cin, H + 2, W + 2), jnp.float32),
            pltpu.VMEM((Cout, H + 2, W + 2), jnp.float32),
        ],
        compiler_params=pltpu.CompilerParams(
            dimension_semantics=("parallel",),   # megacore / v7x 2-TC sharding
        ),
    )(x_nchw, w1_mat, w2_mat)

    # (B, Cout, H*W) -> (B, Cout, H, W): contiguous, metadata-only reshape.
    return out.reshape(B, Cout, H, W)


def _reference_double_conv(x_nchw, w1, w2):
    """Pure-JAX f32 reference (matches the PyTorch module)."""
    dn = ("NCHW", "OIHW", "NCHW")
    y = lax.conv_general_dilated(x_nchw, w1, (1, 1), "SAME", dimension_numbers=dn)
    y = jnp.maximum(y, 0.0)
    z = lax.conv_general_dilated(y, w2, (1, 1), "SAME", dimension_numbers=dn)
    return jnp.maximum(z, 0.0)


if __name__ == "__main__":
    key = jax.random.PRNGKey(0)
    k_x, k_w1, k_w2 = jax.random.split(key, 3)

    B, Cin, Cout, H, W = 2, 4, 8, 16, 16

    x = jax.random.normal(k_x, (B, Cin, H, W), dtype=jnp.float32)
    # PyTorch Conv2d weight shape: OIHW, bias=False.
    w1 = jax.random.normal(k_w1, (Cout, Cin, 3, 3), dtype=jnp.float32) * 0.1
    w2 = jax.random.normal(k_w2, (Cout, Cout, 3, 3), dtype=jnp.float32) * 0.1

    out = jax.block_until_ready(double_conv(x, w1, w2))
    ref = jax.block_until_ready(_reference_double_conv(x, w1, w2))

    assert out.shape == (B, Cout, H, W), out.shape
    assert jnp.allclose(out, ref, atol=1e-4, rtol=1e-3), "mismatch vs reference"
    print("KERNEL_OK")
</pallas_src>

<mosaic_0001>
module attributes {stable_mosaic.version = 11 : i64} {
  func.func @_double_conv_kernel(%arg0: i32, %arg1: memref<1x4x16x16xf32, #tpu.memory_space<vmem>>, %arg2: memref<8x36xf32, #tpu.memory_space<vmem>>, %arg3: memref<8x72xf32, #tpu.memory_space<vmem>>, %arg4: memref<1x8x256xf32, #tpu.memory_space<vmem>>, %arg5: memref<4x18x18xf32, #tpu.memory_space<vmem>>, %arg6: memref<8x18x18xf32, #tpu.memory_space<vmem>>) attributes {dimension_semantics = [#tpu.dimension_semantics<parallel>], iteration_bounds = array<i64: 2>, scalar_prefetch = 0 : i64, scratch_operands = 2 : i64, tpu.core_type = #tpu.core_type<tc>, window_params = [{transform_indices = @transform_0, window_bounds = array<i64: 1, 4, 16, 16>}, {pipeline_mode = #tpu.pipeline_mode<synchronous>, transform_indices = @transform_1, window_bounds = array<i64: 8, 36>}, {pipeline_mode = #tpu.pipeline_mode<synchronous>, transform_indices = @transform_2, window_bounds = array<i64: 8, 72>}, {transform_indices = @transform_3, window_bounds = array<i64: 1, 8, 256>}]} {
    %cst = arith.constant 0.000000e+00 : f32
    %0 = vector.broadcast %cst : f32 to vector<4x1x18xf32>
    %c0 = arith.constant 0 : index
    %c0_0 = arith.constant 0 : index
    %c0_1 = arith.constant 0 : index
    %1 = vector.load %arg5[%c0, %c0_0, %c0_1] : memref<4x18x18xf32, #tpu.memory_space<vmem>>, vector<4x1x18xf32>
    tpu.vector_store %arg5[%c0, %c0_0, %c0_1], %0 {strides = array<i32>} : memref<4x18x18xf32, #tpu.memory_space<vmem>>, vector<4x1x18xf32>,
    %cst_2 = arith.constant 0.000000e+00 : f32
    %2 = vector.broadcast %cst_2 : f32 to vector<4x1x18xf32>
    %c0_3 = arith.constant 0 : index
    %c17 = arith.constant 17 : index
    %c0_4 = arith.constant 0 : index
    %3 = vector.load %arg5[%c0_3, %c17, %c0_4] : memref<4x18x18xf32, #tpu.memory_space<vmem>>, vector<4x1x18xf32>
    tpu.vector_store %arg5[%c0_3, %c17, %c0_4], %2 {strides = array<i32>} : memref<4x18x18xf32, #tpu.memory_space<vmem>>, vector<4x1x18xf32>,
    %cst_5 = arith.constant 0.000000e+00 : f32
    %4 = vector.broadcast %cst_5 : f32 to vector<4x18x1xf32>
    %c0_6 = arith.constant 0 : index
    %c0_7 = arith.constant 0 : index
    %c0_8 = arith.constant 0 : index
    %5 = vector.load %arg5[%c0_6, %c0_7, %c0_8] : memref<4x18x18xf32, #tpu.memory_space<vmem>>, vector<4x18x1xf32>
    tpu.vector_store %arg5[%c0_6, %c0_7, %c0_8], %4 {strides = array<i32>} : memref<4x18x18xf32, #tpu.memory_space<vmem>>, vector<4x18x1xf32>,
    %cst_9 = arith.constant 0.000000e+00 : f32
    %6 = vector.broadcast %cst_9 : f32 to vector<4x18x1xf32>
    %c0_10 = arith.constant 0 : index
    %c0_11 = arith.constant 0 : index
    %c17_12 = arith.constant 17 : index
    %7 = vector.load %arg5[%c0_10, %c0_11, %c17_12] : memref<4x18x18xf32, #tpu.memory_space<vmem>>, vector<4x18x1xf32>
    tpu.vector_store %arg5[%c0_10, %c0_11, %c17_12], %6 {strides = array<i32>} : memref<4x18x18xf32, #tpu.memory_space<vmem>>, vector<4x18x1xf32>,
    %c0_13 = arith.constant 0 : index
    %c0_14 = arith.constant 0 : index
    %c0_15 = arith.constant 0 : index
    %c0_16 = arith.constant 0 : index
    %8 = vector.load %arg1[%c0_13, %c0_14, %c0_15, %c0_16] : memref<1x4x16x16xf32, #tpu.memory_space<vmem>>, vector<1x4x16x16xf32>
    %9 = vector.shape_cast %8 : vector<1x4x16x16xf32> to vector<4x16x16xf32>
    %c0_17 = arith.constant 0 : index
    %c1 = arith.constant 1 : index
    %c1_18 = arith.constant 1 : index
    %10 = vector.load %arg5[%c0_17, %c1, %c1_18] : memref<4x18x18xf32, #tpu.memory_space<vmem>>, vector<4x16x16xf32>
    tpu.vector_store %arg5[%c0_17, %c1, %c1_18], %9 {strides = array<i32>} : memref<4x18x18xf32, #tpu.memory_space<vmem>>, vector<4x16x16xf32>,
    %c0_19 = arith.constant 0 : index
    %c0_20 = arith.constant 0 : index
    %c0_21 = arith.constant 0 : index
    %11 = vector.load %arg5[%c0_19, %c0_20, %c0_21] : memref<4x18x18xf32, #tpu.memory_space<vmem>>, vector<4x16x16xf32>
    %c0_22 = arith.constant 0 : index
    %c0_23 = arith.constant 0 : index
    %c1_24 = arith.constant 1 : index
    %12 = vector.load %arg5[%c0_22, %c0_23, %c1_24] : memref<4x18x18xf32, #tpu.memory_space<vmem>>, vector<4x16x16xf32>
    %c0_25 = arith.constant 0 : index
    %c0_26 = arith.constant 0 : index
    %c2 = arith.constant 2 : index
    %13 = vector.load %arg5[%c0_25, %c0_26, %c2] : memref<4x18x18xf32, #tpu.memory_space<vmem>>, vector<4x16x16xf32>
    %c0_27 = arith.constant 0 : index
    %c1_28 = arith.constant 1 : index
    %c0_29 = arith.constant 0 : index
    %14 = vector.load %arg5[%c0_27, %c1_28, %c0_29] : memref<4x18x18xf32, #tpu.memory_space<vmem>>, vector<4x16x16xf32>
    %c0_30 = arith.constant 0 : index
    %c1_31 = arith.constant 1 : index
    %c1_32 = arith.constant 1 : index
    %15 = vector.load %arg5[%c0_30, %c1_31, %c1_32] : memref<4x18x18xf32, #tpu.memory_space<vmem>>, vector<4x16x16xf32>
    %c0_33 = arith.constant 0 : index
    %c1_34 = arith.constant 1 : index
    %c2_35 = arith.constant 2 : index
    %16 = vector.load %arg5[%c0_33, %c1_34, %c2_35] : memref<4x18x18xf32, #tpu.memory_space<vmem>>, vector<4x16x16xf32>
    %c0_36 = arith.constant 0 : index
    %c2_37 = arith.constant 2 : index
    %c0_38 = arith.constant 0 : index
    %17 = vector.load %arg5[%c0_36, %c2_37, %c0_38] : memref<4x18x18xf32, #tpu.memory_space<vmem>>, vector<4x16x16xf32>
    %c0_39 = arith.constant 0 : index
    %c2_40 = arith.constant 2 : index
    %c1_41 = arith.constant 1 : index
    %18 = vector.load %arg5[%c0_39, %c2_40, %c1_41] : memref<4x18x18xf32, #tpu.memory_space<vmem>>, vector<4x16x16xf32>
    %c0_42 = arith.constant 0 : index
    %c2_43 = arith.constant 2 : index
    %c2_44 = arith.constant 2 : index
    %19 = vector.load %arg5[%c0_42, %c2_43, %c2_44] : memref<4x18x18xf32, #tpu.memory_space<vmem>>, vector<4x16x16xf32>
    %20 = tpu.concatenate %11, %12, %13, %14, %15, %16, %17, %18, %19 in 0 : vector<4x16x16xf32>, vector<4x16x16xf32>, vector<4x16x16xf32>, vector<4x16x16xf32>, vector<4x16x16xf32>, vector<4x16x16xf32>, vector<4x16x16xf32>, vector<4x16x16xf32>, vector<4x16x16xf32> -> vector<36x16x16xf32>
    %21 = vector.shape_cast %20 : vector<36x16x16xf32> to vector<36x256xf32>
    %c0_45 = arith.constant 0 : index
    %c0_46 = arith.constant 0 : index
    %22 = vector.load %arg2[%c0_45, %c0_46] : memref<8x36xf32, #tpu.memory_space<vmem>>, vector<8x36xf32>
    %cst_47 = arith.constant dense<0.000000e+00> : vector<8x256xf32>
    %23 = tpu.matmul %22, %21, %cst_47 {dimension_numbers = #tpu.dot_dimension_numbers<[1], [0], [0], [1], [0, 0, 1, 1], [], []>} : vector<8x36xf32>, vector<36x256xf32>, vector<8x256xf32> -> vector<8x256xf32>
    %cst_48 = arith.constant 0.000000e+00 : f32
    %24 = vector.broadcast %cst_48 : f32 to vector<8x256xf32>
    %25 = arith.maximumf %23, %24 : vector<8x256xf32>
    %cst_49 = arith.constant 0.000000e+00 : f32
    %26 = vector.broadcast %cst_49 : f32 to vector<8x1x18xf32>
    %c0_50 = arith.constant 0 : index
    %c0_51 = arith.constant 0 : index
    %c0_52 = arith.constant 0 : index
    %27 = vector.load %arg6[%c0_50, %c0_51, %c0_52] : memref<8x18x18xf32, #tpu.memory_space<vmem>>, vector<8x1x18xf32>
    tpu.vector_store %arg6[%c0_50, %c0_51, %c0_52], %26 {strides = array<i32>} : memref<8x18x18xf32, #tpu.memory_space<vmem>>, vector<8x1x18xf32>,
    %cst_53 = arith.constant 0.000000e+00 : f32
    %28 = vector.broadcast %cst_53 : f32 to vector<8x1x18xf32>
    %c0_54 = arith.constant 0 : index
    %c17_55 = arith.constant 17 : index
    %c0_56 = arith.constant 0 : index
    %29 = vector.load %arg6[%c0_54, %c17_55, %c0_56] : memref<8x18x18xf32, #tpu.memory_space<vmem>>, vector<8x1x18xf32>
    tpu.vector_store %arg6[%c0_54, %c17_55, %c0_56], %28 {strides = array<i32>} : memref<8x18x18xf32, #tpu.memory_space<vmem>>, vector<8x1x18xf32>,
    %cst_57 = arith.constant 0.000000e+00 : f32
    %30 = vector.broadcast %cst_57 : f32 to vector<8x18x1xf32>
    %c0_58 = arith.constant 0 : index
    %c0_59 = arith.constant 0 : index
    %c0_60 = arith.constant 0 : index
    %31 = vector.load %arg6[%c0_58, %c0_59, %c0_60] : memref<8x18x18xf32, #tpu.memory_space<vmem>>, vector<8x18x1xf32>
    tpu.vector_store %arg6[%c0_58, %c0_59, %c0_60], %30 {strides = array<i32>} : memref<8x18x18xf32, #tpu.memory_space<vmem>>, vector<8x18x1xf32>,
    %cst_61 = arith.constant 0.000000e+00 : f32
    %32 = vector.broadcast %cst_61 : f32 to vector<8x18x1xf32>
    %c0_62 = arith.constant 0 : index
    %c0_63 = arith.constant 0 : index
    %c17_64 = arith.constant 17 : index
    %33 = vector.load %arg6[%c0_62, %c0_63, %c17_64] : memref<8x18x18xf32, #tpu.memory_space<vmem>>, vector<8x18x1xf32>
    tpu.vector_store %arg6[%c0_62, %c0_63, %c17_64], %32 {strides = array<i32>} : memref<8x18x18xf32, #tpu.memory_space<vmem>>, vector<8x18x1xf32>,
    %34 = vector.shape_cast %25 : vector<8x256xf32> to vector<8x16x16xf32>
    %c0_65 = arith.constant 0 : index
    %c1_66 = arith.constant 1 : index
    %c1_67 = arith.constant 1 : index
    %35 = vector.load %arg6[%c0_65, %c1_66, %c1_67] : memref<8x18x18xf32, #tpu.memory_space<vmem>>, vector<8x16x16xf32>
    tpu.vector_store %arg6[%c0_65, %c1_66, %c1_67], %34 {strides = array<i32>} : memref<8x18x18xf32, #tpu.memory_space<vmem>>, vector<8x16x16xf32>,
    %c0_68 = arith.constant 0 : index
    %c0_69 = arith.constant 0 : index
    %c0_70 = arith.constant 0 : index
    %36 = vector.load %arg6[%c0_68, %c0_69, %c0_70] : memref<8x18x18xf32, #tpu.memory_space<vmem>>, vector<8x16x16xf32>
    %c0_71 = arith.constant 0 : index
    %c0_72 = arith.constant 0 : index
    %c1_73 = arith.constant 1 : index
    %37 = vector.load %arg6[%c0_71, %c0_72, %c1_73] : memref<8x18x18xf32, #tpu.memory_space<vmem>>, vector<8x16x16xf32>
    %c0_74 = arith.constant 0 : index
    %c0_75 = arith.constant 0 : index
    %c2_76 = arith.constant 2 : index
    %38 = vector.load %arg6[%c0_74, %c0_75, %c2_76] : memref<8x18x18xf32, #tpu.memory_space<vmem>>, vector<8x16x16xf32>
    %c0_77 = arith.constant 0 : index
    %c1_78 = arith.constant 1 : index
    %c0_79 = arith.constant 0 : index
    %39 = vector.load %arg6[%c0_77, %c1_78, %c0_79] : memref<8x18x18xf32, #tpu.memory_space<vmem>>, vector<8x16x16xf32>
    %c0_80 = arith.constant 0 : index
    %c1_81 = arith.constant 1 : index
    %c1_82 = arith.constant 1 : index
    %40 = vector.load %arg6[%c0_80, %c1_81, %c1_82] : memref<8x18x18xf32, #tpu.memory_space<vmem>>, vector<8x16x16xf32>
    %c0_83 = arith.constant 0 : index
    %c1_84 = arith.constant 1 : index
    %c2_85 = arith.constant 2 : index
    %41 = vector.load %arg6[%c0_83, %c1_84, %c2_85] : memref<8x18x18xf32, #tpu.memory_space<vmem>>, vector<8x16x16xf32>
    %c0_86 = arith.constant 0 : index
    %c2_87 = arith.constant 2 : index
    %c0_88 = arith.constant 0 : index
    %42 = vector.load %arg6[%c0_86, %c2_87, %c0_88] : memref<8x18x18xf32, #tpu.memory_space<vmem>>, vector<8x16x16xf32>
    %c0_89 = arith.constant 0 : index
    %c2_90 = arith.constant 2 : index
    %c1_91 = arith.constant 1 : index
    %43 = vector.load %arg6[%c0_89, %c2_90, %c1_91] : memref<8x18x18xf32, #tpu.memory_space<vmem>>, vector<8x16x16xf32>
    %c0_92 = arith.constant 0 : index
    %c2_93 = arith.constant 2 : index
    %c2_94 = arith.constant 2 : index
    %44 = vector.load %arg6[%c0_92, %c2_93, %c2_94] : memref<8x18x18xf32, #tpu.memory_space<vmem>>, vector<8x16x16xf32>
    %45 = tpu.concatenate %36, %37, %38, %39, %40, %41, %42, %43, %44 in 0 : vector<8x16x16xf32>, vector<8x16x16xf32>, vector<8x16x16xf32>, vector<8x16x16xf32>, vector<8x16x16xf32>, vector<8x16x16xf32>, vector<8x16x16xf32>, vector<8x16x16xf32>, vector<8x16x16xf32> -> vector<72x16x16xf32>
    %46 = vector.shape_cast %45 : vector<72x16x16xf32> to vector<72x256xf32>
    %c0_95 = arith.constant 0 : index
    %c0_96 = arith.constant 0 : index
    %47 = vector.load %arg3[%c0_95, %c0_96] : memref<8x72xf32, #tpu.memory_space<vmem>>, vector<8x72xf32>
    %cst_97 = arith.constant dense<0.000000e+00> : vector<8x256xf32>
    %48 = tpu.matmul %47, %46, %cst_97 {dimension_numbers = #tpu.dot_dimension_numbers<[1], [0], [0], [1], [0, 0, 1, 1], [], []>} : vector<8x72xf32>, vector<72x256xf32>, vector<8x256xf32> -> vector<8x256xf32>
    %cst_98 = arith.constant 0.000000e+00 : f32
    %49 = vector.broadcast %cst_98 : f32 to vector<8x256xf32>
    %50 = arith.maximumf %48, %49 : vector<8x256xf32>
    %c0_99 = arith.constant 0 : index
    %c0_100 = arith.constant 0 : index
    %c0_101 = arith.constant 0 : index
    %51 = vector.load %arg4[%c0_99, %c0_100, %c0_101] : memref<1x8x256xf32, #tpu.memory_space<vmem>>, vector<1x8x256xf32>
    %52 = vector.shape_cast %51 : vector<1x8x256xf32> to vector<8x256xf32>
    %53 = vector.shape_cast %50 : vector<8x256xf32> to vector<1x8x256xf32>
    tpu.vector_store %arg4[%c0_99, %c0_100, %c0_101], %53 {strides = array<i32>} : memref<1x8x256xf32, #tpu.memory_space<vmem>>, vector<1x8x256xf32>,
    return
  }
  func.func @transform_0(%arg0: i32) -> (i32, i32, i32, i32) {
    %c0_i32 = arith.constant 0 : i32
    %c0_i32_0 = arith.constant 0 : i32
    %c0_i32_1 = arith.constant 0 : i32
    %c0_i32_2 = arith.constant 0 : i32
    return %arg0, %c0_i32, %c0_i32_0, %c0_i32_1 : i32, i32, i32, i32
  }
  func.func @transform_1(%arg0: i32) -> (i32, i32) {
    %c0_i32 = arith.constant 0 : i32
    %c0_i32_0 = arith.constant 0 : i32
    %c0_i32_1 = arith.constant 0 : i32
    return %c0_i32, %c0_i32_0 : i32, i32
  }
  func.func @transform_2(%arg0: i32) -> (i32, i32) {
    %c0_i32 = arith.constant 0 : i32
    %c0_i32_0 = arith.constant 0 : i32
    %c0_i32_1 = arith.constant 0 : i32
    return %c0_i32, %c0_i32_0 : i32, i32
  }
  func.func @transform_3(%arg0: i32) -> (i32, i32, i32) {
    %c0_i32 = arith.constant 0 : i32
    %c0_i32_0 = arith.constant 0 : i32
    %c0_i32_1 = arith.constant 0 : i32
    return %arg0, %c0_i32, %c0_i32_0 : i32, i32, i32
  }
}

</mosaic_0001>

<bundles_post_ra>
// kernel: double_conv.1
= control target key start
LH: loop header
LB: loop body
LE: loop exit
PB: predicated region body
PF: predicated region fallthrough
CT: control target
= control target key end

     0   :  { %s6759_s12 = smov 0   ;;  %s10381_s0 = inlined_call_operand.vmem [shape: f32[2,4,16,16], index: 0, kind: input, shape index: {}]   ;;  %s10382_s1 = inlined_call_operand.vmem [shape: f32[8,36], index: 1, kind: input, shape index: {}]   ;;  %s10383_s2 = inlined_call_operand.vmem [shape: f32[8,72], index: 2, kind: input, shape index: {}]   ;;  %s10384_s3 = inlined_call_operand.vmem [shape: f32[2,8,256], index: 3, kind: output, shape index: {}]  }
   0x1 LB: > { %s6172_s13 = sadd.s32 4294967295, %s6724_s12   ;;  %p6176_p0 = scmp.ge.s32.totalorder %s6724_s12, 1  ;;  %s6724_s12 = sphi %s6759_s12, %s13_s12  }
   0x2   : > { %p137_p1 = scmp.lt.s32.totalorder %s6724_s12, 3 }
   0x4   : > { %p138_p2 = pnand %p6176_p0, %p137_p1 }
   0x6   : > { %141 = sbr.rel (%p138_p2) target bundleno = 1743 (0x6cf), region = 32 }
   0xd   : > { %p6769_p3 = scmp.lt.s32.totalorder %s6172_s13, 1  ;;  %vm171_vm0 = vcmask 139264   ;;  %vm180_vm1 = vcmask 7168   ;;  %vm194_vm2 = vcmask 146568   ;;  %v10385_v0 = vmov 0.0   ;;  %s6727_s19 = smov 1  }
   0xe   : > { %173 = vst.msk [vmem:[#allocation2 + $0x18] sm:$0x1] %vm171_vm0, %v10385_v0  ;;  %172 = vst.msk [vmem:[#allocation2] sm:$0x1] %vm171_vm0, %v10385_v0  ;;  %vm183_vm3 = vcmask 1024   ;;  %vm197_vm4 = vcmask 140424   ;;  %2106 = vmatprep.mubr.f32.mxu0 %v10385_v0  ;;  %6106 = vmatprep.mubr.f32.mxu1 %v10385_v0  ;;  %v454_v21 = vlaneseq }
   0xf   : > { %186 = vst.msk [vmem:[#allocation2 + $0x20] sm:$0xff] %vm180_vm1, %v10385_v0  ;;  %182 = vst.msk [vmem:[#allocation2 + $0x8] sm:$0xff] %vm180_vm1, %v10385_v0  ;;  %s10992_s13 = smov (!%p6769_p3, %s6172_s13), 1  ;;  %vm248_vm5 = vcmask 138248   ;;  %s6728_s20 = smov 127   ;;  %vm1953_vm6 = vcmask 130048  }
  0x10   : > { %174 = vst.msk [vmem:[#allocation2 + $0x30] sm:$0x1] %vm171_vm0, %v10385_v0  ;;  %175 = vst.msk [vmem:[#allocation2 + $0x48] sm:$0x1] %vm171_vm0, %v10385_v0  ;;  %s6187_s15 = sshll.u32 %s10992_s13, 6  ;;  %v7012_v34 = vshrl.u32 %v454_v21, 7 }
  0x11   : > { %176 = vst.msk [vmem:[#allocation2 + $0x11] sm:$0x1] %vm171_vm0, %v10385_v0  ;;  %177 = vst.msk [vmem:[#allocation2 + $0x29] sm:$0x1] %vm171_vm0, %v10385_v0  ;;  %s165_s18 = scalar_lea.vmem %s10381_s0, %s6187_s15  ;;  %v6729_v19 = vmov 1983009808  }
  0x12   : > { %178 = vst.msk [vmem:[#allocation2 + $0x41] sm:$0x1] %vm171_vm0, %v10385_v0  ;;  %179 = vst.msk [vmem:[#allocation2 + $0x59] sm:$0x1] %vm171_vm0, %v10385_v0  ;;  %v210_v1 = vld [vmem:[%s165_s18 + $0x10] sm:$0xff]  ;;  %v208_v2 = vld [vmem:[%s165_s18] sm:$0xff]  ;;  %v452_v20 = vunpack.c.l.s4 %v6729_v19 }
  0x13   : > { %189 = vst.msk [vmem:[#allocation2 + $0x38] sm:$0xff] %vm180_vm1, %v10385_v0  ;;  %192 = vst.msk [vmem:[#allocation2 + $0x50] sm:$0xff] %vm180_vm1, %v10385_v0  ;;  %228 = vrot.lane.b32.xlu1 %v210_v1, %s6727_s19  ;;  %224 = vrot.lane.b32.xlu0 %v208_v2, %s6727_s19  ;;  %v211_v3 = vld [vmem:[%s165_s18 + $0x18] sm:$0xff]  ;;  %v209_v4 = vld [vmem:[%s165_s18 + $0x8] sm:$0xff]  ;;  %s6730_s21 = smov 126   ;;  %s6732_s22 = smov 32  }
  0x14   : > { %2115 = vst.msk [vmem:[#allocation3] sm:$0x1] %vm171_vm0, %v10385_v0  ;;  %2116 = vst.msk [vmem:[#allocation3 + $0x18] sm:$0x1] %vm171_vm0, %v10385_v0  ;;  %v213_v5 = vld [vmem:[%s165_s18 + $0x28] sm:$0xff]  ;;  %v212_v6 = vld [vmem:[%s165_s18 + $0x20] sm:$0xff]  ;;  %v453_v33 = vunpack.c.0.s8 %v452_v20 }
  0x15   : > { %2117 = vst.msk [vmem:[#allocation3 + $0x30] sm:$0x1] %vm171_vm0, %v10385_v0  ;;  %2118 = vst.msk [vmem:[#allocation3 + $0x48] sm:$0x1] %vm171_vm0, %v10385_v0  ;;  %v215_v7 = vld [vmem:[%s165_s18 + $0x38] sm:$0xff]  ;;  %v214_v8 = vld [vmem:[%s165_s18 + $0x30] sm:$0xff] }
  0x16   : > { %2119 = vst.msk [vmem:[#allocation3 + $0x60] sm:$0x1] %vm171_vm0, %v10385_v0  ;;  %2120 = vst.msk [vmem:[#allocation3 + $0x78] sm:$0x1] %vm171_vm0, %v10385_v0  ;;  %v7031_v47 = vsub.s32 %v453_v33, %v7012_v34  ;;  %v6731_v33 = vmov 1934713408  }
  0x17   : > { %2121 = vst.msk [vmem:[#allocation3 + $0x90] sm:$0x1] %vm171_vm0, %v10385_v0  ;;  %2122 = vst.msk [vmem:[#allocation3 + $0xa8] sm:$0x1] %vm171_vm0, %v10385_v0  ;;  %230 = vrot.lane.b32.xlu1 %v211_v3, %s6727_s19  ;;  %226 = vrot.lane.b32.xlu0 %v209_v4, %s6727_s19  ;;  %s6733_s23 = smov 64   ;;  %s6734_s24 = smov 96  }
  0x18   : > { %2123 = vst.msk [vmem:[#allocation3 + $0x11] sm:$0x1] %vm171_vm0, %v10385_v0  ;;  %2124 = vst.msk [vmem:[#allocation3 + $0x29] sm:$0x1] %vm171_vm0, %v10385_v0  ;;  %s6735_s25 = smov 16   ;;  %s6736_s26 = smov 48  }
  0x19   : > { %2125 = vst.msk [vmem:[#allocation3 + $0x41] sm:$0x1] %vm171_vm0, %v10385_v0  ;;  %2126 = vst.msk [vmem:[#allocation3 + $0x59] sm:$0x1] %vm171_vm0, %v10385_v0  ;;  %s6737_s27 = smov 80   ;;  %s6738_s28 = smov 112  }
  0x1a   : > { %2127 = vst.msk [vmem:[#allocation3 + $0x71] sm:$0x1] %vm171_vm0, %v10385_v0  ;;  %2128 = vst.msk [vmem:[#allocation3 + $0x89] sm:$0x1] %vm171_vm0, %v10385_v0  ;;  %vm1959_vm7 = vcmask 261120   ;;  %vm1965_vm8 = vcmask 392192  }
  0x1b   : > { %2129 = vst.msk [vmem:[#allocation3 + $0xa1] sm:$0x1] %vm171_vm0, %v10385_v0  ;;  %2130 = vst.msk [vmem:[#allocation3 + $0xb9] sm:$0x1] %vm171_vm0, %v10385_v0  ;;  %234 = vrot.lane.b32.xlu1 %v213_v5, %s6727_s19  ;;  %232 = vrot.lane.b32.xlu0 %v212_v6, %s6727_s19  ;;  %vm1971_vm9 = vcmask 523264   ;;  %vm1977_vm10 = vcmask 654336  }
  0x1c   : > { %2132 = vst.msk [vmem:[#allocation3 + $0x8] sm:$0xff] %vm180_vm1, %v10385_v0  ;;  %2135 = vst.msk [vmem:[#allocation3 + $0x20] sm:$0xff] %vm180_vm1, %v10385_v0  ;;  %vm1983_vm11 = vcmask 785408   ;;  %vm1989_vm12 = vcmask 916480   ;;  %vm2035_vm13 = vcmask 1043456   ;;  %vm2031_vm14 = vcmask 293888  }
  0x1d   : > { %2138 = vst.msk [vmem:[#allocation3 + $0x38] sm:$0xff] %vm180_vm1, %v10385_v0  ;;  %2141 = vst.msk [vmem:[#allocation3 + $0x50] sm:$0xff] %vm180_vm1, %v10385_v0  ;;  %vm6038_vm15 = vcmask 588800   ;;  %s6188_s6 = sshll.u32 %s10992_s13, 4 }
  0x1e   : > { %2144 = vst.msk [vmem:[#allocation3 + $0x68] sm:$0xff] %vm180_vm1, %v10385_v0  ;;  %2147 = vst.msk [vmem:[#allocation3 + $0x80] sm:$0xff] %vm180_vm1, %v10385_v0  ;;  %s170_s9 = scalar_lea.vmem %s10384_s3, %s6188_s6 }
  0x1f   : > { %2150 = vst.msk [vmem:[#allocation3 + $0x98] sm:$0xff] %vm180_vm1, %v10385_v0  ;;  %2153 = vst.msk [vmem:[#allocation3 + $0xb0] sm:$0xff] %vm180_vm1, %v10385_v0  ;;  %238 = vrot.lane.b32.xlu1 %v215_v7, %s6727_s19  ;;  %236 = vrot.lane.b32.xlu0 %v214_v8, %s6727_s19 }
  0x20   : > { %185 = vst.msk [vmem:[#allocation2 + $0x18] sm:$0xff] %vm180_vm1, %v10385_v0  ;;  %181 = vst.msk [vmem:[#allocation2] sm:$0xff] %vm180_vm1, %v10385_v0 }
  0x21   : > { %200 = vst.msk [vmem:[#allocation2 + $0x20] sm:$0xff] %vm194_vm2, %v10385_v0  ;;  %196 = vst.msk [vmem:[#allocation2 + $0x8] sm:$0xff] %vm194_vm2, %v10385_v0 }
  0x22   : > { %188 = vst.msk [vmem:[#allocation2 + $0x30] sm:$0xff] %vm180_vm1, %v10385_v0  ;;  %191 = vst.msk [vmem:[#allocation2 + $0x48] sm:$0xff] %vm180_vm1, %v10385_v0 }
  0x23   : > { %203 = vst.msk [vmem:[#allocation2 + $0x38] sm:$0xff] %vm194_vm2, %v10385_v0  ;;  %206 = vst.msk [vmem:[#allocation2 + $0x50] sm:$0xff] %vm194_vm2, %v10385_v0 }
  0x24   : > { %2131 = vst.msk [vmem:[#allocation3] sm:$0xff] %vm180_vm1, %v10385_v0  ;;  %2134 = vst.msk [vmem:[#allocation3 + $0x18] sm:$0xff] %vm180_vm1, %v10385_v0 }
  0x25   : > { %2137 = vst.msk [vmem:[#allocation3 + $0x30] sm:$0xff] %vm180_vm1, %v10385_v0  ;;  %2140 = vst.msk [vmem:[#allocation3 + $0x48] sm:$0xff] %vm180_vm1, %v10385_v0 }
  0x26   : > { %2143 = vst.msk [vmem:[#allocation3 + $0x60] sm:$0xff] %vm180_vm1, %v10385_v0  ;;  %2146 = vst.msk [vmem:[#allocation3 + $0x78] sm:$0xff] %vm180_vm1, %v10385_v0 }
  0x27   : > { %2149 = vst.msk [vmem:[#allocation3 + $0x90] sm:$0xff] %vm180_vm1, %v10385_v0  ;;  %2152 = vst.msk [vmem:[#allocation3 + $0xa8] sm:$0xff] %vm180_vm1, %v10385_v0 }
  0x28   : > { %2156 = vst.msk [vmem:[#allocation3 + $0x8] sm:$0xff] %vm194_vm2, %v10385_v0  ;;  %2159 = vst.msk [vmem:[#allocation3 + $0x20] sm:$0xff] %vm194_vm2, %v10385_v0 }
  0x29   : > { %2162 = vst.msk [vmem:[#allocation3 + $0x38] sm:$0xff] %vm194_vm2, %v10385_v0  ;;  %2165 = vst.msk [vmem:[#allocation3 + $0x50] sm:$0xff] %vm194_vm2, %v10385_v0 }
  0x2a   : > { %2168 = vst.msk [vmem:[#allocation3 + $0x68] sm:$0xff] %vm194_vm2, %v10385_v0  ;;  %2171 = vst.msk [vmem:[#allocation3 + $0x80] sm:$0xff] %vm194_vm2, %v10385_v0 }
  0x2b   : > { %2174 = vst.msk [vmem:[#allocation3 + $0x98] sm:$0xff] %vm194_vm2, %v10385_v0  ;;  %2177 = vst.msk [vmem:[#allocation3 + $0xb0] sm:$0xff] %vm194_vm2, %v10385_v0 }
  0x2c   : > { %187 = vst.msk [vmem:[#allocation2 + $0x28] sm:$0x3] %vm183_vm3, %v10385_v0  ;;  %184 = vst.msk [vmem:[#allocation2 + $0x10] sm:$0x3] %vm183_vm3, %v10385_v0 }
  0x2d   : > { %190 = vst.msk [vmem:[#allocation2 + $0x40] sm:$0x3] %vm183_vm3, %v10385_v0  ;;  %193 = vst.msk [vmem:[#allocation2 + $0x58] sm:$0x3] %vm183_vm3, %v10385_v0 }
  0x2e   : > { %2133 = vst.msk [vmem:[#allocation3 + $0x10] sm:$0x3] %vm183_vm3, %v10385_v0  ;;  %2136 = vst.msk [vmem:[#allocation3 + $0x28] sm:$0x3] %vm183_vm3, %v10385_v0 }
  0x2f   : > { %2139 = vst.msk [vmem:[#allocation3 + $0x40] sm:$0x3] %vm183_vm3, %v10385_v0  ;;  %2142 = vst.msk [vmem:[#allocation3 + $0x58] sm:$0x3] %vm183_vm3, %v10385_v0 }
  0x30   : > { %2145 = vst.msk [vmem:[#allocation3 + $0x70] sm:$0x3] %vm183_vm3, %v10385_v0  ;;  %2148 = vst.msk [vmem:[#allocation3 + $0x88] sm:$0x3] %vm183_vm3, %v10385_v0 }
  0x31   : > { %2151 = vst.msk [vmem:[#allocation3 + $0xa0] sm:$0x3] %vm183_vm3, %v10385_v0  ;;  %2154 = vst.msk [vmem:[#allocation3 + $0xb8] sm:$0x3] %vm183_vm3, %v10385_v0 }
  0x32   : > { %199 = vst.msk [vmem:[#allocation2 + $0x18] sm:$0xff] %vm194_vm2, %v10385_v0  ;;  %195 = vst.msk [vmem:[#allocation2] sm:$0xff] %vm194_vm2, %v10385_v0 }
  0x33   : > { %201 = vst.msk [vmem:[#allocation2 + $0x28] sm:$0x3] %vm197_vm4, %v10385_v0  ;;  %198 = vst.msk [vmem:[#allocation2 + $0x10] sm:$0x3] %vm197_vm4, %v10385_v0 }
  0x34   : > { %202 = vst.msk [vmem:[#allocation2 + $0x30] sm:$0xff] %vm194_vm2, %v10385_v0  ;;  %205 = vst.msk [vmem:[#allocation2 + $0x48] sm:$0xff] %vm194_vm2, %v10385_v0 }
  0x35   : > { %2155 = vst.msk [vmem:[#allocation3] sm:$0xff] %vm194_vm2, %v10385_v0  ;;  %2158 = vst.msk [vmem:[#allocation3 + $0x18] sm:$0xff] %vm194_vm2, %v10385_v0 }
  0x36   : > { %2161 = vst.msk [vmem:[#allocation3 + $0x30] sm:$0xff] %vm194_vm2, %v10385_v0  ;;  %2164 = vst.msk [vmem:[#allocation3 + $0x48] sm:$0xff] %vm194_vm2, %v10385_v0 }
  0x37   : > { %2167 = vst.msk [vmem:[#allocation3 + $0x60] sm:$0xff] %vm194_vm2, %v10385_v0  ;;  %2170 = vst.msk [vmem:[#allocation3 + $0x78] sm:$0xff] %vm194_vm2, %v10385_v0 }
  0x38   : > { %2173 = vst.msk [vmem:[#allocation3 + $0x90] sm:$0xff] %vm194_vm2, %v10385_v0  ;;  %2176 = vst.msk [vmem:[#allocation3 + $0xa8] sm:$0xff] %vm194_vm2, %v10385_v0 }
  0x39   : > { %204 = vst.msk [vmem:[#allocation2 + $0x40] sm:$0x3] %vm197_vm4, %v10385_v0  ;;  %207 = vst.msk [vmem:[#allocation2 + $0x58] sm:$0x3] %vm197_vm4, %v10385_v0 }
  0x3a   : > { %2157 = vst.msk [vmem:[#allocation3 + $0x10] sm:$0x3] %vm197_vm4, %v10385_v0  ;;  %2160 = vst.msk [vmem:[#allocation3 + $0x28] sm:$0x3] %vm197_vm4, %v10385_v0 }
  0x3b   : > { %2163 = vst.msk [vmem:[#allocation3 + $0x40] sm:$0x3] %vm197_vm4, %v10385_v0  ;;  %2166 = vst.msk [vmem:[#allocation3 + $0x58] sm:$0x3] %vm197_vm4, %v10385_v0 }
  0x3c   : > { %2169 = vst.msk [vmem:[#allocation3 + $0x70] sm:$0x3] %vm197_vm4, %v10385_v0  ;;  %2172 = vst.msk [vmem:[#allocation3 + $0x88] sm:$0x3] %vm197_vm4, %v10385_v0 }
  0x3d   : > { %2175 = vst.msk [vmem:[#allocation3 + $0xa0] sm:$0x3] %vm197_vm4, %v10385_v0  ;;  %2178 = vst.msk [vmem:[#allocation3 + $0xb8] sm:$0x3] %vm197_vm4, %v10385_v0 }
  0x85   : > { %v229_v9 = vpop.permute.xlu1 %228  ;;  %v225_v10 = vpop.permute.xlu0 %224 }
  0x86   : > { %251 = vst.msk [vmem:[#allocation2 + $0x19] sm:$0xff] %vm248_vm5, %v229_v9  ;;  %249 = vst.msk [vmem:[#allocation2 + $0x1] sm:$0xff] %vm248_vm5, %v225_v10 }
  0x89   : > { %v231_v11 = vpop.permute.xlu1 %230  ;;  %v227_v12 = vpop.permute.xlu0 %226 }
  0x8a   : > { %252 = vst.msk [vmem:[#allocation2 + $0x21] sm:$0xff] %vm248_vm5, %v231_v11  ;;  %250 = vst.msk [vmem:[#allocation2 + $0x9] sm:$0xff] %vm248_vm5, %v227_v12 }
  0x8d   : > { %v235_v13 = vpop.permute.xlu1 %234  ;;  %v233_v14 = vpop.permute.xlu0 %232  ;;  %v6995_v22 = vld [vmem:[#allocation2] sm:$0xff]  ;;  %v7014_v35 = vld [vmem:[#allocation2 + $0x18] sm:$0xff] }
  0x8e   : > { %254 = vst.msk [vmem:[#allocation2 + $0x39] sm:$0xff] %vm248_vm5, %v235_v13  ;;  %253 = vst.msk [vmem:[#allocation2 + $0x31] sm:$0xff] %vm248_vm5, %v233_v14  ;;  %v7035_v49 = vld [vmem:[#allocation2 + $0x1] sm:$0xff]  ;;  %v7046_v53 = vld [vmem:[#allocation2 + $0x19] sm:$0xff] }
  0x91   : > { %v239_v15 = vpop.permute.xlu1 %238  ;;  %v237_v16 = vpop.permute.xlu0 %236  ;;  %v260_v17 = vld [vmem:[#allocation2 + $0x20] sm:$0xff]  ;;  %v258_v18 = vld [vmem:[#allocation2 + $0x8] sm:$0xff] }
  0x92   : > { %256 = vst.msk [vmem:[#allocation2 + $0x51] sm:$0xff] %vm248_vm5, %v239_v15  ;;  %255 = vst.msk [vmem:[#allocation2 + $0x49] sm:$0xff] %vm248_vm5, %v237_v16  ;;  %295 = vrot.lane.b32.xlu1 %v260_v17, %s6728_s20  ;;  %291 = vrot.lane.b32.xlu0 %v258_v18, %s6728_s20  ;;  %v7006_v30 = vld [vmem:[#allocation2 + $0x9] sm:$0xff]  ;;  %v268_v42 = vld [vmem:[#allocation2 + $0x21] sm:$0xff] }
  0x95   : > { %v262_v23 = vld [vmem:[#allocation2 + $0x38] sm:$0xff]  ;;  %v6997_v24 = vld [vmem:[#allocation2 + $0x30] sm:$0xff] }
  0x96   : > { %v6999_v25 = vld [vmem:[#allocation2 + $0x39] sm:$0xff]  ;;  %299 = vrot.lane.b32.xlu0 %v262_v23, %s6728_s20  ;;  %v1061_v26 = vcombine.low %v258_v18, %v262_v23  ;;  %v1062_v27 = vcombine.high %v258_v18, %v262_v23  ;;  %v449_v28 = vcombine.low %v6995_v22, %v6997_v24  ;;  %v450_v29 = vcombine.high %v6995_v22, %v6997_v24  ;;  %v7028_v46 = vld [vmem:[#allocation2 + $0x31] sm:$0xff] }
  0x97   : > { %v1229_v31 = vcombine.low %v7006_v30, %v6999_v25  ;;  %v1230_v32 = vcombine.high %v7006_v30, %v6999_v25  ;;  %v617_v51 = vcombine.low %v7035_v49, %v7028_v46  ;;  %v618_v52 = vcombine.high %v7035_v49, %v7028_v46 }
  0x98   : > { %v7059_v58 = vrot.slane %v1061_v26, %v7031_v47  ;;  %v7062_v59 = vrot.slane %v1062_v27, %v7031_v47  ;;  %v7071_v62 = vrot.slane %v449_v28, %v7031_v47  ;;  %v7113_v14 = vrot.slane %v450_v29, %v7031_v47  ;;  %v7166_v27 = vld [vmem:[#allocation2 + $0x22] sm:$0xff]  ;;  %v7196_v29 = vld [vmem:[#allocation2 + $0x32] sm:$0xff] }
  0x99   : > { %v264_v36 = vld [vmem:[#allocation2 + $0x50] sm:$0xff]  ;;  %v7016_v37 = vld [vmem:[#allocation2 + $0x48] sm:$0xff]  ;;  %v7074_v63 = vrot.slane %v1229_v31, %v7031_v47  ;;  %v7077_v1 = vrot.slane %v1230_v32, %v7031_v47  ;;  %v7089_v4 = vrot.slane %v617_v51, %v7031_v47  ;;  %v7118_v15 = vrot.slane %v618_v52, %v7031_v47  ;;  %10593 = vst [vmem:[#allocation5_spill] sm:$0xff] %v7196_v29 }
  0x9a   : > { %v7018_v38 = vld [vmem:[#allocation2 + $0x51] sm:$0xff]  ;;  %315 = vrot.lane.b32.xlu0 %v258_v18, %s6730_s21  ;;  %303 = vrot.lane.b32.xlu1 %v264_v36, %s6728_s20  ;;  %v1077_v39 = vcombine.low %v260_v17, %v264_v36  ;;  %v1078_v40 = vcombine.high %v260_v17, %v264_v36  ;;  %v465_v41 = vcombine.low %v7014_v35, %v7016_v37  ;;  %v7033_v48 = vld [vmem:[#allocation2 + $0x49] sm:$0xff] }
  0x9b   : > { %v466_v43 = vcombine.high %v7014_v35, %v7016_v37  ;;  %v1245_v44 = vcombine.low %v268_v42, %v7018_v38  ;;  %v1246_v45 = vcombine.high %v268_v42, %v7018_v38  ;;  %v633_v56 = vcombine.low %v7046_v53, %v7033_v48  ;;  %v7190_v28 = vld [vmem:[#allocation2 + $0x2] sm:$0xff]  ;;  %v7204_v31 = vld [vmem:[#allocation2 + $0x4a] sm:$0xff] }
  0x9c   : > { %v7038_v50 = vrot.slane %v1077_v39, %v7031_v47  ;;  %v7049_v54 = vrot.slane %v465_v41, %v7031_v47  ;;  %v634_v57 = vcombine.high %v7046_v53, %v7033_v48  ;;  %v7065_v60 = vrot.slane %v1078_v40, %v7031_v47  ;;  %10592 = vst [vmem:[#allocation4_spill] sm:$0xff] %v7190_v28 }
  0x9d   : > { %v7052_v55 = vrot.slane %v1245_v44, %v7031_v47  ;;  %v7068_v61 = vrot.slane %v1246_v45, %v7031_v47  ;;  %v7080_v2 = vrot.slane %v633_v56, %v7031_v47  ;;  %v7086_v3 = vrot.slane %v466_v43, %v7031_v47  ;;  %10595 = vst [vmem:[#allocation7_spill] sm:$0xff] %v7204_v31 }
  0x9e   : > { %323 = vrot.lane.b32.xlu0 %v262_v23, %s6730_s21  ;;  %319 = vrot.lane.b32.xlu1 %v260_v17, %s6730_s21  ;;  %v1125_v5 = vcombine.low %v7059_v58, %v7038_v50  ;;  %v1126_v7 = vcombine.high %v7059_v58, %v7038_v50  ;;  %v513_v9 = vcombine.low %v7071_v62, %v7049_v54 }
  0x9f   : > { %v1293_v6 = vcombine.low %v7074_v63, %v7052_v55  ;;  %v1294_v8 = vcombine.high %v7074_v63, %v7052_v55  ;;  %v7102_v10 = vrot.slane %v634_v57, %v7031_v47  ;;  %v681_v11 = vcombine.low %v7089_v4, %v7080_v2 }
  0xa0   : > { %v1141_v12 = vcombine.low %v7062_v59, %v7065_v60  ;;  %v1309_v13 = vcombine.low %v7077_v1, %v7068_v61  ;;  %v514_v16 = vcombine.high %v7071_v62, %v7049_v54  ;;  %v682_v17 = vcombine.high %v7089_v4, %v7080_v2 }
  0xa1   : > { %v529_v18 = vcombine.low %v7113_v14, %v7086_v3  ;;  %v697_v19 = vcombine.low %v7118_v15, %v7102_v10  ;;  %v1142_v20 = vcombine.high %v7062_v59, %v7065_v60  ;;  %v1310_v21 = vcombine.high %v7077_v1, %v7068_v61 }
  0xa2   : > { %289 = vrot.lane.b32.xlu0 %v6995_v22, %s6728_s20  ;;  %327 = vrot.lane.b32.xlu1 %v264_v36, %s6730_s21  ;;  %v530_v23 = vcombine.high %v7113_v14, %v7086_v3  ;;  %v698_v26 = vcombine.high %v7118_v15, %v7102_v10 }
  0xa6   : > { %297 = vrot.lane.b32.xlu0 %v6997_v24, %s6728_s20  ;;  %293 = vrot.lane.b32.xlu1 %v7014_v35, %s6728_s20 }
  0xaa   : > { %313 = vrot.lane.b32.xlu0 %v6995_v22, %s6730_s21  ;;  %301 = vrot.lane.b32.xlu1 %v7016_v37, %s6728_s20  ;;  %v7158_v22 = vld [vmem:[#allocation2 + $0xa] sm:$0xff] }
  0xae   : > { %321 = vrot.lane.b32.xlu0 %v6997_v24, %s6730_s21  ;;  %317 = vrot.lane.b32.xlu1 %v7014_v35, %s6730_s21  ;;  %v7164_v24 = vld [vmem:[#allocation2 + $0x3a] sm:$0xff]  ;;  %v516_v35 = vunpack.c.l.s4 %v6731_v33 }
  0xb0   : > { %v517_v39 = vunpack.c.0.s8 %v516_v35 }
  0xb2   : > { %347 = vrot.lane.b32.xlu0 %v7006_v30, %s6728_s20  ;;  %325 = vrot.lane.b32.xlu1 %v7016_v37, %s6730_s21 }
  0xb6   : > { %355 = vrot.lane.b32.xlu0 %v6999_v25, %s6728_s20  ;;  %351 = vrot.lane.b32.xlu1 %v268_v42, %s6728_s20 }
  0xba   : > { %371 = vrot.lane.b32.xlu0 %v7006_v30, %s6730_s21  ;;  %359 = vrot.lane.b32.xlu1 %v7018_v38, %s6728_s20  ;;  %v7198_v30 = vld [vmem:[#allocation2 + $0x1a] sm:$0xff] }
  0xbb   : > { %10594 = vst [vmem:[#allocation6_spill] sm:$0xff] %v7198_v30 }
  0xbe   : > { %379 = vrot.lane.b32.xlu0 %v6999_v25, %s6730_s21  ;;  %375 = vrot.lane.b32.xlu1 %v268_v42, %s6730_s21  ;;  %v7172_v25 = vld [vmem:[#allocation2 + $0x52] sm:$0xff] }
  0xc2   : > { %403 = vrot.lane.b32.xlu0 %v7158_v22, %s6728_s20  ;;  %383 = vrot.lane.b32.xlu1 %v7018_v38, %s6730_s21 }
  0xc6   : > { %411 = vrot.lane.b32.xlu0 %v7164_v24, %s6728_s20  ;;  %407 = vrot.lane.b32.xlu1 %v7166_v27, %s6728_s20 }
  0xca   : > { %345 = vrot.lane.b32.xlu0 %v7035_v49, %s6728_s20  ;;  %415 = vrot.lane.b32.xlu1 %v7172_v25, %s6728_s20 }
  0xce   : > { %353 = vrot.lane.b32.xlu0 %v7028_v46, %s6728_s20  ;;  %349 = vrot.lane.b32.xlu1 %v7046_v53, %s6728_s20 }
  0xd2   : > { %369 = vrot.lane.b32.xlu0 %v7035_v49, %s6730_s21  ;;  %357 = vrot.lane.b32.xlu1 %v7033_v48, %s6728_s20  ;;  %v7228_v49 = vsub.s32 %v517_v39, %v7012_v34 }
  0xd4   : > { %v1317_v58 = vrot.slane %v1309_v13, %v7228_v49  ;;  %v705_v54 = vrot.slane %v697_v19, %v7228_v49  ;;  %v544_v62 = vrot.slane %v530_v23, %v7228_v49  ;;  %v712_v23 = vrot.slane %v698_v26, %v7228_v49 }
  0xd6   : > { %377 = vrot.lane.b32.xlu0 %v7028_v46, %s6730_s21  ;;  %373 = vrot.lane.b32.xlu1 %v7046_v53, %s6730_s21 }
  0xda   : > { %401 = vrot.lane.b32.xlu0 %v7190_v28, %s6728_s20  ;;  %381 = vrot.lane.b32.xlu1 %v7033_v48, %s6730_s21 }
  0xde   : > { %409 = vrot.lane.b32.xlu0 %v7196_v29, %s6728_s20  ;;  %405 = vrot.lane.b32.xlu1 %v7198_v30, %s6728_s20 }
  0xe2   : > { %427 = vrot.lane.b32.xlu0 %v7158_v22, %s6730_s21  ;;  %413 = vrot.lane.b32.xlu1 %v7204_v31, %s6728_s20 }
  0xe6   : > { %435 = vrot.lane.b32.xlu0 %v7164_v24, %s6730_s21  ;;  %431 = vrot.lane.b32.xlu1 %v7166_v27, %s6730_s21 }
  0xea   : > { %425 = vrot.lane.b32.xlu0 %v7190_v28, %s6730_s21  ;;  %439 = vrot.lane.b32.xlu1 %v7172_v25, %s6730_s21 }
  0xee   : > { %433 = vrot.lane.b32.xlu0 %v7196_v29, %s6730_s21  ;;  %429 = vrot.lane.b32.xlu1 %v7198_v30, %s6730_s21 }
  0xf2   : > { %437 = vrot.lane.b32.xlu1 %v7204_v31, %s6730_s21 }
 0x104   : > { %v292_v32 = vpop.permute.xlu0 %291  ;;  %v296_v36 = vpop.permute.xlu1 %295 }
 0x108   : > { %v300_v37 = vpop.permute.xlu0 %299 }
 0x109   : > { %v1093_v38 = vcombine.low %v292_v32, %v300_v37  ;;  %v1094_v40 = vcombine.high %v292_v32, %v300_v37 }
 0x10b   : > { %v1101_v45 = vrot.slane %v1093_v38, %v7031_v47  ;;  %v1108_v51 = vrot.slane %v1094_v40, %v7031_v47  ;;  %v7244_v40 = vrot.slane %v1293_v6, %v7228_v49  ;;  %v1149_v6 = vrot.slane %v1141_v12, %v7228_v49 }
 0x10c   : > { %v304_v41 = vpop.permute.xlu1 %303  ;;  %v316_v42 = vpop.permute.xlu0 %315 }
 0x10d   : > { %v1109_v43 = vcombine.low %v296_v36, %v304_v41  ;;  %v1110_v44 = vcombine.high %v296_v36, %v304_v41  ;;  %v7235_v36 = vrot.slane %v1125_v5, %v7228_v49  ;;  %10598 = vst [vmem:[#allocation10_spill] sm:$0xff] %v7244_v40  ;;  %v1140_v41 = vrot.slane %v1126_v7, %v7228_v49 }
 0x10f   : > { %v1117_v46 = vrot.slane %v1109_v43, %v7031_v47  ;;  %v1124_v48 = vrot.slane %v1110_v44, %v7031_v47  ;;  %10596 = vst [vmem:[#allocation8_spill] sm:$0xff] %v7235_v36  ;;  %v1308_v44 = vrot.slane %v1294_v8, %v7228_v49 }
 0x110   : > { %v320_v52 = vpop.permute.xlu1 %319  ;;  %v324_v53 = vpop.permute.xlu0 %323 }
 0x111   : > { %v1157_v56 = vcombine.low %v1101_v45, %v1117_v46  ;;  %v1158_v57 = vcombine.high %v1101_v45, %v1117_v46  ;;  %v1173_v32 = vcombine.low %v1108_v51, %v1124_v48  ;;  %v1197_v33 = vcombine.low %v316_v42, %v324_v53 }
 0x112   : > { %v1198_v35 = vcombine.high %v316_v42, %v324_v53  ;;  %v1174_v34 = vcombine.high %v1108_v51, %v1124_v48  ;;  %v1156_v51 = vrot.slane %v1142_v20, %v7228_v49 }
 0x113   : > { %v7238_v37 = vrot.slane %v1157_v56, %v7228_v49  ;;  %v1172_v45 = vrot.slane %v1158_v57, %v7228_v49  ;;  %v1181_v50 = vrot.slane %v1173_v32, %v7228_v49  ;;  %v1205_v7 = vrot.slane %v1197_v33, %v7031_v47 }
 0x114   : > { %v328_v38 = vpop.permute.xlu1 %327  ;;  %v290_v39 = vpop.permute.xlu0 %289  ;;  %v1212_v46 = vrot.slane %v1198_v35, %v7031_v47  ;;  %v1188_v13 = vrot.slane %v1174_v34, %v7228_v49 }
 0x115   : > { %10597 = vst [vmem:[#allocation9_spill] sm:$0xff] %v7238_v37  ;;  %v1213_v42 = vcombine.low %v320_v52, %v328_v38  ;;  %v1214_v5 = vcombine.high %v320_v52, %v328_v38  ;;  %v1190_v12 = vcombine.high %v7235_v36, %v7238_v37  ;;  %v1324_v52 = vrot.slane %v1310_v21, %v7228_v49 }
 0x116   : > { %v1191_v35 = vcombine.low %v1140_v41, %v1172_v45  ;;  %v1192_v38 = vcombine.high %v1140_v41, %v1172_v45 }
 0x117   : > { %v1221_v55 = vrot.slane %v1213_v42, %v7031_v47  ;;  %v1228_v63 = vrot.slane %v1214_v5, %v7031_v47  ;;  %v1193_v42 = vcombine.low %v1149_v6, %v1181_v50 }
 0x118   : > { %v294_v8 = vpop.permute.xlu1 %293  ;;  %v298_v48 = vpop.permute.xlu0 %297 }
 0x119   : > { %v1261_v53 = vcombine.low %v1205_v7, %v1221_v55  ;;  %v1262_v56 = vcombine.high %v1205_v7, %v1221_v55  ;;  %v1277_v57 = vcombine.low %v1212_v46, %v1228_v63  ;;  %v1278_v32 = vcombine.high %v1212_v46, %v1228_v63 }
 0x11a   : > { %v481_v33 = vcombine.low %v290_v39, %v298_v48  ;;  %v482_v34 = vcombine.high %v290_v39, %v298_v48  ;;  %v1194_v7 = vcombine.high %v1149_v6, %v1181_v50  ;;  %v1195_v46 = vcombine.low %v1156_v51, %v1188_v13 }
 0x11b   : > { %v7282_v5 = vrot.slane %v1261_v53, %v7228_v49  ;;  %v1276_v59 = vrot.slane %v1262_v56, %v7228_v49  ;;  %v1285_v60 = vrot.slane %v1277_v57, %v7228_v49  ;;  %v1292_v20 = vrot.slane %v1278_v32, %v7228_v49 }
 0x11c   : > { %v489_v61 = vrot.slane %v481_v33, %v7031_v47  ;;  %v302_v1 = vpop.permute.xlu1 %301  ;;  %v314_v21 = vpop.permute.xlu0 %313 }
 0x11d   : > { %10599 = vst [vmem:[#allocation11_spill] sm:$0xff] %v7282_v5  ;;  %v497_v55 = vcombine.low %v294_v8, %v302_v1  ;;  %v498_v63 = vcombine.high %v294_v8, %v302_v1  ;;  %v1326_v41 = vcombine.high %v7282_v5, %v7244_v40  ;;  %v1327_v53 = vcombine.low %v1276_v59, %v1308_v44 }
 0x11e   : > { %v1328_v56 = vcombine.high %v1276_v59, %v1308_v44  ;;  %v1329_v57 = vcombine.low %v1285_v60, %v1317_v58  ;;  %v1330_v43 = vcombine.high %v1285_v60, %v1317_v58  ;;  %v1331_v6 = vcombine.low %v1292_v20, %v1324_v52 }
 0x11f   : > { %v505_v39 = vrot.slane %v497_v55, %v7031_v47  ;;  %v512_v48 = vrot.slane %v498_v63, %v7031_v47  ;;  %v7294_v32 = vpack.i.bf16 %v1326_v41, %v1190_v12  ;;  %v7296_v8 = vpack.i.bf16 %v1327_v53, %v1191_v35 }
 0x120   : > { %v318_v50 = vpop.permute.xlu1 %317  ;;  %v322_v33 = vpop.permute.xlu0 %321  ;;  %v7298_v1 = vpack.i.bf16 %v1328_v56, %v1192_v38  ;;  %v7300_v0 = vpack.i.bf16 %v1329_v57, %v1193_v42  ;;  %v7302_v45 = vpack.i.bf16 %v1330_v43, %v1194_v7  ;;  %v496_v58 = vrot.slane %v482_v34, %v7031_v47 }
 0x121   : > { %v545_v44 = vcombine.low %v489_v61, %v505_v39  ;;  %v7305_v59 = vpack.i.bf16 %v1331_v6, %v1195_v46  ;;  %v1196_v60 = vcombine.high %v1156_v51, %v1188_v13  ;;  %v1332_v55 = vcombine.high %v1292_v20, %v1324_v52 }
 0x122   : > { %10600 = vst [vmem:[#allocation12_spill] sm:$0xff] %v7302_v45  ;;  %v585_v12 = vcombine.low %v314_v21, %v322_v33  ;;  %v586_v63 = vcombine.high %v314_v21, %v322_v33  ;;  %v7311_v35 = vrot.slane %v513_v9, %v7228_v49  ;;  %v546_v43 = vcombine.high %v489_v61, %v505_v39 }
 0x123   : > { %10601 = vst [vmem:[#allocation13_spill] sm:$0xff] %v7305_v59  ;;  %v7314_v38 = vrot.slane %v545_v44, %v7228_v49  ;;  %v561_v42 = vcombine.low %v496_v58, %v512_v48  ;;  %v7318_v34 = vpack.i.bf16 %v1332_v55, %v1196_v60  ;;  %v562_v20 = vcombine.high %v496_v58, %v512_v48 }
 0x124   : > { %10602 = vst [vmem:[#allocation14_spill] sm:$0xff] %v7311_v35  ;;  %v326_v7 = vpop.permute.xlu1 %325  ;;  %v7316_v41 = vpop.permute.xlu0 %347  ;;  %v7326_v9 = vrot.slane %v681_v11, %v7228_v49  ;;  %v593_v61 = vrot.slane %v585_v12, %v7031_v47  ;;  %v600_v21 = vrot.slane %v586_v63, %v7031_v47  ;;  %v528_v39 = vrot.slane %v514_v16, %v7228_v49 }
 0x125   : > { %10603 = vst [vmem:[#allocation15_spill] sm:$0xff] %v7314_v38  ;;  %10604 = vst [vmem:[#allocation16_spill] sm:$0xff] %v7316_v41  ;;  %v601_v51 = vcombine.low %v318_v50, %v326_v7  ;;  %v602_v13 = vcombine.high %v318_v50, %v326_v7  ;;  %v560_v11 = vrot.slane %v546_v43, %v7228_v49 }
 0x126   : > { %10605 = vst [vmem:[#allocation17_spill] sm:$0xff] %v7318_v34  ;;  %10606 = vst [vmem:[#allocation18_spill] sm:$0xff] %v7326_v9  ;;  %v696_v48 = vrot.slane %v682_v17, %v7228_v49  ;;  %v569_v6 = vrot.slane %v561_v42, %v7228_v49  ;;  %v537_v60 = vrot.slane %v529_v18, %v7228_v49 }
 0x127   : > { %v609_v46 = vrot.slane %v601_v51, %v7031_v47  ;;  %v616_v53 = vrot.slane %v602_v13, %v7031_v47  ;;  %v576_v2 = vrot.slane %v562_v20, %v7228_v49  ;;  %v578_v19 = vcombine.high %v7311_v35, %v7314_v38 }
 0x128   : > { %v7332_v56 = vpop.permute.xlu1 %351  ;;  %v7334_v57 = vpop.permute.xlu0 %355  ;;  %v579_v3 = vcombine.low %v528_v39, %v560_v11  ;;  %v580_v14 = vcombine.high %v528_v39, %v560_v11  ;;  %v581_v42 = vcombine.low %v537_v60, %v569_v6  ;;  %v582_v7 = vcombine.high %v537_v60, %v569_v6 }
 0x129   : > { %10607 = vst [vmem:[#allocation19_spill] sm:$0xff] %v7334_v57  ;;  %v649_v50 = vcombine.low %v593_v61, %v609_v46  ;;  %v650_v33 = vcombine.high %v593_v61, %v609_v46  ;;  %v665_v44 = vcombine.low %v600_v21, %v616_v53  ;;  %v666_v58 = vcombine.high %v600_v21, %v616_v53 }
 0x12a   : > { %v583_v53 = vcombine.low %v544_v62, %v576_v2  ;;  %v873_v5 = vcombine.low %v7198_v30, %v7204_v31 }
 0x12b   : > { %v7360_v4 = vrot.slane %v649_v50, %v7228_v49  ;;  %v664_v16 = vrot.slane %v650_v33, %v7228_v49  ;;  %v673_v17 = vrot.slane %v665_v44, %v7228_v49  ;;  %v680_v18 = vrot.slane %v666_v58, %v7228_v49 }
 0x12c   : > { %v7365_v55 = vpop.permute.xlu1 %359  ;;  %v7367_v12 = vpop.permute.xlu0 %371  ;;  %v1333_v50 = vcombine.low %v7316_v41, %v7334_v57  ;;  %v584_v44 = vcombine.high %v544_v62, %v576_v2  ;;  %v1485_v62 = vcombine.low %v7166_v27, %v7172_v25 }
 0x12d   : > { %10608 = vst [vmem:[#allocation20_spill] sm:$0xff] %v7360_v4  ;;  %10609 = vst [vmem:[#allocation21_spill] sm:$0xff] %v7367_v12  ;;  %v714_v63 = vcombine.high %v7360_v4, %v7326_v9  ;;  %v715_v51 = vcombine.low %v664_v16, %v696_v48  ;;  %v716_v13 = vcombine.high %v664_v16, %v696_v48 }
 0x12e   : > { %v717_v20 = vcombine.low %v673_v17, %v705_v54  ;;  %v718_v61 = vcombine.high %v673_v17, %v705_v54  ;;  %v1349_v21 = vcombine.low %v7332_v56, %v7365_v55  ;;  %v719_v10 = vcombine.low %v680_v18, %v712_v23 }
 0x12f   : > { %v7381_v46 = vpack.i.bf16 %v714_v63, %v578_v19  ;;  %v7387_v39 = vpack.i.bf16 %v715_v51, %v579_v3  ;;  %v7389_v11 = vpack.i.bf16 %v716_v13, %v580_v14  ;;  %v720_v58 = vcombine.high %v680_v18, %v712_v23 }
 0x130   : > { %v7383_v15 = vpop.permute.xlu1 %375  ;;  %v7385_v26 = vpop.permute.xlu0 %379  ;;  %v7391_v6 = vpack.i.bf16 %v717_v20, %v581_v42  ;;  %v7393_v48 = vpack.i.bf16 %v718_v61, %v582_v7  ;;  %v7397_v33 = vpack.i.bf16 %v719_v10, %v583_v53  ;;  %v7400_v60 = vrot.slane %v1349_v21, %v7031_v47 }
 0x131   : > { %10610 = vst [vmem:[#allocation22_spill] sm:$0xff] %v7385_v26  ;;  %v1365_v54 = vcombine.low %v7367_v12, %v7385_v26  ;;  %v7408_v19 = vpack.i.bf16 %v720_v58, %v584_v44  ;;  %v7411_v3 = vrot.slane %v1333_v50, %v7031_v47  ;;  %v1469_v7 = vcombine.low %v7158_v22, %v7164_v24 }
 0x132   : > { %10611 = vst [vmem:[#allocation23_spill] sm:$0xff] %v7393_v48  ;;  %10612 = vst [vmem:[#allocation24_spill] sm:$0xff] %v7397_v33  ;;  %v7434_v13 = vrot.slane %v1485_v62, %v7031_v47 }
 0x133   : > { %10613 = vst [vmem:[#allocation25_spill] sm:$0xff] %v7408_v19  ;;  %v1397_v2 = vcombine.low %v7411_v3, %v7400_v60  ;;  %v7420_v18 = vrot.slane %v1365_v54, %v7031_v47  ;;  %v7449_v50 = vrot.slane %v1469_v7, %v7031_v47 }
 0x134   : > { %v7404_v16 = vpop.permute.xlu1 %383  ;;  %v7406_v17 = vpop.permute.xlu0 %403 }
 0x135   : > { %v1381_v14 = vcombine.low %v7383_v15, %v7404_v16  ;;  %v7439_v61 = vrot.slane %v1397_v2, %v7228_v49  ;;  %v1533_v62 = vcombine.low %v7449_v50, %v7434_v13 }
 0x137   : > { %v7423_v23 = vrot.slane %v1381_v14, %v7031_v47  ;;  %v7470_v52 = vrot.slane %v1533_v62, %v7228_v49 }
 0x138   : > { %v7425_v63 = vpop.permute.xlu1 %407  ;;  %v7427_v42 = vpop.permute.xlu0 %411 }
 0x139   : > { %v1429_v51 = vcombine.low %v7420_v18, %v7423_v23  ;;  %v1501_v20 = vcombine.low %v7406_v17, %v7427_v42 }
 0x13b   : > { %v7442_v21 = vrot.slane %v1429_v51, %v7228_v49  ;;  %v7456_v54 = vrot.slane %v1501_v20, %v7031_v47 }
 0x13c   : > { %v7444_v53 = vpop.permute.xlu1 %415  ;;  %v7446_v10 = vpop.permute.xlu0 %345 }
 0x13d   : > { %10614 = vst [vmem:[#allocation26_spill] sm:$0xff] %v7446_v10  ;;  %v1517_v44 = vcombine.low %v7425_v63, %v7444_v53 }
 0x13f   : > { %v7459_v14 = vrot.slane %v1517_v44, %v7031_v47 }
 0x140   : > { %v7463_v2 = vpop.permute.xlu1 %349  ;;  %v7465_v51 = vpop.permute.xlu0 %353 }
 0x141   : > { %10615 = vst [vmem:[#allocation27_spill] sm:$0xff] %v7463_v2  ;;  %10616 = vst [vmem:[#allocation28_spill] sm:$0xff] %v7465_v51  ;;  %v1565_v7 = vcombine.low %v7456_v54, %v7459_v14  ;;  %v721_v62 = vcombine.low %v7446_v10, %v7465_v51  ;;  %v7522_v51 = vrot.slane %v873_v5, %v7031_v47 }
 0x143   : > { %v7473_v58 = vrot.slane %v1565_v7, %v7228_v49  ;;  %v7499_v43 = vrot.slane %v721_v62, %v7031_v47  ;;  %v857_v62 = vcombine.low %v7190_v28, %v7196_v29 }
 0x144   : > { %v7475_v20 = vpop.permute.xlu1 %357  ;;  %v7477_v44 = vpop.permute.xlu0 %369 }
 0x145   : > { %10617 = vst [vmem:[#allocation29_spill] sm:$0xff] %v7475_v20  ;;  %10618 = vst [vmem:[#allocation30_spill] sm:$0xff] %v7477_v44  ;;  %v737_v38 = vcombine.low %v7463_v2, %v7475_v20  ;;  %v7535_v20 = vrot.slane %v857_v62, %v7031_v47 }
 0x147   : > { %v7490_v7 = vrot.slane %v737_v38, %v7031_v47 }
 0x148   : > { %v7483_v35 = vpop.permute.xlu1 %373  ;;  %v7485_v9 = vpop.permute.xlu0 %377 }
 0x149   : > { %10619 = vst [vmem:[#allocation31_spill] sm:$0xff] %v7483_v35  ;;  %10620 = vst [vmem:[#allocation32_spill] sm:$0xff] %v7485_v9  ;;  %v753_v4 = vcombine.low %v7477_v44, %v7485_v9  ;;  %v785_v38 = vcombine.low %v7499_v43, %v7490_v7 }
 0x14b   : > { %v7508_v19 = vrot.slane %v753_v4, %v7031_v47  ;;  %v7527_v44 = vrot.slane %v785_v38, %v7228_v49 }
 0x14c   : > { %v7494_v37 = vpop.permute.xlu1 %381  ;;  %v7496_v36 = vpop.permute.xlu0 %401 }
 0x14d   : > { %10621 = vst [vmem:[#allocation33_spill] sm:$0xff] %v7494_v37  ;;  %10622 = vst [vmem:[#allocation34_spill] sm:$0xff] %v7496_v36  ;;  %v769_v40 = vcombine.low %v7483_v35, %v7494_v37 }
 0x14f   : > { %v7511_v34 = vrot.slane %v769_v40, %v7031_v47 }
 0x150   : > { %v7513_v33 = vpop.permute.xlu1 %405  ;;  %v7515_v59 = vpop.permute.xlu0 %409 }
 0x151   : > { %10623 = vst [vmem:[#allocation35_spill] sm:$0xff] %v7513_v33  ;;  %10624 = vst [vmem:[#allocation36_spill] sm:$0xff] %v7515_v59  ;;  %v817_v10 = vcombine.low %v7508_v19, %v7511_v34  ;;  %v889_v4 = vcombine.low %v7496_v36, %v7515_v59 }
 0x153   : > { %v7530_v40 = vrot.slane %v817_v10, %v7228_v49  ;;  %v7542_v29 = vrot.slane %v889_v4, %v7031_v47  ;;  %v921_v10 = vcombine.low %v7535_v20, %v7522_v51 }
 0x154   : > { %v7532_v9 = vpop.permute.xlu1 %413  ;;  %v428_v2 = vpop.permute.xlu0 %427 }
 0x155   : > { %10625 = vst [vmem:[#allocation37_spill] sm:$0xff] %v7532_v9  ;;  %v905_v28 = vcombine.low %v7513_v33, %v7532_v9  ;;  %v7552_v35 = vrot.slane %v921_v10, %v7228_v49 }
 0x157   : > { %v7545_v38 = vrot.slane %v905_v28, %v7031_v47 }
 0x158   : > { %v432_v48 = vpop.permute.xlu1 %431  ;;  %v436_v36 = vpop.permute.xlu0 %435 }
 0x159   : > { %v953_v62 = vcombine.low %v7542_v29, %v7545_v38  ;;  %v1605_v59 = vcombine.low %v428_v2, %v436_v36  ;;  %v1606_v30 = vcombine.high %v428_v2, %v436_v36 }
 0x15b   : > { %v7555_v5 = vrot.slane %v953_v62, %v7228_v49  ;;  %v7560_v9 = vrot.slane %v1605_v59, %v7031_v47  ;;  %v1620_v62 = vrot.slane %v1606_v30, %v7031_v47 }
 0x15c   : > { %v440_v4 = vpop.permute.xlu1 %439  ;;  %v426_v37 = vpop.permute.xlu0 %425 }
 0x15d   : > { %v1621_v28 = vcombine.low %v432_v48, %v440_v4  ;;  %v1622_v31 = vcombine.high %v432_v48, %v440_v4  ;;  %10626 = vst [vmem:[#allocation38_spill] sm:$0xff] %v7560_v9 }
 0x15f   : > { %v7563_v45 = vrot.slane %v1621_v28, %v7031_v47  ;;  %v1636_v10 = vrot.slane %v1622_v31, %v7031_v47 }
 0x160   : > { %v430_v41 = vpop.permute.xlu1 %429  ;;  %v434_v57 = vpop.permute.xlu0 %433 }
 0x161   : > { %v1638_v36 = vcombine.high %v7560_v9, %v7563_v45  ;;  %v993_v2 = vcombine.low %v426_v37, %v434_v57  ;;  %v1653_v4 = vcombine.low %v1620_v62, %v1636_v10  ;;  %v994_v59 = vcombine.high %v426_v37, %v434_v57 }
 0x162   : > { %v1654_v31 = vcombine.high %v1620_v62, %v1636_v10 }
 0x163   : > { %v7570_v48 = vrot.slane %v1638_v36, %v7228_v49  ;;  %v7575_v28 = vrot.slane %v993_v2, %v7031_v47  ;;  %v7582_v36 = vrot.slane %v1653_v4, %v7228_v49  ;;  %v1008_v37 = vrot.slane %v994_v59, %v7031_v47 }
 0x164   : > { %v438_v33 = vpop.permute.xlu1 %437  ;;  %v7590_v57 = vrot.slane %v1654_v31, %v7228_v49  ;;  %v1534_v2 = vcombine.high %v7449_v50, %v7434_v13  ;;  %v986_v13 = vcombine.high %v7552_v35, %v7555_v5  ;;  %v1502_v4 = vcombine.high %v7406_v17, %v7427_v42 }
 0x165   : > { %v1009_v12 = vcombine.low %v430_v41, %v438_v33  ;;  %v1010_v26 = vcombine.high %v430_v41, %v438_v33  ;;  %1846 = vrot.lane.b32.xlu0 %v7570_v48, %s6732_s22 }
 0x167   : > { %v7578_v30 = vrot.slane %v1009_v12, %v7031_v47  ;;  %v1024_v9 = vrot.slane %v1010_v26, %v7031_v47 }
 0x169   : > { %1886 = vrot.lane.b32.xlu0 %v7582_v36, %s6733_s23  ;;  %v1026_v41 = vcombine.high %v7575_v28, %v7578_v30  ;;  %v1041_v33 = vcombine.low %v1008_v37, %v1024_v9  ;;  %v1042_v10 = vcombine.high %v1008_v37, %v1024_v9  ;;  %v1598_v9 = vcombine.high %v7470_v52, %v7473_v58  ;;  %v10629_v37 = vld [vmem:[#allocation19_spill] sm:$0xff] }
 0x16b   : > { %v7593_v12 = vrot.slane %v1026_v41, %v7228_v49  ;;  %v7600_v26 = vrot.slane %v1041_v33, %v7228_v49  ;;  %v7607_v62 = vrot.slane %v1042_v10, %v7228_v49  ;;  %v10630_v41 = vld [vmem:[#allocation16_spill] sm:$0xff] }
 0x16d   : > { %1926 = vrot.lane.b32.xlu0 %v7590_v57, %s6734_s24  ;;  %1706 = vrot.lane.b32.xlu1 %v7593_v12, %s6732_s22 }
 0x171   : > { %6235 = vrot.lane.b32.xlu0 %v7294_v32, %s6735_s25  ;;  %1746 = vrot.lane.b32.xlu1 %v7600_v26, %s6733_s23  ;;  %v1566_v32 = vcombine.high %v7456_v54, %v7459_v14  ;;  %v954_v54 = vcombine.high %v7542_v29, %v7545_v38  ;;  %v850_v29 = vcombine.high %v7527_v44, %v7530_v40 }
 0x172   : > { %v1382_v38 = vcombine.high %v7383_v15, %v7404_v16  ;;  %v10628_v15 = vld [vmem:[#allocation21_spill] sm:$0xff] }
 0x175   : > { %6245 = vrot.lane.b32.xlu0 %v7296_v8, %s6732_s22  ;;  %1786 = vrot.lane.b32.xlu1 %v7607_v62, %s6734_s24  ;;  %v1430_v8 = vcombine.high %v7420_v18, %v7423_v23  ;;  %v1580_v18 = vrot.slane %v1566_v32, %v7228_v49  ;;  %v818_v23 = vcombine.high %v7508_v19, %v7511_v34 }
 0x176   : > { %v7655_v19 = vrot.slane %v954_v54, %v7228_v49 }
 0x179   : > { %6255 = vrot.lane.b32.xlu0 %v7298_v1, %s6736_s26  ;;  %6240 = vrot.lane.b32.xlu1 %v7381_v46, %s6735_s25  ;;  %v1462_v1 = vcombine.high %v7439_v61, %v7442_v21  ;;  %v1398_v46 = vcombine.high %v7411_v3, %v7400_v60  ;;  %v1444_v60 = vrot.slane %v1430_v8, %v7228_v49  ;;  %v10632_v8 = vld [vmem:[#allocation37_spill] sm:$0xff] }
 0x17a   : > { %v1518_v3 = vcombine.high %v7425_v63, %v7444_v53  ;;  %v832_v63 = vrot.slane %v818_v23, %v7228_v49 }
 0x17b   : > { %v6274_v14 = vpack.i.bf16 %v1598_v9, %v1462_v1  ;;  %v1412_v50 = vrot.slane %v1398_v46, %v7228_v49  ;;  %v10633_v1 = vld [vmem:[#allocation35_spill] sm:$0xff] }
 0x17c   : > { %v7675_v17 = vrot.slane %v1518_v3, %v7031_v47  ;;  %v906_v46 = vcombine.high %v10633_v1, %v10632_v8 }
 0x17d   : > { %6265 = vrot.lane.b32.xlu0 %v7300_v0, %s6733_s23  ;;  %6250 = vrot.lane.b32.xlu1 %v7387_v39, %s6732_s22  ;;  %v1548_v0 = vrot.slane %v1534_v2, %v7228_v49  ;;  %v922_v39 = vcombine.high %v7535_v20, %v7522_v51  ;;  %v786_v51 = vcombine.high %v7499_v43, %v7490_v7 }
 0x17e   : > { %v6284_v20 = vpack.i.bf16 %v986_v13, %v850_v29  ;;  %v1463_v43 = vcombine.low %v1412_v50, %v1444_v60  ;;  %v1470_v7 = vcombine.high %v7158_v22, %v7164_v24  ;;  %v1334_v22 = vcombine.high %v10630_v41, %v10629_v37  ;;  %v10634_v13 = vld [vmem:[#allocation7_spill] sm:$0xff]  ;;  %v10645_v41 = vld [vmem:[#allocation32_spill] sm:$0xff] }
 0x17f   : > { %v1599_v34 = vcombine.low %v1548_v0, %v1580_v18  ;;  %v936_v53 = vrot.slane %v922_v39, %v7228_v49  ;;  %v1396_v24 = vrot.slane %v1382_v38, %v7031_v47  ;;  %v10635_v39 = vld [vmem:[#allocation6_spill] sm:$0xff]  ;;  %v10638_v38 = vld [vmem:[#allocation36_spill] sm:$0xff] }
 0x180   : > { %v1484_v10 = vrot.slane %v1470_v7, %v7031_v47  ;;  %v874_v23 = vcombine.high %v10635_v39, %v10634_v13  ;;  %v1348_v29 = vrot.slane %v1334_v22, %v7031_v47  ;;  %v10640_v7 = vld [vmem:[#allocation23_spill] sm:$0xff]  ;;  %v10646_v22 = vld [vmem:[#allocation30_spill] sm:$0xff] }
 0x181   : > { %6275 = vrot.lane.b32.xlu0 %v6274_v14, %s6735_s25  ;;  %6260 = vrot.lane.b32.xlu1 %v7389_v11, %s6736_s26  ;;  %v1486_v11 = vcombine.high %v7166_v27, %v7172_v25  ;;  %v1350_v27 = vcombine.high %v7332_v56, %v7365_v55  ;;  %v10627_v25 = vld [vmem:[#allocation22_spill] sm:$0xff]  ;;  %v6294_v42 = vpack.i.bf16 %v1599_v34, %v1463_v43  ;;  %v10631_v55 = vld [vmem:[#allocation12_spill] sm:$0xff]  ;;  %v10637_v34 = vld [vmem:[#allocation31_spill] sm:$0xff] }
 0x182   : > { %v1366_v16 = vcombine.high %v10628_v15, %v10627_v25  ;;  %v987_v59 = vcombine.low %v936_v53, %v7655_v19  ;;  %v1516_v56 = vrot.slane %v1502_v4, %v7031_v47  ;;  %v1600_v14 = vcombine.high %v1548_v0, %v1580_v18  ;;  %v10639_v4 = vld [vmem:[#allocation34_spill] sm:$0xff]  ;;  %v10641_v0 = vld [vmem:[#allocation5_spill] sm:$0xff] }
 0x183   : > { %v7680_v31 = vrot.slane %v1486_v11, %v7031_v47  ;;  %v7691_v32 = vrot.slane %v1350_v27, %v7031_v47  ;;  %v890_v43 = vcombine.high %v10639_v4, %v10638_v38  ;;  %v1464_v18 = vcombine.high %v1412_v50, %v1444_v60  ;;  %v10642_v27 = vld [vmem:[#allocation4_spill] sm:$0xff] }
 0x184   : > { %v1380_v9 = vrot.slane %v1366_v16, %v7031_v47  ;;  %v1581_v2 = vcombine.low %v1516_v56, %v7675_v17  ;;  %v858_v25 = vcombine.high %v10642_v27, %v10641_v0  ;;  %v10643_v16 = vld [vmem:[#allocation29_spill] sm:$0xff]  ;;  %v988_v1 = vcombine.high %v936_v53, %v7655_v19  ;;  %v10647_v50 = vld [vmem:[#allocation28_spill] sm:$0xff] }
 0x185   : > { %6285 = vrot.lane.b32.xlu0 %v6284_v20, %s6735_s25  ;;  %6270 = vrot.lane.b32.xlu1 %v7391_v6, %s6733_s23  ;;  %v800_v6 = vrot.slane %v786_v51, %v7228_v49  ;;  %v1549_v51 = vcombine.low %v1484_v10, %v7680_v31  ;;  %v10636_v20 = vld [vmem:[#allocation33_spill] sm:$0xff]  ;;  %v1413_v15 = vcombine.low %v1348_v29, %v7691_v32 }
 0x186   : > { %v1445_v3 = vcombine.low %v1380_v9, %v1396_v24  ;;  %v770_v11 = vcombine.high %v10637_v34, %v10636_v20  ;;  %v1589_v37 = vrot.slane %v1581_v2, %v7228_v49  ;;  %v6314_v8 = vpack.i.bf16 %v1600_v14, %v1464_v18 }
 0x187   : > { %v851_v33 = vcombine.low %v800_v6, %v832_v63  ;;  %v7719_v60 = vrot.slane %v874_v23, %v7031_v47  ;;  %v1557_v20 = vrot.slane %v1549_v51, %v7228_v49  ;;  %v904_v34 = vrot.slane %v890_v43, %v7031_v47 }
 0x188   : > { %v1453_v39 = vrot.slane %v1445_v3, %v7228_v49  ;;  %v784_v2 = vrot.slane %v770_v11, %v7031_v47  ;;  %v852_v19 = vcombine.high %v800_v6, %v832_v63  ;;  %v872_v53 = vrot.slane %v858_v25, %v7031_v47 }
 0x189   : > { %6295 = vrot.lane.b32.xlu0 %v6294_v42, %s6732_s22  ;;  %6280 = vrot.lane.b32.xlu1 %v10631_v55, %s6737_s27  ;;  %v6304_v54 = vpack.i.bf16 %v987_v59, %v851_v33  ;;  %v10644_v42 = vld [vmem:[#allocation27_spill] sm:$0xff]  ;;  %v754_v55 = vcombine.high %v10646_v22, %v10645_v41  ;;  %v920_v33 = vrot.slane %v906_v46, %v7031_v47  ;;  %v10649_v46 = vld [vmem:[#allocation13_spill] sm:$0xff]  ;;  %v10652_v22 = vld [vmem:[#allocation38_spill] sm:$0xff] }
 0x18a   : > { %v738_v59 = vcombine.high %v10644_v42, %v10643_v16  ;;  %v1582_v14 = vcombine.high %v1516_v56, %v7675_v17  ;;  %v1421_v23 = vrot.slane %v1413_v15, %v7228_v49  ;;  %v1601_v38 = vcombine.low %v1557_v20, %v1589_v37  ;;  %v10650_v17 = vld [vmem:[#allocation24_spill] sm:$0xff]  ;;  %v10651_v16 = vld [vmem:[#allocation17_spill] sm:$0xff] }
 0x18b   : > { %v768_v51 = vrot.slane %v754_v55, %v7031_v47  ;;  %v969_v11 = vcombine.low %v904_v34, %v920_v33  ;;  %v6324_v4 = vpack.i.bf16 %v988_v1, %v852_v19  ;;  %v1446_v43 = vcombine.high %v1380_v9, %v1396_v24 }
 0x18c   : > { %v752_v3 = vrot.slane %v738_v59, %v7031_v47  ;;  %v937_v18 = vcombine.low %v872_v53, %v7719_v60  ;;  %v1465_v56 = vcombine.low %v1421_v23, %v1453_v39  ;;  %v1414_v0 = vcombine.high %v1348_v29, %v7691_v32 }
 0x18d   : > { %6305 = vrot.lane.b32.xlu0 %v6304_v54, %s6732_s22  ;;  %6290 = vrot.lane.b32.xlu1 %v10640_v7, %s6737_s27  ;;  %v10648_v54 = vld [vmem:[#allocation26_spill] sm:$0xff]  ;;  %v1550_v7 = vcombine.high %v1484_v10, %v7680_v31  ;;  %v833_v6 = vcombine.low %v768_v51, %v784_v2  ;;  %v1596_v27 = vrot.slane %v1582_v14, %v7228_v49 }
 0x18e   : > { %v722_v13 = vcombine.high %v10648_v54, %v10647_v50  ;;  %v6334_v15 = vpack.i.bf16 %v1601_v38, %v1465_v56  ;;  %v1602_v24 = vcombine.high %v1557_v20, %v1589_v37  ;;  %v977_v31 = vrot.slane %v969_v11, %v7228_v49 }
 0x18f   : > { %v1460_v10 = vrot.slane %v1446_v43, %v7228_v49  ;;  %v1564_v9 = vrot.slane %v1550_v7, %v7228_v49  ;;  %v1466_v42 = vcombine.high %v1421_v23, %v1453_v39  ;;  %v841_v32 = vrot.slane %v833_v6, %v7228_v49  ;;  %v10653_v39 = vld [vmem:[#allocation25_spill] sm:$0xff] }
 0x190   : > { %v736_v63 = vrot.slane %v722_v13, %v7031_v47  ;;  %v945_v29 = vrot.slane %v937_v18, %v7228_v49  ;;  %v970_v59 = vcombine.high %v904_v34, %v920_v33  ;;  %v1428_v37 = vrot.slane %v1414_v0, %v7228_v49 }
 0x191   : > { %6315 = vrot.lane.b32.xlu0 %v6314_v8, %s6736_s26  ;;  %6300 = vrot.lane.b32.xlu1 %v10649_v46, %s6734_s24  ;;  %v1603_v41 = vcombine.low %v1564_v9, %v1596_v27  ;;  %v1637_v55 = vcombine.low %v10652_v22, %v7563_v45  ;;  %v6344_v8 = vpack.i.bf16 %v1602_v24, %v1466_v42 }
 0x192   : > { %v801_v25 = vcombine.low %v736_v63, %v752_v3  ;;  %v989_v50 = vcombine.low %v945_v29, %v977_v31  ;;  %v1467_v54 = vcombine.low %v1428_v37, %v1460_v10  ;;  %v834_v13 = vcombine.high %v768_v51, %v784_v2 }
 0x193   : > { %v938_v33 = vcombine.high %v872_v53, %v7719_v60  ;;  %v802_v34 = vcombine.high %v736_v63, %v752_v3  ;;  %v984_v19 = vrot.slane %v970_v59, %v7228_v49  ;;  %v1025_v45 = vcombine.low %v7575_v28, %v7578_v30 }
 0x194   : > { %v809_v1 = vrot.slane %v801_v25, %v7228_v49  ;;  %v6354_v46 = vpack.i.bf16 %v1603_v41, %v1467_v54  ;;  %v7763_v23 = vrot.slane %v1637_v55, %v7228_v49  ;;  %v990_v2 = vcombine.high %v945_v29, %v977_v31 }
 0x195   : > { %6325 = vrot.lane.b32.xlu0 %v6324_v4, %s6736_s26  ;;  %6310 = vrot.lane.b32.xlu1 %v10650_v17, %s6734_s24  ;;  %v848_v51 = vrot.slane %v834_v13, %v7228_v49  ;;  %v952_v60 = vrot.slane %v938_v33, %v7228_v49  ;;  %v816_v53 = vrot.slane %v802_v34, %v7228_v49  ;;  %v10654_v3 = vmov 0.0  }
 0x196   : > { %v853_v20 = vcombine.low %v809_v1, %v841_v32  ;;  %v854_v38 = vcombine.high %v809_v1, %v841_v32  ;;  %v1669_v11 = vcombine.high %v7763_v23, %v10654_v3  ;;  %v7773_v4 = vrot.slane %v1025_v45, %v7228_v49 }
 0x197   : > { %v991_v30 = vcombine.low %v952_v60, %v984_v19  ;;  %v855_v43 = vcombine.low %v816_v53, %v848_v51  ;;  %v1604_v63 = vcombine.high %v1564_v9, %v1596_v27  ;;  %v1468_v6 = vcombine.high %v1428_v37, %v1460_v10 }
 0x198   : > { %v6339_v14 = vpack.i.bf16 %v989_v50, %v853_v20  ;;  %v6349_v28 = vpack.i.bf16 %v990_v2, %v854_v38  ;;  %v1057_v18 = vcombine.high %v7773_v4, %v10654_v3  ;;  %v1670_v56 = vcombine.high %v7570_v48, %v10654_v3 }
 0x199   : > { %6335 = vrot.lane.b32.xlu0 %v6334_v15, %s6733_s23  ;;  %6320 = vrot.lane.b32.xlu1 %v10651_v16, %s6738_s28  ;;  %v6359_v7 = vpack.i.bf16 %v991_v30, %v855_v43  ;;  %v6364_v17 = vpack.i.bf16 %v1604_v63, %v1468_v6  ;;  %v992_v0 = vcombine.high %v952_v60, %v984_v19  ;;  %v10658_v30 = vld [vmem:[#allocation8_spill] sm:$0xff]  ;;  %v10659_v43 = vld [vmem:[#allocation9_spill] sm:$0xff] }
 0x19a   : > { %v856_v25 = vcombine.high %v816_v53, %v848_v51  ;;  %v1671_v24 = vcombine.high %v7582_v36, %v10654_v3  ;;  %v1058_v27 = vcombine.high %v7593_v12, %v10654_v3  ;;  %v1672_v48 = vcombine.high %v7590_v57, %v10654_v3  ;;  %v10655_v53 = vld [vmem:[#allocation11_spill] sm:$0xff] }
 0x19b   : > { %v1059_v31 = vcombine.high %v7600_v26, %v10654_v3  ;;  %v1060_v36 = vcombine.high %v7607_v62, %v10654_v3  ;;  %v10656_v3 = vld [vmem:[#allocation10_spill] sm:$0xff] }
 0x19c   : > { %v6369_v15 = vpack.i.bf16 %v992_v0, %v856_v25 }
 0x19d   : > { %6345 = vrot.lane.b32.xlu0 %v6344_v8, %s6737_s27  ;;  %6330 = vrot.lane.b32.xlu1 %v10653_v39, %s6738_s28 }
 0x1a1   : > { %6355 = vrot.lane.b32.xlu0 %v6354_v46, %s6734_s24  ;;  %6340 = vrot.lane.b32.xlu1 %v6339_v14, %s6733_s23 }
 0x1a5   : > { %1826 = vrot.lane.b32.xlu0 %v1669_v11, %s6735_s25  ;;  %6350 = vrot.lane.b32.xlu1 %v6349_v28, %s6737_s27  ;;  %v10657_v11 = vcombine.low %v10655_v53, %v10656_v3 }
 0x1a9   : > { %6360 = vrot.lane.b32.xlu1 %v6359_v7, %s6734_s24  ;;  %1686 = vrot.lane.b32.xlu0 %v1057_v18, %s6735_s25  ;;  %v10660_v7 = vcombine.low %v10658_v30, %v10659_v43 }
 0x1ad   : > { %6365 = vrot.lane.b32.xlu1 %v6364_v17, %s6738_s28  ;;  %1866 = vrot.lane.b32.xlu0 %v1670_v56, %s6736_s26 }
 0x1b1   : > { %6370 = vrot.lane.b32.xlu1 %v6369_v15, %s6738_s28  ;;  %1906 = vrot.lane.b32.xlu0 %v1671_v24, %s6737_s27 }
 0x1b5   : > { %1726 = vrot.lane.b32.xlu1 %v1058_v27, %s6736_s26  ;;  %1946 = vrot.lane.b32.xlu0 %v1672_v48, %s6738_s28  ;;  %v10661_v27 = vld [vmem:[#allocation20_spill] sm:$0xff]  ;;  %v10662_v48 = vld [vmem:[#allocation18_spill] sm:$0xff] }
 0x1b9   : > { %1766 = vrot.lane.b32.xlu1 %v1059_v31, %s6737_s27  ;;  %v10663_v31 = vcombine.low %v10661_v27, %v10662_v48 }
 0x1bd   : > { %1806 = vrot.lane.b32.xlu1 %v1060_v36, %s6738_s28 }
 0x1d7   : > { %v7801_v10 = vpop.permute.xlu0 %1846 }
 0x1db   : > { %v7803_v12 = vpop.permute.xlu0 %1886 }
 0x1df   : > { %v7805_v9 = vpop.permute.xlu1 %1706  ;;  %v7807_v57 = vpop.permute.xlu0 %1926 }
 0x1e3   : > { %v7809_v16 = vpop.permute.xlu1 %1746  ;;  %v6236_v42 = vpop.permute.xlu0 %6235 }
 0x1e4   : > { %v6238_v39 = vunpack.i.h.bf16 %v6236_v42  ;;  %v6237_v20 = vunpack.i.l.bf16 %v6236_v42  ;;  %v10664_v42 = vld [vmem:[#allocation14_spill] sm:$0xff] }
 0x1e6   : > { %v1996_v28 = vsel %vm1953_vm6, %v10657_v11, %v6238_v39  ;;  %v1995_v18 = vsel %vm1953_vm6, %v10660_v7, %v6237_v20 }
 0x1e7   : > { %v7811_v32 = vpop.permute.xlu1 %1786  ;;  %v6246_v26 = vpop.permute.xlu0 %6245 }
 0x1e8   : > { %v6248_v33 = vunpack.i.h.bf16 %v6246_v26  ;;  %v6247_v34 = vunpack.i.l.bf16 %v6246_v26  ;;  %v10665_v26 = vld [vmem:[#allocation15_spill] sm:$0xff] }
 0x1ea   : > { %v2000_v17 = vsel %vm1959_vm7, %v1995_v18, %v6247_v34  ;;  %v2001_v56 = vsel %vm1959_vm7, %v1996_v28, %v6248_v33 }
 0x1eb   : > { %v6241_v29 = vpop.permute.xlu1 %6240  ;;  %v6256_v59 = vpop.permute.xlu0 %6255 }
 0x1ec   : > { %v6243_v45 = vunpack.i.h.bf16 %v6241_v29  ;;  %v6242_v14 = vunpack.i.l.bf16 %v6241_v29  ;;  %v6258_v2 = vunpack.i.h.bf16 %v6256_v59  ;;  %v6257_v38 = vunpack.i.l.bf16 %v6256_v59 }
 0x1ed   : > { %v10666_v29 = vcombine.low %v10664_v42, %v10665_v26 }
 0x1ee   : > { %v1955_v36 = vsel %vm1953_vm6, %v10663_v31, %v6243_v45 }
 0x1ef   : > { %v6251_v37 = vpop.permute.xlu1 %6250  ;;  %v6266_v62 = vpop.permute.xlu0 %6265  ;;  %v1954_v59 = vsel %vm1953_vm6, %v10666_v29, %v6242_v14 }
 0x1f0   : > { %v6253_v51 = vunpack.i.h.bf16 %v6251_v37  ;;  %v6252_v60 = vunpack.i.l.bf16 %v6251_v37  ;;  %v6268_v63 = vunpack.i.h.bf16 %v6266_v62  ;;  %v6267_v6 = vunpack.i.l.bf16 %v6266_v62 }
 0x1f1   : > { %v2005_v37 = vsel %vm1965_vm8, %v2000_v17, %v6257_v38  ;;  %v2006_v62 = vsel %vm1965_vm8, %v2001_v56, %v6258_v2 }
 0x1f2   : > { %v1960_v39 = vsel %vm1959_vm7, %v1954_v59, %v6252_v60  ;;  %v2010_v45 = vsel %vm1971_vm9, %v2005_v37, %v6267_v6  ;;  %v2011_v3 = vsel %vm1971_vm9, %v2006_v62, %v6268_v63 }
 0x1f3   : > { %v7813_v41 = vpop.permute.xlu1 %6260  ;;  %v7815_v22 = vpop.permute.xlu0 %6275 }
 0x1f4   : > { %v6263_v34 = vunpack.i.h.bf16 %v7813_v41  ;;  %v6262_v53 = vunpack.i.l.bf16 %v7813_v41 }
 0x1f7   : > { %v7817_v55 = vpop.permute.xlu1 %6270  ;;  %v7819_v8 = vpop.permute.xlu0 %6285 }
 0x1f8   : > { %v6273_v14 = vunpack.i.h.bf16 %v7817_v55  ;;  %v6272_v38 = vunpack.i.l.bf16 %v7817_v55  ;;  %v1966_v55 = vsel %vm1965_vm8, %v1960_v39, %v6262_v53  ;;  %v6287_v53 = vunpack.i.l.bf16 %v7819_v8 }
 0x1fb   : > { %v6281_v1 = vpop.permute.xlu1 %6280  ;;  %v7821_v50 = vpop.permute.xlu0 %6295 }
 0x1fc   : > { %v6283_v0 = vunpack.i.h.bf16 %v6281_v1  ;;  %v6282_v25 = vunpack.i.l.bf16 %v6281_v1  ;;  %v1961_v1 = vsel %vm1959_vm7, %v1955_v36, %v6253_v51 }
 0x1fd   : > { %v1967_v6 = vsel %vm1965_vm8, %v1961_v1, %v6263_v34  ;;  %v6288_v34 = vunpack.i.h.bf16 %v7819_v8  ;;  %v10668_v8 = vcombine.low %v7439_v61, %v7442_v21 }
 0x1fe   : > { %v2015_v60 = vsel %vm1977_vm10, %v2010_v45, %v6282_v25  ;;  %v2016_v51 = vsel %vm1977_vm10, %v2011_v3, %v6283_v0  ;;  %v1972_v0 = vsel %vm1971_vm9, %v1966_v55, %v6272_v38  ;;  %v6297_v45 = vunpack.i.l.bf16 %v7821_v50 }
 0x1ff   : > { %v7823_v54 = vpop.permute.xlu1 %6290  ;;  %v7825_v13 = vpop.permute.xlu0 %6305  ;;  %v6298_v3 = vunpack.i.h.bf16 %v7821_v50 }
 0x200   : > { %v6292_v28 = vunpack.i.l.bf16 %v7823_v54  ;;  %v6307_v38 = vunpack.i.l.bf16 %v7825_v13 }
 0x202   : > { %v1978_v36 = vsel %vm1977_vm10, %v1972_v0, %v6292_v28 }
 0x203   : > { %v6301_v46 = vpop.permute.xlu1 %6300  ;;  %v7827_v19 = vpop.permute.xlu0 %6315 }
 0x204   : > { %v6303_v20 = vunpack.i.h.bf16 %v6301_v46  ;;  %v6302_v33 = vunpack.i.l.bf16 %v6301_v46  ;;  %v6293_v46 = vunpack.i.h.bf16 %v7823_v54  ;;  %v1973_v54 = vsel %vm1971_vm9, %v1967_v6, %v6273_v14 }
 0x205   : > { %v6308_v14 = vunpack.i.h.bf16 %v7825_v13  ;;  %v6317_v28 = vunpack.i.l.bf16 %v7827_v19 }
 0x206   : > { %v2020_v18 = vsel %vm1983_vm11, %v2015_v60, %v6302_v33  ;;  %v2021_v63 = vsel %vm1983_vm11, %v2016_v51, %v6303_v20  ;;  %v1979_v42 = vsel %vm1977_vm10, %v1973_v54, %v6293_v46  ;;  %v6278_v20 = vunpack.i.h.bf16 %v7815_v22 }
 0x207   : > { %v6311_v15 = vpop.permute.xlu1 %6310  ;;  %v7839_v24 = vpop.permute.xlu0 %6325  ;;  %v6277_v33 = vunpack.i.l.bf16 %v7815_v22  ;;  %v10667_v51 = vcombine.low %v7470_v52, %v7473_v58  ;;  %v6318_v46 = vunpack.i.h.bf16 %v7827_v19  ;;  %v10670_v58 = vcombine.low %v7527_v44, %v7530_v40 }
 0x208   : > { %v6313_v43 = vunpack.i.h.bf16 %v6311_v15  ;;  %v6312_v7 = vunpack.i.l.bf16 %v6311_v15  ;;  %v6327_v52 = vunpack.i.l.bf16 %v7839_v24 }
 0x209   : > { %v1998_v22 = vsel %vm1953_vm6, %v10667_v51, %v6278_v20  ;;  %v1997_v50 = vsel %vm1953_vm6, %v10668_v8, %v6277_v33 }
 0x20a   : > { %v1984_v26 = vsel %vm1983_vm11, %v1978_v36, %v6312_v7  ;;  %v1985_v29 = vsel %vm1983_vm11, %v1979_v42, %v6313_v43  ;;  %v1956_v43 = vsel %vm1953_vm6, %v10670_v58, %v6287_v53  ;;  %v2002_v19 = vsel %vm1959_vm7, %v1997_v50, %v6297_v45 }
 0x20b   : > { %v6321_v11 = vpop.permute.xlu1 %6320  ;;  %v7859_v2 = vpop.permute.xlu0 %6335  ;;  %v2003_v7 = vsel %vm1959_vm7, %v1998_v22, %v6298_v3  ;;  %v2007_v55 = vsel %vm1965_vm8, %v2002_v19, %v6317_v28 }
 0x20c   : > { %v6323_v41 = vunpack.i.h.bf16 %v6321_v11  ;;  %v6322_v30 = vunpack.i.l.bf16 %v6321_v11  ;;  %v6338_v61 = vunpack.i.h.bf16 %v7859_v2  ;;  %v6337_v21 = vunpack.i.l.bf16 %v7859_v2 }
 0x20d   : > { %v2008_v44 = vsel %vm1965_vm8, %v2003_v7, %v6318_v46 }
 0x20e   : > { %v2025_v17 = vsel %vm1989_vm12, %v2020_v18, %v6322_v30  ;;  %v2026_v56 = vsel %vm1989_vm12, %v2021_v63, %v6323_v41  ;;  %v10669_v41 = vcombine.low %v7552_v35, %v7555_v5  ;;  %v6328_v30 = vunpack.i.h.bf16 %v7839_v24 }
 0x20f   : > { %v6331_v25 = vpop.permute.xlu1 %6330  ;;  %v6346_v27 = vpop.permute.xlu0 %6345  ;;  %v6189_v48 = vpack.c.bf16 %v2026_v56, %v2025_v17  ;;  %v1962_v35 = vsel %vm1959_vm7, %v1956_v43, %v6307_v38  ;;  %v2012_v54 = vsel %vm1971_vm9, %v2007_v55, %v6337_v21 }
 0x210   : > { %v6333_v15 = vunpack.i.h.bf16 %v6331_v25  ;;  %v6332_v31 = vunpack.i.l.bf16 %v6331_v25  ;;  %v1957_v13 = vsel %vm1953_vm6, %v10669_v41, %v6288_v34  ;;  %v6347_v18 = vunpack.i.l.bf16 %v6346_v27 }
 0x211   : > { %6190 = vmatprep.subr.bf16.mxu0 %v6189_v48  ;;  %v1963_v5 = vsel %vm1959_vm7, %v1957_v13, %v6308_v14  ;;  %v6348_v40 = vunpack.i.h.bf16 %v6346_v27  ;;  %v1968_v17 = vsel %vm1965_vm8, %v1962_v35, %v6327_v52  ;;  %v2013_v25 = vsel %vm1971_vm9, %v2008_v44, %v6338_v61 }
 0x212   : > { %v1990_v59 = vsel %vm1989_vm12, %v1984_v26, %v6332_v31  ;;  %v1991_v37 = vsel %vm1989_vm12, %v1985_v29, %v6333_v15  ;;  %v1969_v2 = vsel %vm1965_vm8, %v1963_v5, %v6328_v30  ;;  %v2017_v31 = vsel %vm1977_vm10, %v2012_v54, %v6347_v18 }
 0x213   : > { %v6341_v62 = vpop.permute.xlu1 %6340  ;;  %v6356_v39 = vpop.permute.xlu0 %6355  ;;  %v6191_v1 = vpack.c.bf16 %v1991_v37, %v1990_v59  ;;  %v2018_v29 = vsel %vm1977_vm10, %v2013_v25, %v6348_v40 }
 0x214   : > { %v6358_v56 = vunpack.i.h.bf16 %v6356_v39  ;;  %v6357_v0 = vunpack.i.l.bf16 %v6356_v39  ;;  %v6343_v48 = vunpack.i.h.bf16 %v6341_v62  ;;  %v6342_v15 = vunpack.i.l.bf16 %v6341_v62 }
 0x215   : > { %6192 = vmatpush1.bf16.msra.mxu0 %v6191_v1 }
 0x216   : > { %v2022_v33 = vsel %vm1983_vm11, %v2017_v31, %v6357_v0  ;;  %v2023_v62 = vsel %vm1983_vm11, %v2018_v29, %v6358_v56  ;;  %v1974_v34 = vsel %vm1971_vm9, %v1968_v17, %v6342_v15  ;;  %v1975_v53 = vsel %vm1971_vm9, %v1969_v2, %v6343_v48 }
 0x217   : > { %v6351_v11 = vpop.permute.xlu1 %6350  ;;  %v1827_v60 = vpop.permute.xlu0 %1826 }
 0x218   : > { %v1999_v6 = vsel %vm1953_vm6, %v7763_v23, %v1827_v60  ;;  %v6353_v36 = vunpack.i.h.bf16 %v6351_v11  ;;  %v6352_v42 = vunpack.i.l.bf16 %v6351_v11 }
 0x219   : > { %v2004_v23 = vsel %vm1959_vm7, %v1999_v6, %v7801_v10 }
 0x21a   : > { %v1980_v3 = vsel %vm1977_vm10, %v1974_v34, %v6352_v42  ;;  %v1981_v14 = vsel %vm1977_vm10, %v1975_v53, %v6353_v36 }
 0x21b   : > { %v6361_v63 = vpop.permute.xlu1 %6360  ;;  %v1687_v24 = vpop.permute.xlu0 %1686 }
 0x21c   : > { %v6363_v1 = vunpack.i.h.bf16 %v6361_v63  ;;  %v6362_v20 = vunpack.i.l.bf16 %v6361_v63  ;;  %v1958_v22 = vsel %vm1953_vm6, %v7773_v4, %v1687_v24 }
 0x21e   : > { %v1986_v50 = vsel %vm1983_vm11, %v1980_v3, %v6362_v20  ;;  %v1987_v41 = vsel %vm1983_vm11, %v1981_v14, %v6363_v1 }
 0x21f   : > { %v6366_v27 = vpop.permute.xlu1 %6365  ;;  %v1867_v26 = vpop.permute.xlu0 %1866 }
 0x220   : > { %v6368_v59 = vunpack.i.h.bf16 %v6366_v27  ;;  %v6367_v37 = vunpack.i.l.bf16 %v6366_v27  ;;  %v2009_v39 = vsel %vm1965_vm8, %v2004_v23, %v1867_v26 }
 0x221   : > { %v2014_v11 = vsel %vm1971_vm9, %v2009_v39, %v7803_v12  ;;  %v1964_v12 = vsel %vm1959_vm7, %v1958_v22, %v7805_v9 }
 0x222   : > { %v2027_v45 = vsel %vm1989_vm12, %v2022_v33, %v6367_v37  ;;  %v2028_v10 = vsel %vm1989_vm12, %v2023_v62, %v6368_v59 }
 0x223   : > { %v6371_v38 = vpop.permute.xlu1 %6370  ;;  %v1907_v60 = vpop.permute.xlu0 %1906  ;;  %v6193_v51 = vpack.c.bf16 %v2028_v10, %v2027_v45 }
 0x224   : > { %v6373_v46 = vunpack.i.h.bf16 %v6371_v38  ;;  %v6372_v28 = vunpack.i.l.bf16 %v6371_v38  ;;  %v2019_v8 = vsel %vm1977_vm10, %v2014_v11, %v1907_v60 }
 0x225   : > { %6194 = vmatprep.subr.bf16.mxu0 %v6193_v51  ;;  %v2024_v4 = vsel %vm1983_vm11, %v2019_v8, %v7807_v57  ;;  %v2030_v57 = vld [vmem:[%s10382_s1] sm:$0xff] }
 0x226   : > { %v1992_v13 = vsel %vm1989_vm12, %v1986_v50, %v6372_v28  ;;  %v1993_v30 = vsel %vm1989_vm12, %v1987_v41, %v6373_v46 }
 0x227   : > { %v1727_v52 = vpop.permute.xlu1 %1726  ;;  %v1947_v58 = vpop.permute.xlu0 %1946  ;;  %v6195_v43 = vpack.c.bf16 %v1993_v30, %v1992_v13 }
 0x228   : > { %v1970_v19 = vsel %vm1965_vm8, %v1964_v12, %v1727_v52  ;;  %v2029_v61 = vsel %vm1989_vm12, %v2024_v4, %v1947_v58 }
 0x229   : > { %6196 = vmatpush1.bf16.msra.mxu0 %v6195_v43  ;;  %v1976_v7 = vsel %vm1971_vm9, %v1970_v19, %v7809_v16 }
 0x22a   : > { %6181 = vmatprep.subr.msk.mxu0 %vm2035_vm13, %v2029_v61 }
 0x22b   : > { %v1767_v21 = vpop.permute.xlu1 %1766 }
 0x22c   : > { %v1982_v35 = vsel %vm1977_vm10, %v1976_v7, %v1767_v21 }
 0x22d   : > { %v1988_v9 = vsel %vm1983_vm11, %v1982_v35, %v7811_v32 }
 0x22f   : > { %v1807_v5 = vpop.permute.xlu1 %1806 }
 0x230   : > { %v1994_v18 = vsel %vm1989_vm12, %v1988_v9, %v1807_v5 }
 0x231   : > { %6182 = vmatpush1.msk.msra.mxu0 %vm2035_vm13, %v1994_v18 }
 0x232   : > { %6183 = vmatmul.mubr.msk.f32.vlgmr.msra.gmra.mrb[0].mxu0 %vm2031_vm14, %v2030_v57 }
 0x305   : > { %v2108_v63 = vpop.f32.mrb[0].mxu0 }
 0x306   : > { %v7958_v24 = vmax.f32 %v2108_v63, 0.0  ;;  %v2110_v55 = vpop.f32.mrb[1].mxu0 }
 0x307   : > { %v7972_v16 = vmax.f32 %v2110_v55, 0.0 }
 0x308   : > { %2183 = vrot.lane.b32.xlu1 %v7958_v24, %s6734_s24  ;;  %2180 = vrot.lane.b32.xlu0 %v7958_v24, %s6738_s28 }
 0x30c   : > { %2189 = vrot.lane.b32.xlu1 %v7958_v24, %s6733_s23  ;;  %2186 = vrot.lane.b32.xlu0 %v7958_v24, %s6737_s27 }
 0x310   : > { %2195 = vrot.lane.b32.xlu1 %v7958_v24, %s6732_s22  ;;  %2192 = vrot.lane.b32.xlu0 %v7958_v24, %s6736_s26 }
 0x314   : > { %2198 = vrot.lane.b32.xlu0 %v7958_v24, %s6735_s25  ;;  %2202 = vrot.lane.b32.xlu1 %v7972_v16, %s6738_s28 }
 0x318   : > { %2205 = vrot.lane.b32.xlu0 %v7972_v16, %s6734_s24  ;;  %2208 = vrot.lane.b32.xlu1 %v7972_v16, %s6737_s27 }
 0x31c   : > { %2211 = vrot.lane.b32.xlu0 %v7972_v16, %s6733_s23  ;;  %2214 = vrot.lane.b32.xlu1 %v7972_v16, %s6736_s26 }
 0x320   : > { %2217 = vrot.lane.b32.xlu0 %v7972_v16, %s6732_s22  ;;  %2220 = vrot.lane.b32.xlu1 %v7972_v16, %s6735_s25 }
 0x37a   : > { %v2184_v32 = vpop.permute.xlu1 %2183  ;;  %v2181_v44 = vpop.permute.xlu0 %2180 }
 0x37b   : > { %v2223_v0 = vcombine.low %v7958_v24, %v2184_v32  ;;  %v2224_v60 = vcombine.high %v7958_v24, %v2184_v32 }
 0x37d   : > { %v2231_v31 = vrot.slane %v2223_v0, %v7031_v47  ;;  %v2238_v43 = vrot.slane %v2224_v60, %v7031_v47 }
 0x37e   : > { %v2190_v40 = vpop.permute.xlu1 %2189  ;;  %v2187_v6 = vpop.permute.xlu0 %2186 }
 0x37f   : > { %v2239_v17 = vcombine.low %v2181_v44, %v2187_v6  ;;  %v2240_v10 = vcombine.high %v2181_v44, %v2187_v6 }
 0x381   : > { %v2247_v54 = vrot.slane %v2239_v17, %v7031_v47  ;;  %v2254_v13 = vrot.slane %v2240_v10, %v7031_v47 }
 0x382   : > { %v2196_v2 = vpop.permute.xlu1 %2195  ;;  %v2193_v56 = vpop.permute.xlu0 %2192 }
 0x383   : > { %v2255_v25 = vcombine.low %v2190_v40, %v2196_v2  ;;  %v2287_v42 = vcombine.low %v2231_v31, %v2247_v54  ;;  %v2256_v3 = vcombine.high %v2190_v40, %v2196_v2  ;;  %v2288_v14 = vcombine.high %v2231_v31, %v2247_v54 }
 0x384   : > { %v2303_v7 = vcombine.low %v2238_v43, %v2254_v13 }
 0x385   : > { %v2263_v27 = vrot.slane %v2255_v25, %v7031_v47  ;;  %v2295_v1 = vrot.slane %v2287_v42, %v7228_v49  ;;  %v2270_v30 = vrot.slane %v2256_v3, %v7031_v47  ;;  %v2302_v58 = vrot.slane %v2288_v14, %v7228_v49 }
 0x386   : > { %v2199_v48 = vpop.permute.xlu0 %2198  ;;  %v7992_v15 = vpop.permute.xlu1 %2202  ;;  %v2311_v32 = vrot.slane %v2303_v7, %v7228_v49 }
 0x387   : > { %v2271_v36 = vcombine.low %v2193_v56, %v2199_v48  ;;  %v2272_v33 = vcombine.high %v2193_v56, %v2199_v48  ;;  %v2304_v48 = vcombine.high %v2238_v43, %v2254_v13 }
 0x389   : > { %v2279_v23 = vrot.slane %v2271_v36, %v7031_v47  ;;  %v2286_v51 = vrot.slane %v2272_v33, %v7031_v47 }
 0x38a   : > { %v2206_v26 = vpop.permute.xlu0 %2205  ;;  %v2209_v29 = vpop.permute.xlu1 %2208 }
 0x38b   : > { %v2319_v59 = vcombine.low %v2263_v27, %v2279_v23  ;;  %v2359_v37 = vcombine.low %v7972_v16, %v2206_v26  ;;  %v2375_v39 = vcombine.low %v7992_v15, %v2209_v29  ;;  %v2320_v53 = vcombine.high %v2263_v27, %v2279_v23 }
 0x38c   : > { %v2335_v19 = vcombine.low %v2270_v30, %v2286_v51  ;;  %v2360_v44 = vcombine.high %v7972_v16, %v2206_v26  ;;  %v2376_v40 = vcombine.high %v7992_v15, %v2209_v29  ;;  %v2336_v17 = vcombine.high %v2270_v30, %v2286_v51 }
 0x38d   : > { %v2327_v20 = vrot.slane %v2319_v59, %v7228_v49  ;;  %v2367_v38 = vrot.slane %v2359_v37, %v7031_v47  ;;  %v2383_v11 = vrot.slane %v2375_v39, %v7031_v47  ;;  %v2334_v41 = vrot.slane %v2320_v53, %v7228_v49 }
 0x38e   : > { %v2212_v62 = vpop.permute.xlu0 %2211  ;;  %v2215_v34 = vpop.permute.xlu1 %2214  ;;  %v2343_v57 = vrot.slane %v2335_v19, %v7228_v49  ;;  %v2374_v31 = vrot.slane %v2360_v44, %v7031_v47  ;;  %v2390_v16 = vrot.slane %v2376_v40, %v7031_v47  ;;  %v2350_v23 = vrot.slane %v2336_v17, %v7228_v49 }
 0x38f   : > { %v2351_v45 = vcombine.low %v2295_v1, %v2327_v20  ;;  %v2352_v50 = vcombine.high %v2295_v1, %v2327_v20  ;;  %v2423_v52 = vcombine.low %v2367_v38, %v2383_v11  ;;  %v2353_v21 = vcombine.low %v2302_v58, %v2334_v41 }
 0x390   : > { %v2354_v9 = vcombine.high %v2302_v58, %v2334_v41  ;;  %v2424_v6 = vcombine.high %v2367_v38, %v2383_v11  ;;  %v2355_v2 = vcombine.low %v2311_v32, %v2343_v57  ;;  %v2356_v42 = vcombine.high %v2311_v32, %v2343_v57 }
 0x391   : > { %2511 = vrot.lane.b32.xlu0 %v2351_v45, %s6727_s19  ;;  %v2431_v35 = vrot.slane %v2423_v52, %v7228_v49  ;;  %v2439_v26 = vcombine.low %v2374_v31, %v2390_v16  ;;  %v2318_v29 = vrot.slane %v2304_v48, %v7228_v49 }
 0x392   : > { %v2218_v22 = vpop.permute.xlu0 %2217  ;;  %v2221_v46 = vpop.permute.xlu1 %2220  ;;  %v2438_v15 = vrot.slane %v2424_v6, %v7228_v49 }
 0x393   : > { %v2391_v28 = vcombine.low %v2212_v62, %v2218_v22  ;;  %v2407_v8 = vcombine.low %v2215_v34, %v2221_v46  ;;  %v2392_v18 = vcombine.high %v2212_v62, %v2218_v22  ;;  %v2408_v63 = vcombine.high %v2215_v34, %v2221_v46 }
 0x394   : > { %v2357_v59 = vcombine.low %v2318_v29, %v2350_v23  ;;  %v2447_v1 = vrot.slane %v2439_v26, %v7228_v49  ;;  %v2358_v33 = vcombine.high %v2318_v29, %v2350_v23  ;;  %v2440_v34 = vcombine.high %v2374_v31, %v2390_v16 }
 0x395   : > { %v2399_v12 = vrot.slane %v2391_v28, %v7031_v47  ;;  %v2415_v4 = vrot.slane %v2407_v8, %v7031_v47  ;;  %2515 = vrot.lane.b32.xlu0 %v2352_v50, %s6727_s19  ;;  %v2406_v56 = vrot.slane %v2392_v18, %v7031_v47  ;;  %v2422_v0 = vrot.slane %v2408_v63, %v7031_v47 }
 0x396   : > { %v2454_v10 = vrot.slane %v2440_v34, %v7228_v49 }
 0x397   : > { %v2455_v61 = vcombine.low %v2399_v12, %v2415_v4  ;;  %v2456_v24 = vcombine.high %v2399_v12, %v2415_v4  ;;  %v2471_v36 = vcombine.low %v2406_v56, %v2422_v0  ;;  %v2472_v20 = vcombine.high %v2406_v56, %v2422_v0 }
 0x399   : > { %2519 = vrot.lane.b32.xlu0 %v2353_v21, %s6727_s19  ;;  %v2463_v5 = vrot.slane %v2455_v61, %v7228_v49  ;;  %v2470_v25 = vrot.slane %v2456_v24, %v7228_v49  ;;  %v2479_v39 = vrot.slane %v2471_v36, %v7228_v49  ;;  %v2486_v45 = vrot.slane %v2472_v20, %v7228_v49 }
 0x39b   : > { %v2487_v55 = vcombine.low %v2431_v35, %v2463_v5  ;;  %v2488_v54 = vcombine.high %v2431_v35, %v2463_v5  ;;  %v2489_v27 = vcombine.low %v2438_v15, %v2470_v25  ;;  %v2490_v37 = vcombine.high %v2438_v15, %v2470_v25 }
 0x39c   : > { %v2491_v62 = vcombine.low %v2447_v1, %v2479_v39  ;;  %v2492_v53 = vcombine.high %v2447_v1, %v2479_v39  ;;  %v2493_v3 = vcombine.low %v2454_v10, %v2486_v45  ;;  %v2494_v14 = vcombine.high %v2454_v10, %v2486_v45 }
 0x39d   : > { %2523 = vrot.lane.b32.xlu0 %v2354_v9, %s6727_s19  ;;  %2513 = vrot.lane.b32.xlu1 %v2487_v55, %s6727_s19 }
 0x3a1   : > { %2527 = vrot.lane.b32.xlu0 %v2355_v2, %s6727_s19  ;;  %2517 = vrot.lane.b32.xlu1 %v2488_v54, %s6727_s19 }
 0x3a5   : > { %2531 = vrot.lane.b32.xlu0 %v2356_v42, %s6727_s19  ;;  %2521 = vrot.lane.b32.xlu1 %v2489_v27, %s6727_s19 }
 0x3a9   : > { %2535 = vrot.lane.b32.xlu0 %v2357_v59, %s6727_s19  ;;  %2525 = vrot.lane.b32.xlu1 %v2490_v37, %s6727_s19 }
 0x3ad   : > { %2539 = vrot.lane.b32.xlu0 %v2358_v33, %s6727_s19  ;;  %2529 = vrot.lane.b32.xlu1 %v2491_v62, %s6727_s19 }
 0x3b1   : > { %2533 = vrot.lane.b32.xlu1 %v2492_v53, %s6727_s19 }
 0x3b5   : > { %2537 = vrot.lane.b32.xlu1 %v2493_v3, %s6727_s19 }
 0x3b9   : > { %2541 = vrot.lane.b32.xlu1 %v2494_v14, %s6727_s19 }
 0x403   : > { %v2512_v38 = vpop.permute.xlu0 %2511 }
 0x404   : > { %2559 = vst.msk [vmem:[#allocation3 + $0x1] sm:$0xff] %vm248_vm5, %v2512_v38 }
 0x407   : > { %v2516_v11 = vpop.permute.xlu0 %2515 }
 0x408   : > { %2561 = vst.msk [vmem:[#allocation3 + $0x19] sm:$0xff] %vm248_vm5, %v2516_v11 }
 0x40b   : > { %v2520_v60 = vpop.permute.xlu0 %2519  ;;  %v8048_v51 = vld [vmem:[#allocation3] sm:$0xff] }
 0x40c   : > { %2563 = vst.msk [vmem:[#allocation3 + $0x31] sm:$0xff] %vm248_vm5, %v2520_v60  ;;  %2639 = vrot.lane.b32.xlu0 %v8048_v51, %s6728_s20 }
 0x40f   : > { %v2524_v22 = vpop.permute.xlu0 %2523  ;;  %v2514_v46 = vpop.permute.xlu1 %2513  ;;  %v8053_v28 = vld [vmem:[#allocation3 + $0x18] sm:$0xff] }
 0x410   : > { %2565 = vst.msk [vmem:[#allocation3 + $0x49] sm:$0xff] %vm248_vm5, %v2524_v22  ;;  %2560 = vst.msk [vmem:[#allocation3 + $0x9] sm:$0xff] %vm248_vm5, %v2514_v46  ;;  %2643 = vrot.lane.b32.xlu0 %v8053_v28, %s6728_s20  ;;  %v8071_v58 = vld [vmem:[#allocation3 + $0x19] sm:$0xff] }
 0x413   : > { %v2528_v8 = vpop.permute.xlu0 %2527  ;;  %v2518_v50 = vpop.permute.xlu1 %2517  ;;  %v8059_v41 = vld [vmem:[#allocation3 + $0x30] sm:$0xff] }
 0x414   : > { %2567 = vst.msk [vmem:[#allocation3 + $0x61] sm:$0xff] %vm248_vm5, %v2528_v8  ;;  %2562 = vst.msk [vmem:[#allocation3 + $0x21] sm:$0xff] %vm248_vm5, %v2518_v50  ;;  %2647 = vrot.lane.b32.xlu0 %v8059_v41, %s6728_s20  ;;  %v2959_v13 = vcombine.low %v8048_v51, %v8059_v41  ;;  %v2960_v30 = vcombine.high %v8048_v51, %v8059_v41 }
 0x416   : > { %v8088_v35 = vrot.slane %v2959_v13, %v7031_v47  ;;  %v8091_v5 = vrot.slane %v2960_v30, %v7031_v47 }
 0x417   : > { %v2532_v52 = vpop.permute.xlu0 %2531  ;;  %v2522_v12 = vpop.permute.xlu1 %2521  ;;  %v8069_v4 = vld [vmem:[#allocation3 + $0x48] sm:$0xff] }
 0x418   : > { %v8073_v43 = vld [vmem:[#allocation3 + $0x49] sm:$0xff]  ;;  %2569 = vst.msk [vmem:[#allocation3 + $0x79] sm:$0xff] %vm248_vm5, %v2532_v52  ;;  %2564 = vst.msk [vmem:[#allocation3 + $0x39] sm:$0xff] %vm248_vm5, %v2522_v12  ;;  %2651 = vrot.lane.b32.xlu0 %v8069_v4, %s6728_s20  ;;  %v2975_v19 = vcombine.low %v8053_v28, %v8069_v4  ;;  %v2976_v61 = vcombine.high %v8053_v28, %v8069_v4 }
 0x419   : > { %v3383_v21 = vcombine.low %v8071_v58, %v8073_v43  ;;  %v3384_v7 = vcombine.high %v8071_v58, %v8073_v43  ;;  %v8125_v54 = vld [vmem:[#allocation3 + $0x8] sm:$0xff] }
 0x41a   : > { %v8094_v9 = vrot.slane %v2975_v19, %v7031_v47  ;;  %v8097_v57 = vrot.slane %v2976_v61, %v7031_v47  ;;  %10671 = vst [vmem:[#allocation22_spill] sm:$0xff] %v8125_v54  ;;  %v8210_v19 = vld [vmem:[#allocation3 + $0x31] sm:$0xff] }
 0x41b   : > { %v2536_v18 = vpop.permute.xlu0 %2535  ;;  %v2526_v63 = vpop.permute.xlu1 %2525  ;;  %v8099_v24 = vld [vmem:[#allocation3 + $0x60] sm:$0xff] }
 0x41c   : > { %v3023_v55 = vcombine.low %v8088_v35, %v8094_v9  ;;  %v3024_v32 = vcombine.high %v8088_v35, %v8094_v9  ;;  %v3039_v44 = vcombine.low %v8091_v5, %v8097_v57  ;;  %v3040_v40 = vcombine.high %v8091_v5, %v8097_v57  ;;  %2571 = vst.msk [vmem:[#allocation3 + $0x91] sm:$0xff] %vm248_vm5, %v2536_v18  ;;  %v8129_v31 = vld [vmem:[#allocation3 + $0x20] sm:$0xff] }
 0x41d   : > { %2566 = vst.msk [vmem:[#allocation3 + $0x51] sm:$0xff] %vm248_vm5, %v2526_v63  ;;  %2655 = vrot.lane.b32.xlu0 %v8099_v24, %s6728_s20  ;;  %v8212_v61 = vld [vmem:[#allocation3 + $0x61] sm:$0xff] }
 0x41e   : > { %v8218_v63 = vld [vmem:[#allocation3 + $0x1] sm:$0xff]  ;;  %v8348_v9 = vrot.slane %v3040_v40, %v7228_v49 }
 0x41f   : > { %v2540_v6 = vpop.permute.xlu0 %2539  ;;  %v2530_v17 = vpop.permute.xlu1 %2529  ;;  %v8113_v2 = vld [vmem:[#allocation3 + $0x78] sm:$0xff]  ;;  %v8336_v12 = vld [vmem:[#allocation3 + $0x22] sm:$0xff] }
 0x420   : > { %v8115_v56 = vld [vmem:[#allocation3 + $0x79] sm:$0xff]  ;;  %2573 = vst.msk [vmem:[#allocation3 + $0xa9] sm:$0xff] %vm248_vm5, %v2540_v6  ;;  %2568 = vst.msk [vmem:[#allocation3 + $0x69] sm:$0xff] %vm248_vm5, %v2530_v17  ;;  %v3367_v17 = vcombine.low %v8218_v63, %v8210_v19 }
 0x421   : > { %2659 = vrot.lane.b32.xlu0 %v8113_v2, %s6728_s20  ;;  %2771 = vrot.lane.b32.xlu1 %v8115_v56, %s6728_s20  ;;  %v8123_v0 = vld [vmem:[#allocation3 + $0x38] sm:$0xff]  ;;  %10684 = vst [vmem:[#allocation23_spill] sm:$0xff] %v8348_v9 }
 0x422   : > { %v4183_v16 = vcombine.low %v8125_v54, %v8123_v0  ;;  %v4184_v15 = vcombine.high %v8125_v54, %v8123_v0  ;;  %v8360_v35 = vld [vmem:[#allocation3 + $0x1a] sm:$0xff] }
 0x423   : > { %v2534_v25 = vpop.permute.xlu1 %2533  ;;  %v8127_v48 = vld [vmem:[#allocation3 + $0x90] sm:$0xff]  ;;  %10687 = vst [vmem:[#allocation29_spill] sm:$0xff] %v8360_v35 }
 0x424   : > { %v8135_v36 = vld [vmem:[#allocation3 + $0x50] sm:$0xff]  ;;  %2570 = vst.msk [vmem:[#allocation3 + $0x81] sm:$0xff] %vm248_vm5, %v2534_v25  ;;  %v2991_v42 = vcombine.low %v8099_v24, %v8127_v48  ;;  %v2992_v27 = vcombine.high %v8099_v24, %v8127_v48  ;;  %v8159_v20 = vrot.slane %v4183_v16, %v7031_v47  ;;  %v8162_v33 = vrot.slane %v4184_v15, %v7031_v47 }
 0x425   : > { %2663 = vrot.lane.b32.xlu0 %v8127_v48, %s6728_s20  ;;  %v4199_v23 = vcombine.low %v8129_v31, %v8135_v36  ;;  %v4200_v26 = vcombine.high %v8129_v31, %v8135_v36  ;;  %v8197_v8 = vld [vmem:[#allocation3 + $0x91] sm:$0xff]  ;;  %v3391_v16 = vrot.slane %v3383_v21, %v7031_v47  ;;  %v3398_v15 = vrot.slane %v3384_v7, %v7031_v47 }
 0x426   : > { %v8186_v11 = vrot.slane %v2991_v42, %v7031_v47  ;;  %v8189_v60 = vrot.slane %v2992_v27, %v7031_v47  ;;  %10672 = vst [vmem:[#allocation21_spill] sm:$0xff] %v8197_v8  ;;  %v3399_v18 = vcombine.low %v8212_v61, %v8197_v8  ;;  %v3375_v21 = vrot.slane %v3367_v17, %v7031_v47 }
 0x427   : > { %v8149_v29 = vrot.slane %v4199_v23, %v7031_v47  ;;  %v8152_v59 = vrot.slane %v4200_v26, %v7031_v47  ;;  %v2538_v37 = vpop.permute.xlu1 %2537  ;;  %v8154_v39 = vld [vmem:[#allocation3 + $0xa8] sm:$0xff]  ;;  %v3400_v3 = vcombine.high %v8212_v61, %v8197_v8 }
 0x428   : > { %v8156_v1 = vld [vmem:[#allocation3 + $0xa9] sm:$0xff]  ;;  %2572 = vst.msk [vmem:[#allocation3 + $0x99] sm:$0xff] %vm248_vm5, %v2538_v37  ;;  %v3007_v62 = vcombine.low %v8113_v2, %v8154_v39  ;;  %v3008_v34 = vcombine.high %v8113_v2, %v8154_v39  ;;  %v3407_v27 = vrot.slane %v3399_v18, %v7031_v47  ;;  %v3431_v18 = vcombine.low %v3375_v21, %v3391_v16 }
 0x429   : > { %2667 = vrot.lane.b32.xlu0 %v8154_v39, %s6728_s20  ;;  %v3415_v53 = vcombine.low %v8115_v56, %v8156_v1  ;;  %v3416_v45 = vcombine.high %v8115_v56, %v8156_v1  ;;  %2779 = vrot.lane.b32.xlu1 %v8156_v1, %s6728_s20  ;;  %v8239_v42 = vld [vmem:[#allocation3 + $0x68] sm:$0xff]  ;;  %v3432_v17 = vcombine.high %v3375_v21, %v3391_v16 }
 0x42a   : > { %v8192_v22 = vrot.slane %v3007_v62, %v7031_v47  ;;  %v8195_v46 = vrot.slane %v3008_v34, %v7031_v47  ;;  %v8309_v21 = vld [vmem:[#allocation3 + $0x21] sm:$0xff]  ;;  %v8384_v8 = vld [vmem:[#allocation3 + $0x6a] sm:$0xff] }
 0x42b   : > { %v2542_v50 = vpop.permute.xlu1 %2541  ;;  %v3423_v6 = vrot.slane %v3415_v53, %v7031_v47  ;;  %v8246_v26 = vld [vmem:[#allocation3 + $0x80] sm:$0xff]  ;;  %10677 = vst [vmem:[#allocation35_spill] sm:$0xff] %v8309_v21 }
 0x42c   : > { %2574 = vst.msk [vmem:[#allocation3 + $0xb1] sm:$0xff] %vm248_vm5, %v2542_v50 }
 0x42d   : > { %2687 = vrot.lane.b32.xlu0 %v8048_v51, %s6730_s21  ;;  %2803 = vrot.lane.b32.xlu1 %v8071_v58, %s6730_s21  ;;  %v3368_v51 = vcombine.high %v8218_v63, %v8210_v19  ;;  %v3463_v62 = vcombine.low %v3407_v27, %v3423_v6  ;;  %v3464_v34 = vcombine.high %v3407_v27, %v3423_v6 }
 0x42f   : > { %v8225_v25 = vld [vmem:[#allocation3 + $0x98] sm:$0xff]  ;;  %v3382_v37 = vrot.slane %v3368_v51, %v7031_v47  ;;  %v8278_v16 = vrot.slane %v3464_v34, %v7228_v49  ;;  %v8299_v34 = vld [vmem:[#allocation3 + $0xa] sm:$0xff] }
 0x430   : > { %v4216_v23 = vcombine.high %v8239_v42, %v8225_v25  ;;  %v8334_v10 = vld [vmem:[#allocation3 + $0x99] sm:$0xff] }
 0x431   : > { %2691 = vrot.lane.b32.xlu0 %v8053_v28, %s6730_s21  ;;  %2811 = vrot.lane.b32.xlu1 %v8073_v43, %s6730_s21  ;;  %v4215_v28 = vcombine.low %v8239_v42, %v8225_v25  ;;  %v3447_v38 = vcombine.low %v3382_v37, %v3398_v15  ;;  %v3448_v14 = vcombine.high %v3382_v37, %v3398_v15  ;;  %v8358_v52 = vld [vmem:[#allocation3 + $0x9a] sm:$0xff] }
 0x432   : > { %v8264_v6 = vrot.slane %v4216_v23, %v7031_v47  ;;  %10674 = vst [vmem:[#allocation16_spill] sm:$0xff] %v8278_v16  ;;  %v8291_v37 = vrot.slane %v3416_v45, %v7031_v47  ;;  %v8307_v15 = vrot.slane %v3432_v17, %v7228_v49  ;;  %v8311_v45 = vld [vmem:[#allocation3 + $0x51] sm:$0xff]  ;;  %v8331_v17 = vrot.slane %v3039_v44, %v7228_v49  ;;  %v8354_v44 = vld [vmem:[#allocation3 + $0x69] sm:$0xff] }
 0x433   : > { %v8250_v7 = vld [vmem:[#allocation3 + $0xb0] sm:$0xff]  ;;  %v8261_v51 = vrot.slane %v4215_v28, %v7031_v47  ;;  %10678 = vst [vmem:[#allocation7_spill] sm:$0xff] %v8311_v45  ;;  %v3414_v28 = vrot.slane %v3400_v3, %v7031_v47  ;;  %10682 = vst [vmem:[#allocation36_spill] sm:$0xff] %v8334_v10  ;;  %v8363_v30 = vrot.slane %v3447_v38, %v7228_v49  ;;  %v8396_v38 = vld [vmem:[#allocation3 + $0x81] sm:$0xff] }
 0x434   : > { %v4231_v53 = vcombine.low %v8246_v26, %v8250_v7  ;;  %v4232_v50 = vcombine.high %v8246_v26, %v8250_v7  ;;  %10676 = vst [vmem:[#allocation37_spill] sm:$0xff] %v8307_v15  ;;  %v8313_v23 = vld [vmem:[#allocation3 + $0x52] sm:$0xff]  ;;  %10681 = vst [vmem:[#allocation31_spill] sm:$0xff] %v8331_v17  ;;  %v8366_v5 = vrot.slane %v3448_v14, %v7228_v49 }
 0x435   : > { %2695 = vrot.lane.b32.xlu0 %v8059_v41, %s6730_s21  ;;  %2819 = vrot.lane.b32.xlu1 %v8115_v56, %s6730_s21  ;;  %v8275_v56 = vrot.slane %v3463_v62, %v7228_v49  ;;  %v8295_v62 = vld [vmem:[#allocation3 + $0x9] sm:$0xff]  ;;  %10685 = vst [vmem:[#allocation5_spill] sm:$0xff] %v8354_v44  ;;  %10686 = vst [vmem:[#allocation4_spill] sm:$0xff] %v8358_v52  ;;  %v3479_v57 = vcombine.low %v3414_v28, %v8291_v37  ;;  %v8372_v40 = vld [vmem:[#allocation3 + $0xb1] sm:$0xff] }
 0x436   : > { %v8267_v41 = vrot.slane %v4231_v53, %v7031_v47  ;;  %v8270_v27 = vrot.slane %v4232_v50, %v7031_v47  ;;  %v8301_v53 = vld [vmem:[#allocation3 + $0x3a] sm:$0xff]  ;;  %v8304_v50 = vrot.slane %v3431_v18, %v7228_v49  ;;  %v8325_v18 = vrot.slane %v3024_v32, %v7228_v49  ;;  %10688 = vst [vmem:[#allocation27_spill] sm:$0xff] %v8363_v30  ;;  %v8376_v32 = vld [vmem:[#allocation3 + $0x92] sm:$0xff] }
 0x437   : > { %10673 = vst [vmem:[#allocation19_spill] sm:$0xff] %v8275_v56  ;;  %10689 = vst [vmem:[#allocation32_spill] sm:$0xff] %v8366_v5  ;;  %v4607_v3 = vcombine.low %v8309_v21, %v8311_v45  ;;  %v8380_v13 = vld [vmem:[#allocation3 + $0xb2] sm:$0xff]  ;;  %v4623_v14 = vcombine.low %v8354_v44, %v8334_v10  ;;  %v10692_v45 = vcombine.low %v8186_v11, %v8192_v22  ;;  %v8400_v10 = vld [vmem:[#allocation3 + $0x62] sm:$0xff] }
 0x438   : > { %10675 = vst [vmem:[#allocation12_spill] sm:$0xff] %v8304_v50  ;;  %10680 = vst [vmem:[#allocation33_spill] sm:$0xff] %v8325_v18  ;;  %v8402_v44 = vld [vmem:[#allocation3 + $0x82] sm:$0xff]  ;;  %v10700_v15 = vcombine.high %v8189_v60, %v8195_v46 }
 0x439   : > { %2699 = vrot.lane.b32.xlu0 %v8069_v4, %s6730_s21  ;;  %2827 = vrot.lane.b32.xlu1 %v8156_v1, %s6730_s21  ;;  %v8297_v4 = vld [vmem:[#allocation3 + $0x39] sm:$0xff]  ;;  %v8319_v1 = vrot.slane %v3023_v55, %v7228_v49  ;;  %v8338_v55 = vld [vmem:[#allocation3 + $0x4a] sm:$0xff]  ;;  %10690 = vst [vmem:[#allocation30_spill] sm:$0xff] %v8376_v32  ;;  %10691 = vst [vmem:[#allocation28_spill] sm:$0xff] %v8380_v13  ;;  %v8394_v21 = vrot.slane %v10692_v45, %v7228_v49 }
 0x43a   : > { %10683 = vst [vmem:[#allocation34_spill] sm:$0xff] %v8338_v55  ;;  %10694 = vst [vmem:[#allocation13_spill] sm:$0xff] %v8400_v10  ;;  %v10698_v45 = vcombine.low %v8189_v60, %v8195_v46  ;;  %v10703_v60 = vcombine.low %v8159_v20, %v8149_v29  ;;  %v8522_v9 = vrot.slane %v4607_v3, %v7031_v47 }
 0x43b   : > { %10679 = vst [vmem:[#allocation6_spill] sm:$0xff] %v8319_v1  ;;  %10693 = vst [vmem:[#allocation26_spill] sm:$0xff] %v8394_v21  ;;  %v10722_v3 = vcombine.high %v8162_v33, %v8152_v59 }
 0x43c   : > { %10695 = vst [vmem:[#allocation24_spill] sm:$0xff] %v8402_v44  ;;  %v8414_v16 = vrot.slane %v10698_v45, %v7228_v49  ;;  %v8430_v45 = vld [vmem:[#allocation3 + $0xaa] sm:$0xff]  ;;  %v8436_v46 = vrot.slane %v10703_v60, %v7228_v49 }
 0x43d   : > { %2703 = vrot.lane.b32.xlu0 %v8099_v24, %s6730_s21  ;;  %2641 = vrot.lane.b32.xlu1 %v8125_v54, %s6728_s20  ;;  %v3480_v24 = vcombine.high %v3414_v28, %v8291_v37  ;;  %v3791_v28 = vcombine.low %v8360_v35, %v8338_v55  ;;  %v5031_v54 = vcombine.low %v8384_v8, %v8358_v52 }
 0x43e   : > { %v10696_v55 = vcombine.high %v8186_v11, %v8192_v22  ;;  %10699 = vst [vmem:[#allocation38_spill] sm:$0xff] %v8414_v16  ;;  %v8420_v35 = vrot.slane %v10700_v15, %v7228_v49  ;;  %v4639_v11 = vcombine.low %v8396_v38, %v8372_v40  ;;  %v3807_v22 = vcombine.low %v8400_v10, %v8376_v32  ;;  %v8448_v32 = vld [vmem:[#allocation3 + $0x7a] sm:$0xff] }
 0x43f   : > { %10702 = vst [vmem:[#allocation11_spill] sm:$0xff] %v8430_v45  ;;  %10704 = vst [vmem:[#allocation10_spill] sm:$0xff] %v8436_v46  ;;  %v10708_v15 = vcombine.high %v8159_v20, %v8149_v29  ;;  %v10710_v10 = vcombine.high %v8261_v51, %v8267_v41  ;;  %v10713_v29 = vcombine.low %v8162_v33, %v8152_v59 }
 0x440   : > { %v8408_v37 = vrot.slane %v10696_v55, %v7228_v49  ;;  %10701 = vst [vmem:[#allocation25_spill] sm:$0xff] %v8420_v35  ;;  %v5047_v55 = vcombine.low %v8402_v44, %v8380_v13  ;;  %10705 = vst [vmem:[#allocation8_spill] sm:$0xff] %v8448_v32  ;;  %v3823_v44 = vcombine.low %v8448_v32, %v8430_v45  ;;  %v8481_v13 = vld [vmem:[#allocation3 + $0x32] sm:$0xff] }
 0x441   : > { %2707 = vrot.lane.b32.xlu0 %v8113_v2, %s6730_s21  ;;  %2645 = vrot.lane.b32.xlu1 %v8129_v31, %s6728_s20  ;;  %v10706_v2 = vcombine.low %v8261_v51, %v8267_v41  ;;  %v8468_v60 = vrot.slane %v10708_v15, %v7228_v49  ;;  %v8474_v16 = vrot.slane %v10710_v10, %v7228_v49 }
 0x442   : > { %10697 = vst [vmem:[#allocation17_spill] sm:$0xff] %v8408_v37  ;;  %v8489_v20 = vrot.slane %v10713_v29, %v7228_v49  ;;  %v10715_v10 = vcombine.low %v8264_v6, %v8270_v27  ;;  %v8498_v41 = vrot.slane %v3480_v24, %v7228_v49  ;;  %v8513_v24 = vld [vmem:[#allocation3 + $0x2] sm:$0xff]  ;;  %v8525_v15 = vrot.slane %v4623_v14, %v7031_v47 }
 0x443   : > { %v8458_v52 = vrot.slane %v10706_v2, %v7228_v49  ;;  %10709 = vst [vmem:[#allocation20_spill] sm:$0xff] %v8468_v60  ;;  %10711 = vst [vmem:[#allocation18_spill] sm:$0xff] %v8474_v16  ;;  %v8477_v2 = vrot.slane %v3479_v57, %v7228_v49  ;;  %v8530_v29 = vrot.slane %v5047_v55, %v7031_v47  ;;  %v10760_v16 = vld [vmem:[#allocation24_spill] sm:$0xff]  ;;  %v10765_v37 = vld [vmem:[#allocation29_spill] sm:$0xff] }
 0x444   : > { %10714 = vst [vmem:[#allocation15_spill] sm:$0xff] %v8489_v20  ;;  %v8495_v51 = vrot.slane %v10715_v10, %v7228_v49  ;;  %10717 = vst [vmem:[#allocation40_spill] sm:$0xff] %v8498_v41  ;;  %v8511_v10 = vrot.slane %v4639_v11, %v7031_v47  ;;  %v3775_v11 = vcombine.low %v8513_v24, %v8481_v13  ;;  %v10753_v41 = vld [vmem:[#allocation13_spill] sm:$0xff] }
 0x445   : > { %10707 = vst [vmem:[#allocation9_spill] sm:$0xff] %v8458_v52  ;;  %10712 = vst [vmem:[#allocation14_spill] sm:$0xff] %v8477_v2  ;;  %2711 = vrot.lane.b32.xlu0 %v8127_v48, %s6730_s21  ;;  %2649 = vrot.lane.b32.xlu1 %v8123_v0, %s6728_s20  ;;  %v8535_v35 = vrot.slane %v3823_v44, %v7031_v47  ;;  %v8543_v14 = vrot.slane %v10722_v3, %v7228_v49 }
 0x446   : > { %10716 = vst [vmem:[#allocation39_spill] sm:$0xff] %v8495_v51  ;;  %10718 = vst [vmem:[#allocation41_spill] sm:$0xff] %v8511_v10  ;;  %v10724_v55 = vcombine.high %v8264_v6, %v8270_v27  ;;  %v8560_v57 = vrot.slane %v5031_v54, %v7031_v47  ;;  %v8563_v59 = vrot.slane %v3807_v22, %v7031_v47 }
 0x447   : > { %10719 = vst [vmem:[#allocation42_spill] sm:$0xff] %v8525_v15  ;;  %10720 = vst [vmem:[#allocation43_spill] sm:$0xff] %v8530_v29  ;;  %v10729_v33 = vcombine.low %v8336_v12, %v8313_v23  ;;  %v4687_v27 = vcombine.low %v8525_v15, %v8511_v10  ;;  %v8574_v3 = vrot.slane %v3791_v28, %v7031_v47 }
 0x448   : > { %10721 = vst [vmem:[#allocation44_spill] sm:$0xff] %v8535_v35  ;;  %10723 = vst [vmem:[#allocation45_spill] sm:$0xff] %v8543_v14  ;;  %v8549_v48 = vrot.slane %v10724_v55, %v7228_v49  ;;  %v10732_v22 = vcombine.low %v8299_v34, %v8301_v53  ;;  %v8593_v55 = vrot.slane %v3775_v11, %v7031_v47 }
 0x449   : > { %2715 = vrot.lane.b32.xlu0 %v8154_v39, %s6730_s21  ;;  %2653 = vrot.lane.b32.xlu1 %v8135_v36, %s6728_s20  ;;  %v10726_v39 = vcombine.low %v8295_v62, %v8297_v4  ;;  %10727 = vst [vmem:[#allocation47_spill] sm:$0xff] %v8560_v57  ;;  %10728 = vst [vmem:[#allocation48_spill] sm:$0xff] %v8563_v59  ;;  %v8569_v6 = vrot.slane %v10729_v33, %v7031_v47 }
 0x44a   : > { %10725 = vst [vmem:[#allocation46_spill] sm:$0xff] %v8549_v48  ;;  %10731 = vst [vmem:[#allocation50_spill] sm:$0xff] %v8574_v3  ;;  %v5095_v54 = vcombine.low %v8560_v57, %v8530_v29  ;;  %v3871_v48 = vcombine.low %v8563_v59, %v8535_v35  ;;  %v3839_v33 = vcombine.low %v8593_v55, %v8574_v3 }
 0x44b   : > { %v8557_v44 = vrot.slane %v10726_v39, %v7031_v47  ;;  %10730 = vst [vmem:[#allocation49_spill] sm:$0xff] %v8569_v6  ;;  %v8584_v39 = vrot.slane %v10732_v22, %v7031_v47  ;;  %10734 = vst [vmem:[#allocation52_spill] sm:$0xff] %v8593_v55  ;;  %v8606_v14 = vrot.slane %v4687_v27, %v7228_v49 }
 0x44c   : > { %v8614_v59 = vrot.slane %v5095_v54, %v7228_v49  ;;  %v8617_v35 = vrot.slane %v3871_v48, %v7228_v49 }
 0x44d   : > { %10733 = vst [vmem:[#allocation51_spill] sm:$0xff] %v8584_v39  ;;  %2751 = vrot.lane.b32.xlu0 %v8218_v63, %s6728_s20  ;;  %v4655_v28 = vcombine.low %v8557_v44, %v8522_v9  ;;  %2657 = vrot.lane.b32.xlu1 %v8239_v42, %s6728_s20  ;;  %v5063_v22 = vcombine.low %v8584_v39, %v8569_v6  ;;  %10735 = vst [vmem:[#allocation53_spill] sm:$0xff] %v8606_v14 }
 0x44e   : > { %10737 = vst [vmem:[#allocation55_spill] sm:$0xff] %v8614_v59  ;;  %10738 = vst [vmem:[#allocation56_spill] sm:$0xff] %v8617_v35 }
 0x44f   : > { %v8611_v11 = vrot.slane %v4655_v28, %v7228_v49  ;;  %v8624_v27 = vrot.slane %v5063_v22, %v7228_v49  ;;  %v10742_v22 = vld [vmem:[#allocation21_spill] sm:$0xff] }
 0x451   : > { %2755 = vrot.lane.b32.xlu0 %v8071_v58, %s6728_s20  ;;  %10736 = vst [vmem:[#allocation54_spill] sm:$0xff] %v8611_v11  ;;  %2661 = vrot.lane.b32.xlu1 %v8246_v26, %s6728_s20  ;;  %10739 = vst [vmem:[#allocation57_spill] sm:$0xff] %v8624_v27  ;;  %v8627_v58 = vrot.slane %v3839_v33, %v7228_v49  ;;  %v10741_v33 = vld [vmem:[#allocation22_spill] sm:$0xff]  ;;  %v10763_v11 = vld [vmem:[#allocation28_spill] sm:$0xff] }
 0x453   : > { %10740 = vst [vmem:[#allocation58_spill] sm:$0xff] %v8627_v58 }
 0x455   : > { %2759 = vrot.lane.b32.xlu0 %v8210_v19, %s6728_s20  ;;  %2665 = vrot.lane.b32.xlu1 %v8225_v25, %s6728_s20 }
 0x459   : > { %2763 = vrot.lane.b32.xlu0 %v8073_v43, %s6728_s20  ;;  %2669 = vrot.lane.b32.xlu1 %v8250_v7, %s6728_s20  ;;  %v10743_v43 = vld [vmem:[#allocation35_spill] sm:$0xff] }
 0x45d   : > { %2767 = vrot.lane.b32.xlu0 %v8212_v61, %s6728_s20  ;;  %2689 = vrot.lane.b32.xlu1 %v10741_v33, %s6730_s21 }
 0x461   : > { %2775 = vrot.lane.b32.xlu0 %v10742_v22, %s6728_s20  ;;  %2693 = vrot.lane.b32.xlu1 %v8129_v31, %s6730_s21  ;;  %v10744_v31 = vld [vmem:[#allocation7_spill] sm:$0xff] }
 0x465   : > { %2799 = vrot.lane.b32.xlu0 %v8218_v63, %s6730_s21  ;;  %2697 = vrot.lane.b32.xlu1 %v8123_v0, %s6730_s21  ;;  %v10745_v63 = vld [vmem:[#allocation5_spill] sm:$0xff] }
 0x469   : > { %2807 = vrot.lane.b32.xlu0 %v8210_v19, %s6730_s21  ;;  %2701 = vrot.lane.b32.xlu1 %v8135_v36, %s6730_s21 }
 0x46d   : > { %2815 = vrot.lane.b32.xlu0 %v8212_v61, %s6730_s21  ;;  %2705 = vrot.lane.b32.xlu1 %v8239_v42, %s6730_s21  ;;  %v10746_v42 = vld [vmem:[#allocation36_spill] sm:$0xff] }
 0x471   : > { %2823 = vrot.lane.b32.xlu0 %v10742_v22, %s6730_s21  ;;  %2709 = vrot.lane.b32.xlu1 %v8246_v26, %s6730_s21  ;;  %v10747_v22 = vld [vmem:[#allocation4_spill] sm:$0xff] }
 0x475   : > { %2773 = vrot.lane.b32.xlu0 %v8396_v38, %s6728_s20  ;;  %2713 = vrot.lane.b32.xlu1 %v8225_v25, %s6730_s21 }
 0x479   : > { %2781 = vrot.lane.b32.xlu0 %v8372_v40, %s6728_s20  ;;  %2717 = vrot.lane.b32.xlu1 %v8250_v7, %s6730_s21 }
 0x47d   : > { %2805 = vrot.lane.b32.xlu0 %v10743_v43, %s6730_s21  ;;  %2753 = vrot.lane.b32.xlu1 %v8295_v62, %s6728_s20 }
 0x47e   : > { %v8681_v0 = vpop.permute.xlu0 %2639 }
 0x481   : > { %2813 = vrot.lane.b32.xlu0 %v10744_v31, %s6730_s21  ;;  %2757 = vrot.lane.b32.xlu1 %v10743_v43, %s6728_s20 }
 0x482   : > { %v8687_v36 = vpop.permute.xlu0 %2643 }
 0x485   : > { %2821 = vrot.lane.b32.xlu0 %v8396_v38, %s6730_s21  ;;  %2761 = vrot.lane.b32.xlu1 %v8297_v4, %s6728_s20 }
 0x486   : > { %v8693_v19 = vpop.permute.xlu0 %2647 }
 0x487   : > { %v3095_v28 = vcombine.low %v8681_v0, %v8693_v19 }
 0x489   : > { %2829 = vrot.lane.b32.xlu0 %v8372_v40, %s6730_s21  ;;  %2765 = vrot.lane.b32.xlu1 %v10744_v31, %s6728_s20  ;;  %v8753_v29 = vrot.slane %v3095_v28, %v7031_v47 }
 0x48a   : > { %v8699_v61 = vpop.permute.xlu0 %2651 }
 0x48b   : > { %v3111_v48 = vcombine.low %v8687_v36, %v8699_v61 }
 0x48d   : > { %2865 = vrot.lane.b32.xlu0 %v8299_v34, %s6728_s20  ;;  %2769 = vrot.lane.b32.xlu1 %v10745_v63, %s6728_s20  ;;  %v8740_v27 = vrot.slane %v3111_v48, %v7031_v47 }
 0x48f   : > { %v8705_v25 = vpop.permute.xlu0 %2655 }
 0x491   : > { %2873 = vrot.lane.b32.xlu0 %v8301_v53, %s6728_s20  ;;  %2777 = vrot.lane.b32.xlu1 %v10746_v42, %s6728_s20 }
 0x493   : > { %v8711_v26 = vpop.permute.xlu0 %2659  ;;  %v8719_v33 = vpop.permute.xlu1 %2771 }
 0x495   : > { %2881 = vrot.lane.b32.xlu0 %v8384_v8, %s6728_s20  ;;  %2801 = vrot.lane.b32.xlu1 %v8295_v62, %s6730_s21 }
 0x497   : > { %v8717_v7 = vpop.permute.xlu0 %2663 }
 0x498   : > { %v3127_v55 = vcombine.low %v8705_v25, %v8717_v7 }
 0x499   : > { %2889 = vrot.lane.b32.xlu0 %v10747_v22, %s6728_s20  ;;  %2809 = vrot.lane.b32.xlu1 %v8297_v4, %s6730_s21 }
 0x49a   : > { %v8743_v59 = vrot.slane %v3127_v55, %v7031_v47  ;;  %v3159_v55 = vcombine.low %v8753_v29, %v8740_v27 }
 0x49b   : > { %v8729_v54 = vpop.permute.xlu0 %2667  ;;  %v8735_v35 = vpop.permute.xlu1 %2779 }
 0x49c   : > { %v3143_v58 = vcombine.low %v8711_v26, %v8729_v54  ;;  %v8775_v5 = vrot.slane %v3159_v55, %v7228_v49 }
 0x49d   : > { %2863 = vrot.lane.b32.xlu0 %v8513_v24, %s6728_s20  ;;  %2817 = vrot.lane.b32.xlu1 %v10745_v63, %s6730_s21 }
 0x49e   : > { %v8746_v3 = vrot.slane %v3143_v58, %v7031_v47  ;;  %10754 = vst [vmem:[#allocation36_spill] sm:$0xff] %v8775_v5 }
 0x49f   : > { %v8750_v57 = vpop.permute.xlu0 %2687  ;;  %v8757_v20 = vpop.permute.xlu1 %2803 }
 0x4a0   : > { %10748 = vst [vmem:[#allocation22_spill] sm:$0xff] %v8750_v57  ;;  %v3191_v51 = vcombine.low %v8743_v59, %v8746_v3  ;;  %10749 = vst [vmem:[#allocation21_spill] sm:$0xff] %v8757_v20 }
 0x4a1   : > { %2871 = vrot.lane.b32.xlu0 %v8481_v13, %s6728_s20  ;;  %2825 = vrot.lane.b32.xlu1 %v10746_v42, %s6730_s21 }
 0x4a2   : > { %v8768_v48 = vrot.slane %v3191_v51, %v7228_v49  ;;  %v10757_v51 = vld [vmem:[#allocation30_spill] sm:$0xff] }
 0x4a3   : > { %v8765_v58 = vpop.permute.xlu0 %2691  ;;  %v8770_v28 = vpop.permute.xlu1 %2811 }
 0x4a4   : > { %10750 = vst [vmem:[#allocation35_spill] sm:$0xff] %v8765_v58  ;;  %10751 = vst [vmem:[#allocation7_spill] sm:$0xff] %v8768_v48 }
 0x4a5   : > { %10752 = vst [vmem:[#allocation5_spill] sm:$0xff] %v8770_v28  ;;  %2879 = vrot.lane.b32.xlu0 %v10753_v41, %s6728_s20  ;;  %2869 = vrot.lane.b32.xlu1 %v8336_v12, %s6728_s20 }
 0x4a7   : > { %v8779_v2 = vpop.permute.xlu0 %2695  ;;  %v8781_v30 = vpop.permute.xlu1 %2819 }
 0x4a8   : > { %10755 = vst [vmem:[#allocation4_spill] sm:$0xff] %v8779_v2  ;;  %10756 = vst [vmem:[#allocation13_spill] sm:$0xff] %v8781_v30  ;;  %v3231_v15 = vcombine.low %v8750_v57, %v8779_v2  ;;  %v10768_v30 = vld [vmem:[#allocation34_spill] sm:$0xff] }
 0x4a9   : > { %2887 = vrot.lane.b32.xlu0 %v10757_v51, %s6728_s20  ;;  %2877 = vrot.lane.b32.xlu1 %v8313_v23, %s6728_s20 }
 0x4aa   : > { %v3239_v57 = vrot.slane %v3231_v15, %v7031_v47 }
 0x4ab   : > { %v8789_v14 = vpop.permute.xlu0 %2699  ;;  %v8791_v55 = vpop.permute.xlu1 %2827 }
 0x4ac   : > { %10758 = vst [vmem:[#allocation30_spill] sm:$0xff] %v8789_v14  ;;  %10759 = vst [vmem:[#allocation59_spill] sm:$0xff] %v8791_v55  ;;  %v3247_v18 = vcombine.low %v8765_v58, %v8789_v14 }
 0x4ad   : > { %2913 = vrot.lane.b32.xlu0 %v8299_v34, %s6730_s21  ;;  %2885 = vrot.lane.b32.xlu1 %v10760_v16, %s6728_s20 }
 0x4ae   : > { %v3255_v55 = vrot.slane %v3247_v18, %v7031_v47 }
 0x4af   : > { %v8797_v60 = vpop.permute.xlu0 %2703  ;;  %v8799_v52 = vpop.permute.xlu1 %2641 }
 0x4b0   : > { %10761 = vst [vmem:[#allocation60_spill] sm:$0xff] %v8797_v60  ;;  %10762 = vst [vmem:[#allocation61_spill] sm:$0xff] %v8799_v52  ;;  %v3295_v18 = vcombine.low %v3239_v57, %v3255_v55  ;;  %v3296_v48 = vcombine.high %v3239_v57, %v3255_v55 }
 0x4b1   : > { %2921 = vrot.lane.b32.xlu0 %v8301_v53, %s6730_s21  ;;  %2893 = vrot.lane.b32.xlu1 %v10763_v11, %s6728_s20 }
 0x4b2   : > { %v3310_v57 = vrot.slane %v3296_v48, %v7228_v49 }
 0x4b3   : > { %v8805_v46 = vpop.permute.xlu0 %2707  ;;  %v8807_v17 = vpop.permute.xlu1 %2645 }
 0x4b4   : > { %10764 = vst [vmem:[#allocation62_spill] sm:$0xff] %v8805_v46 }
 0x4b5   : > { %2929 = vrot.lane.b32.xlu0 %v8384_v8, %s6730_s21  ;;  %2867 = vrot.lane.b32.xlu1 %v10765_v37, %s6728_s20 }
 0x4b7   : > { %v8815_v21 = vpop.permute.xlu0 %2711  ;;  %v8817_v1 = vpop.permute.xlu1 %2649 }
 0x4b8   : > { %10766 = vst [vmem:[#allocation63_spill] sm:$0xff] %v8815_v21  ;;  %10767 = vst [vmem:[#allocation64_spill] sm:$0xff] %v8817_v1  ;;  %v3263_v10 = vcombine.low %v8797_v60, %v8815_v21 }
 0x4b9   : > { %2937 = vrot.lane.b32.xlu0 %v10747_v22, %s6730_s21  ;;  %2875 = vrot.lane.b32.xlu1 %v10768_v30, %s6728_s20 }
 0x4ba   : > { %v3271_v2 = vrot.slane %v3263_v10, %v7031_v47  ;;  %v8853_v10 = vrot.slane %v3295_v18, %v7228_v49  ;;  %v10777_v18 = vcombine.high %v8304_v50, %v8275_v56  ;;  %v10779_v50 = vld [vmem:[#allocation37_spill] sm:$0xff] }
 0x4bb   : > { %v8828_v39 = vpop.permute.xlu0 %2715  ;;  %v8832_v14 = vpop.permute.xlu1 %2653 }
 0x4bc   : > { %10769 = vst [vmem:[#allocation65_spill] sm:$0xff] %v8828_v39  ;;  %v3279_v58 = vcombine.low %v8805_v46, %v8828_v39  ;;  %10772 = vst [vmem:[#allocation68_spill] sm:$0xff] %v8853_v10 }
 0x4bd   : > { %2911 = vrot.lane.b32.xlu0 %v8513_v24, %s6730_s21  ;;  %2883 = vrot.lane.b32.xlu1 %v8448_v32, %s6728_s20  ;;  %v4608_v32 = vcombine.high %v10743_v43, %v10744_v31  ;;  %v5000_v31 = vcombine.high %v8299_v34, %v8301_v53 }
 0x4be   : > { %v3287_v60 = vrot.slane %v3279_v58, %v7031_v47 }
 0x4bf   : > { %v8841_v21 = vpop.permute.xlu0 %2751  ;;  %v8843_v5 = vpop.permute.xlu1 %2657 }
 0x4c0   : > { %v3327_v6 = vcombine.low %v3271_v2, %v3287_v60  ;;  %10770 = vst [vmem:[#allocation66_spill] sm:$0xff] %v8843_v5  ;;  %v3328_v58 = vcombine.high %v3271_v2, %v3287_v60 }
 0x4c1   : > { %2919 = vrot.lane.b32.xlu0 %v8481_v13, %s6730_s21  ;;  %2891 = vrot.lane.b32.xlu1 %v8430_v45, %s6728_s20 }
 0x4c2   : > { %v8848_v15 = vrot.slane %v3327_v6, %v7228_v49  ;;  %v3342_v6 = vrot.slane %v3328_v58, %v7228_v49 }
 0x4c3   : > { %v8855_v46 = vpop.permute.xlu0 %2755  ;;  %v8857_v39 = vpop.permute.xlu1 %2661 }
 0x4c4   : > { %10771 = vst [vmem:[#allocation67_spill] sm:$0xff] %v8848_v15  ;;  %10773 = vst [vmem:[#allocation69_spill] sm:$0xff] %v8855_v46  ;;  %v3360_v60 = vcombine.high %v8853_v10, %v8848_v15  ;;  %v3361_v20 = vcombine.low %v3310_v57, %v3342_v6  ;;  %v4335_v15 = vcombine.low %v8807_v17, %v8832_v14 }
 0x4c5   : > { %10774 = vst [vmem:[#allocation70_spill] sm:$0xff] %v8857_v39  ;;  %2927 = vrot.lane.b32.xlu0 %v10753_v41, %s6730_s21  ;;  %2917 = vrot.lane.b32.xlu1 %v8336_v12, %s6730_s21 }
 0x4c6   : > { %v6394_v58 = vpack.i.bf16 %v10777_v18, %v3360_v60  ;;  %v4319_v60 = vcombine.low %v8799_v52, %v8817_v1  ;;  %v8912_v52 = vrot.slane %v4335_v15, %v7031_v47  ;;  %v8919_v1 = vrot.slane %v4608_v32, %v7031_v47 }
 0x4c7   : > { %v8866_v45 = vpop.permute.xlu0 %2759  ;;  %v8870_v2 = vpop.permute.xlu1 %2665 }
 0x4c8   : > { %10775 = vst [vmem:[#allocation71_spill] sm:$0xff] %v8870_v2  ;;  %v4351_v48 = vcombine.low %v8843_v5, %v8870_v2  ;;  %v10780_v5 = vld [vmem:[#allocation16_spill] sm:$0xff] }
 0x4c9   : > { %2935 = vrot.lane.b32.xlu0 %v10757_v51, %s6730_s21  ;;  %2925 = vrot.lane.b32.xlu1 %v8313_v23, %s6730_s21  ;;  %v10781_v2 = vcombine.low %v10779_v50, %v10780_v5  ;;  %10783 = vst [vmem:[#allocation16_spill] sm:$0xff] %v8919_v1 }
 0x4cb   : > { %v8877_v55 = vpop.permute.xlu0 %2763  ;;  %v8882_v28 = vpop.permute.xlu1 %2669 }
 0x4cc   : > { %10776 = vst [vmem:[#allocation72_spill] sm:$0xff] %v8877_v55  ;;  %10778 = vst [vmem:[#allocation73_spill] sm:$0xff] %v8882_v28  ;;  %v4367_v10 = vcombine.low %v8857_v39, %v8882_v28  ;;  %v6404_v39 = vpack.i.bf16 %v10781_v2, %v3361_v20  ;;  %v3362_v28 = vcombine.high %v3310_v57, %v3342_v6 }
 0x4cd   : > { %6395 = vrot.lane.b32.xlu0 %v6394_v58, %s6735_s25  ;;  %2933 = vrot.lane.b32.xlu1 %v10760_v16, %s6730_s21  ;;  %v4592_v58 = vcombine.high %v8295_v62, %v8297_v4  ;;  %v3776_v62 = vcombine.high %v8513_v24, %v8481_v13  ;;  %v8926_v4 = vrot.slane %v4319_v60, %v7031_v47  ;;  %v10806_v16 = vld [vmem:[#allocation13_spill] sm:$0xff] }
 0x4ce   : > { %v8898_v18 = vrot.slane %v4367_v10, %v7031_v47  ;;  %v8915_v10 = vrot.slane %v4351_v48, %v7031_v47  ;;  %v10784_v20 = vcombine.high %v10779_v50, %v10780_v5  ;;  %v8943_v13 = vrot.slane %v5000_v31, %v7031_v47  ;;  %v10802_v50 = vld [vmem:[#allocation36_spill] sm:$0xff] }
 0x4cf   : > { %v8900_v56 = vpop.permute.xlu0 %2767  ;;  %v8907_v43 = vpop.permute.xlu1 %2689  ;;  %v8936_v32 = vrot.slane %v4592_v58, %v7031_v47  ;;  %v4383_v24 = vcombine.low %v8926_v4, %v8912_v52  ;;  %v3519_v2 = vcombine.low %v8855_v46, %v8877_v55  ;;  %v3144_v48 = vcombine.high %v8711_v26, %v8729_v54 }
 0x4d0   : > { %10782 = vst [vmem:[#allocation37_spill] sm:$0xff] %v8907_v43  ;;  %v4415_v34 = vcombine.low %v8915_v10, %v8898_v18  ;;  %10786 = vst [vmem:[#allocation75_spill] sm:$0xff] %v8943_v13  ;;  %v8963_v60 = vrot.slane %v3776_v62, %v7031_v47  ;;  %v3503_v57 = vcombine.low %v8841_v21, %v8866_v45 }
 0x4d1   : > { %6405 = vrot.lane.b32.xlu0 %v6404_v39, %s6732_s22  ;;  %2941 = vrot.lane.b32.xlu1 %v10763_v11, %s6730_s21  ;;  %v6414_v39 = vpack.i.bf16 %v10784_v20, %v3362_v28  ;;  %10785 = vst [vmem:[#allocation74_spill] sm:$0xff] %v8936_v32  ;;  %v3551_v28 = vcombine.low %v8719_v33, %v8735_v35  ;;  %v10805_v11 = vld [vmem:[#allocation59_spill] sm:$0xff] }
 0x4d2   : > { %10787 = vst [vmem:[#allocation76_spill] sm:$0xff] %v8963_v60  ;;  %v8966_v58 = vrot.slane %v4415_v34, %v7228_v49  ;;  %v4624_v20 = vcombine.high %v10745_v63, %v10746_v42  ;;  %v3112_v26 = vcombine.high %v8687_v36, %v8699_v61  ;;  %v3128_v62 = vcombine.high %v8705_v25, %v8717_v7 }
 0x4d3   : > { %v8930_v53 = vpop.permute.xlu0 %2775  ;;  %v8940_v6 = vpop.permute.xlu1 %2693  ;;  %v5032_v63 = vcombine.high %v8384_v8, %v10747_v22  ;;  %v8988_v42 = vrot.slane %v4383_v24, %v7228_v49  ;;  %v8998_v36 = vrot.slane %v3519_v2, %v7031_v47  ;;  %v3096_v8 = vcombine.high %v8681_v0, %v8693_v19 }
 0x4d4   : > { %v3535_v15 = vcombine.low %v8900_v56, %v8930_v53  ;;  %10788 = vst [vmem:[#allocation77_spill] sm:$0xff] %v8966_v58  ;;  %v3158_v61 = vrot.slane %v3144_v48, %v7031_v47  ;;  %v3192_v25 = vcombine.high %v8743_v59, %v8746_v3  ;;  %v4640_v22 = vcombine.high %v8396_v38, %v8372_v40  ;;  %v10796_v48 = vld [vmem:[#allocation8_spill] sm:$0xff] }
 0x4d5   : > { %6415 = vrot.lane.b32.xlu0 %v6414_v39, %s6736_s26  ;;  %2915 = vrot.lane.b32.xlu1 %v10765_v37, %s6730_s21  ;;  %v5016_v39 = vcombine.high %v8336_v12, %v8313_v23  ;;  %10791 = vst [vmem:[#allocation80_spill] sm:$0xff] %v8988_v42  ;;  %v8991_v12 = vrot.slane %v3551_v28, %v7031_v47 }
 0x4d6   : > { %v8977_v5 = vrot.slane %v3535_v15, %v7031_v47  ;;  %v3808_v23 = vcombine.high %v10753_v41, %v10757_v51  ;;  %v9014_v51 = vrot.slane %v4624_v20, %v7031_v47  ;;  %v9017_v15 = vrot.slane %v3503_v57, %v7031_v47 }
 0x4d7   : > { %v8968_v31 = vpop.permute.xlu0 %2799  ;;  %v8979_v54 = vpop.permute.xlu1 %2697  ;;  %v3126_v59 = vrot.slane %v3112_v26, %v7031_v47  ;;  %v3160_v3 = vcombine.high %v8753_v29, %v8740_v27  ;;  %v3142_v24 = vrot.slane %v3128_v62, %v7031_v47  ;;  %v9028_v40 = vrot.slane %v5032_v63, %v7031_v47  ;;  %v10797_v63 = vld [vmem:[#allocation5_spill] sm:$0xff] }
 0x4d8   : > { %10789 = vst [vmem:[#allocation78_spill] sm:$0xff] %v8968_v31  ;;  %10790 = vst [vmem:[#allocation79_spill] sm:$0xff] %v8979_v54  ;;  %v3599_v0 = vcombine.low %v8977_v5, %v8991_v12  ;;  %v9031_v38 = vrot.slane %v3808_v23, %v7031_v47  ;;  %v9034_v28 = vrot.slane %v5016_v39, %v7031_v47  ;;  %v10798_v23 = vld [vmem:[#allocation21_spill] sm:$0xff] }
 0x4d9   : > { %2923 = vrot.lane.b32.xlu1 %v10768_v30, %s6730_s21  ;;  %10793 = vst [vmem:[#allocation82_spill] sm:$0xff] %v9028_v40  ;;  %v3567_v2 = vcombine.low %v9017_v15, %v8998_v36  ;;  %v3110_v29 = vrot.slane %v3096_v8, %v7031_v47  ;;  %v3206_v27 = vrot.slane %v3192_v25, %v7228_v49  ;;  %v10801_v8 = vld [vmem:[#allocation7_spill] sm:$0xff]  ;;  %v10812_v30 = vld [vmem:[#allocation26_spill] sm:$0xff] }
 0x4da   : > { %10794 = vst [vmem:[#allocation83_spill] sm:$0xff] %v9031_v38  ;;  %10795 = vst [vmem:[#allocation84_spill] sm:$0xff] %v9034_v28  ;;  %v3207_v20 = vcombine.low %v3142_v24, %v3158_v61  ;;  %v9049_v39 = vrot.slane %v4640_v22, %v7031_v47  ;;  %v3655_v41 = vcombine.low %v10798_v23, %v10797_v63 }
 0x4db   : > { %v9007_v7 = vpop.permute.xlu0 %2807  ;;  %v9021_v19 = vpop.permute.xlu1 %2701  ;;  %v9054_v34 = vrot.slane %v3599_v0, %v7228_v49  ;;  %v3224_v25 = vcombine.high %v10802_v50, %v10801_v8  ;;  %v3174_v38 = vrot.slane %v3160_v3, %v7228_v49  ;;  %v3175_v60 = vcombine.low %v3110_v29, %v3126_v59  ;;  %v10808_v8 = vld [vmem:[#allocation11_spill] sm:$0xff]  ;;  %v10809_v50 = vld [vmem:[#allocation41_spill] sm:$0xff] }
 0x4dc   : > { %10792 = vst [vmem:[#allocation81_spill] sm:$0xff] %v9007_v7  ;;  %v3639_v57 = vcombine.low %v8968_v31, %v9007_v7  ;;  %v3208_v26 = vcombine.high %v3142_v24, %v3158_v61  ;;  %v3687_v1 = vcombine.low %v10806_v16, %v10805_v11  ;;  %v9068_v0 = vrot.slane %v3567_v2, %v7228_v49  ;;  %v10810_v61 = vld [vmem:[#allocation42_spill] sm:$0xff] }
 0x4dd   : > { %2931 = vrot.lane.b32.xlu1 %v10796_v48, %s6730_s21  ;;  %10799 = vst [vmem:[#allocation8_spill] sm:$0xff] %v9054_v34  ;;  %v3176_v3 = vcombine.high %v3110_v29, %v3126_v59  ;;  %v9076_v37 = vrot.slane %v3207_v20, %v7228_v49  ;;  %v3225_v22 = vcombine.low %v3174_v38, %v3206_v27 }
 0x4de   : > { %10807 = vst [vmem:[#allocation21_spill] sm:$0xff] %v9068_v0  ;;  %v3647_v32 = vrot.slane %v3639_v57, %v7031_v47  ;;  %v3663_v13 = vrot.slane %v3655_v41, %v7031_v47  ;;  %v10811_v57 = vld [vmem:[#allocation6_spill] sm:$0xff]  ;;  %v9091_v20 = vrot.slane %v3175_v60, %v7228_v49  ;;  %v9096_v41 = vrot.slane %v3208_v26, %v7228_v49  ;;  %v10817_v26 = vld [vmem:[#allocation33_spill] sm:$0xff] }
 0x4df   : > { %v9046_v62 = vpop.permute.xlu0 %2815  ;;  %v9056_v48 = vpop.permute.xlu1 %2705  ;;  %v3226_v46 = vcombine.high %v3174_v38, %v3206_v27  ;;  %v3695_v55 = vrot.slane %v3687_v1, %v7031_v47  ;;  %v10818_v38 = vld [vmem:[#allocation17_spill] sm:$0xff] }
 0x4e0   : > { %10800 = vst [vmem:[#allocation5_spill] sm:$0xff] %v9056_v48  ;;  %v3703_v31 = vcombine.low %v3647_v32, %v3663_v13  ;;  %v10819_v27 = vcombine.low %v10817_v26, %v10818_v38 }
 0x4e1   : > { %2939 = vrot.lane.b32.xlu1 %v10808_v8, %s6730_s21  ;;  %v10813_v8 = vcombine.high %v10811_v57, %v10812_v30  ;;  %v10821_v30 = vld [vmem:[#allocation30_spill] sm:$0xff]  ;;  %v10822_v57 = vld [vmem:[#allocation35_spill] sm:$0xff] }
 0x4e2   : > { %v6379_v1 = vpack.i.bf16 %v3225_v22, %v10819_v27  ;;  %v3568_v22 = vcombine.high %v9017_v15, %v8998_v36  ;;  %v10823_v27 = vcombine.high %v10817_v26, %v10818_v38  ;;  %v10829_v15 = vld [vmem:[#allocation31_spill] sm:$0xff] }
 0x4e3   : > { %v9078_v40 = vpop.permute.xlu0 %2823  ;;  %v9083_v28 = vpop.permute.xlu1 %2709  ;;  %v6374_v59 = vpack.i.bf16 %v3224_v25, %v10813_v8  ;;  %v10814_v25 = vcombine.high %v8557_v44, %v8522_v9  ;;  %v9108_v8 = vrot.slane %v3176_v3, %v7228_v49  ;;  %v3600_v9 = vcombine.high %v8977_v5, %v8991_v12  ;;  %v10827_v12 = vld [vmem:[#allocation62_spill] sm:$0xff] }
 0x4e4   : > { %v3671_v2 = vcombine.low %v9046_v62, %v9078_v40  ;;  %v3704_v44 = vcombine.high %v3647_v32, %v3663_v13  ;;  %v9133_v5 = vrot.slane %v3703_v31, %v7228_v49  ;;  %v10826_v13 = vld [vmem:[#allocation65_spill] sm:$0xff] }
 0x4e5   : > { %6375 = vrot.lane.b32.xlu1 %v6374_v59, %s6735_s25  ;;  %v9105_v60 = vrot.slane %v10814_v25, %v7228_v49  ;;  %v3228_v59 = vcombine.high %v9091_v20, %v9076_v37  ;;  %v3280_v36 = vcombine.high %v10827_v12, %v10826_v13  ;;  %v3614_v38 = vrot.slane %v3600_v9, %v7228_v49  ;;  %v10832_v13 = vld [vmem:[#allocation4_spill] sm:$0xff]  ;;  %v10833_v12 = vld [vmem:[#allocation22_spill] sm:$0xff] }
 0x4e6   : > { %v3679_v7 = vrot.slane %v3671_v2, %v7031_v47  ;;  %v3227_v2 = vcombine.low %v9091_v20, %v9076_v37  ;;  %10824 = vst [vmem:[#allocation41_spill] sm:$0xff] %v9133_v5  ;;  %v3232_v37 = vcombine.high %v10833_v12, %v10832_v13  ;;  %v4336_v13 = vcombine.high %v8807_v17, %v8832_v14  ;;  %v10837_v12 = vld [vmem:[#allocation70_spill] sm:$0xff] }
 0x4e7   : > { %10815 = vst [vmem:[#allocation59_spill] sm:$0xff] %v9105_v60  ;;  %v9110_v29 = vpop.permute.xlu0 %2773  ;;  %v9121_v3 = vpop.permute.xlu1 %2713  ;;  %v3248_v60 = vcombine.high %v10822_v57, %v10821_v30  ;;  %v10830_v57 = vld [vmem:[#allocation38_spill] sm:$0xff] }
 0x4e8   : > { %10816 = vst [vmem:[#allocation13_spill] sm:$0xff] %v9110_v29  ;;  %v3735_v25 = vcombine.low %v3679_v7, %v3695_v55  ;;  %v3736_v24 = vcombine.high %v3679_v7, %v3695_v55  ;;  %10820 = vst [vmem:[#allocation11_spill] sm:$0xff] %v9121_v3  ;;  %v6384_v29 = vpack.i.bf16 %v3226_v46, %v10823_v27 }
 0x4e9   : > { %v4471_v55 = vcombine.low %v8940_v6, %v9021_v19  ;;  %6380 = vrot.lane.b32.xlu1 %v6379_v1, %s6732_s22  ;;  %v4455_v46 = vcombine.low %v8907_v43, %v8979_v54  ;;  %v4487_v31 = vcombine.low %v9056_v48, %v9121_v3  ;;  %v10831_v20 = vcombine.low %v10829_v15, %v10830_v57  ;;  %v10834_v54 = vld [vmem:[#allocation63_spill] sm:$0xff] }
 0x4ea   : > { %v9138_v32 = vrot.slane %v3735_v25, %v7228_v49  ;;  %v3750_v30 = vrot.slane %v3736_v24, %v7228_v49  ;;  %v3718_v24 = vrot.slane %v3704_v44, %v7228_v49  ;;  %v3632_v25 = vcombine.high %v9068_v0, %v9054_v34 }
 0x4eb   : > { %v9148_v7 = vpop.permute.xlu0 %2781  ;;  %v6389_v26 = vpack.i.bf16 %v3227_v2, %v10831_v20  ;;  %v9155_v1 = vpop.permute.xlu1 %2717  ;;  %v9164_v43 = vrot.slane %v3248_v60, %v7031_v47  ;;  %v10835_v2 = vld [vmem:[#allocation60_spill] sm:$0xff]  ;;  %v3582_v44 = vrot.slane %v3568_v22, %v7228_v49  ;;  %v9172_v48 = vrot.slane %v4471_v55, %v7031_v47  ;;  %v10836_v60 = vld [vmem:[#allocation73_spill] sm:$0xff] }
 0x4ec   : > { %10825 = vst [vmem:[#allocation42_spill] sm:$0xff] %v9138_v32  ;;  %10828 = vst [vmem:[#allocation33_spill] sm:$0xff] %v9148_v7  ;;  %v3768_v27 = vcombine.high %v9133_v5, %v9138_v32  ;;  %v3264_v20 = vcombine.high %v10835_v2, %v10834_v54  ;;  %v4503_v9 = vcombine.low %v9083_v28, %v9155_v1 }
 0x4ed   : > { %6385 = vrot.lane.b32.xlu1 %v6384_v29, %s6736_s26  ;;  %v3769_v0 = vcombine.low %v3718_v24, %v3750_v30  ;;  %v4368_v3 = vcombine.high %v10837_v12, %v10836_v60  ;;  %v9180_v54 = vrot.slane %v4487_v31, %v7031_v47  ;;  %v3294_v55 = vrot.slane %v3280_v36, %v7031_v47  ;;  %v10841_v12 = vld [vmem:[#allocation71_spill] sm:$0xff] }
 0x4ee   : > { %v6429_v34 = vpack.i.bf16 %v3768_v27, %v3632_v25  ;;  %v9183_v2 = vrot.slane %v4503_v9, %v7031_v47  ;;  %v9189_v29 = vrot.slane %v4455_v46, %v7031_v47  ;;  %v3633_v17 = vcombine.low %v3582_v44, %v3614_v38  ;;  %v10839_v27 = vld [vmem:[#allocation64_spill] sm:$0xff]  ;;  %v10840_v9 = vld [vmem:[#allocation61_spill] sm:$0xff] }
 0x4ef   : > { %v9185_v22 = vpop.permute.xlu0 %2805  ;;  %v9191_v25 = vpop.permute.xlu1 %2753  ;;  %v3278_v31 = vrot.slane %v3264_v20, %v7031_v47  ;;  %v4320_v60 = vcombine.high %v10840_v9, %v10839_v27  ;;  %v4416_v46 = vcombine.high %v8915_v10, %v8898_v18  ;;  %v3770_v32 = vcombine.high %v3718_v24, %v3750_v30 }
 0x4f0   : > { %10838 = vst [vmem:[#allocation17_spill] sm:$0xff] %v9185_v22  ;;  %6430 = vrot.lane.b32.xlu0 %v6429_v34, %s6735_s25  ;;  %v10842_v22 = vld [vmem:[#allocation66_spill] sm:$0xff]  ;;  %v4551_v36 = vcombine.low %v9180_v54, %v9183_v2  ;;  %v4519_v34 = vcombine.low %v9189_v29, %v9172_v48  ;;  %v6439_v14 = vpack.i.bf16 %v3769_v0, %v3633_v17  ;;  %v10847_v17 = vld [vmem:[#allocation25_spill] sm:$0xff] }
 0x4f1   : > { %v4352_v7 = vcombine.high %v10842_v22, %v10841_v12  ;;  %6390 = vrot.lane.b32.xlu1 %v6389_v26, %s6733_s23  ;;  %v3246_v20 = vrot.slane %v3232_v37, %v7031_v47  ;;  %v9210_v27 = vrot.slane %v4336_v13, %v7031_v47  ;;  %v9213_v22 = vrot.slane %v4368_v3, %v7031_v47 }
 0x4f2   : > { %v10843_v18 = vcombine.high %v10829_v15, %v10830_v57  ;;  %v3343_v12 = vcombine.low %v3278_v31, %v3294_v55  ;;  %v4384_v26 = vcombine.high %v8926_v4, %v8912_v52  ;;  %v9223_v0 = vrot.slane %v4551_v36, %v7228_v49 }
 0x4f3   : > { %v9215_v9 = vpop.permute.xlu0 %2813  ;;  %v9225_v37 = vpop.permute.xlu1 %2757  ;;  %v3634_v30 = vcombine.high %v3582_v44, %v3614_v38  ;;  %v3311_v3 = vcombine.low %v3246_v20, %v9164_v43  ;;  %v9230_v24 = vrot.slane %v4320_v60, %v7031_v47  ;;  %v3344_v13 = vcombine.high %v3278_v31, %v3294_v55 }
 0x4f4   : > { %v6399_v10 = vpack.i.bf16 %v3228_v59, %v10843_v18  ;;  %10844 = vst [vmem:[#allocation30_spill] sm:$0xff] %v9223_v0  ;;  %6440 = vrot.lane.b32.xlu0 %v6439_v14, %s6732_s22  ;;  %v9233_v59 = vrot.slane %v4352_v7, %v7031_v47  ;;  %v9236_v15 = vrot.slane %v4416_v46, %v7228_v49  ;;  %v10846_v7 = vld [vmem:[#allocation23_spill] sm:$0xff] }
 0x4f5   : > { %v9239_v52 = vrot.slane %v4519_v34, %v7228_v49  ;;  %v6449_v4 = vpack.i.bf16 %v3770_v32, %v3634_v30  ;;  %v4448_v57 = vcombine.high %v8988_v42, %v8966_v58  ;;  %v3312_v38 = vcombine.high %v3246_v20, %v9164_v43  ;;  %v10870_v42 = vld [vmem:[#allocation40_spill] sm:$0xff] }
 0x4f6   : > { %6400 = vrot.lane.b32.xlu1 %v6399_v10, %s6737_s27  ;;  %v4431_v44 = vcombine.low %v9233_v59, %v9213_v22  ;;  %v10848_v14 = vcombine.low %v10846_v7, %v10847_v17  ;;  %v10849_v31 = vcombine.low %v9108_v8, %v9096_v41  ;;  %v3230_v32 = vcombine.high %v9108_v8, %v9096_v41 }
 0x4f7   : > { %10845 = vst [vmem:[#allocation35_spill] sm:$0xff] %v9239_v52  ;;  %v9247_v55 = vpop.permute.xlu0 %2821  ;;  %v3351_v36 = vrot.slane %v3343_v12, %v7228_v49  ;;  %v4398_v46 = vrot.slane %v4384_v26, %v7228_v49  ;;  %v4399_v43 = vcombine.low %v9230_v24, %v9210_v27  ;;  %v9261_v34 = vpop.permute.xlu1 %2761  ;;  %v3552_v18 = vcombine.high %v8719_v33, %v8735_v35  ;;  %v10852_v33 = vld [vmem:[#allocation10_spill] sm:$0xff] }
 0x4f8   : > { %v6409_v60 = vpack.i.bf16 %v10849_v31, %v10848_v14  ;;  %6450 = vrot.lane.b32.xlu0 %v6449_v4, %s6736_s26  ;;  %v9269_v10 = vrot.slane %v3344_v13, %v7228_v49  ;;  %v10850_v41 = vcombine.high %v10810_v61, %v10809_v50  ;;  %v10851_v12 = vcombine.low %v9014_v51, %v9049_v39  ;;  %v10853_v13 = vld [vmem:[#allocation9_spill] sm:$0xff] }
 0x4f9   : > { %v3656_v30 = vcombine.high %v10798_v23, %v10797_v63  ;;  %v3319_v35 = vrot.slane %v3311_v3, %v7228_v49  ;;  %v10854_v4 = vcombine.high %v10852_v33, %v10853_v13  ;;  %v4449_v50 = vcombine.low %v4398_v46, %v9236_v15 }
 0x4fa   : > { %v9275_v8 = vrot.slane %v10850_v41, %v7228_v49  ;;  %v9281_v26 = vrot.slane %v10851_v12, %v7228_v49  ;;  %6410 = vrot.lane.b32.xlu1 %v6409_v60, %s6734_s24  ;;  %v9292_v61 = vrot.slane %v3312_v38, %v7228_v49  ;;  %v3688_v31 = vcombine.high %v10806_v16, %v10805_v11 }
 0x4fb   : > { %v6479_v14 = vpack.i.bf16 %v4448_v57, %v10854_v4  ;;  %v9297_v41 = vrot.slane %v4431_v44, %v7228_v49  ;;  %v9299_v63 = vpop.permute.xlu0 %2829  ;;  %v10855_v23 = vcombine.high %v10846_v7, %v10847_v17  ;;  %v9305_v60 = vrot.slane %v4399_v43, %v7228_v49  ;;  %v9309_v38 = vpop.permute.xlu1 %2765  ;;  %v10856_v7 = vld [vmem:[#allocation81_spill] sm:$0xff]  ;;  %v10857_v17 = vld [vmem:[#allocation78_spill] sm:$0xff] }
 0x4fc   : > { %v3672_v57 = vcombine.high %v9046_v62, %v9078_v40  ;;  %v3363_v16 = vcombine.low %v3319_v35, %v3351_v36  ;;  %v3364_v11 = vcombine.high %v3319_v35, %v3351_v36  ;;  %v3504_v44 = vcombine.high %v8841_v21, %v8866_v45  ;;  %v10858_v62 = vld [vmem:[#allocation20_spill] sm:$0xff]  ;;  %v10859_v4 = vld [vmem:[#allocation18_spill] sm:$0xff]  ;;  %v10861_v45 = vld [vmem:[#allocation53_spill] sm:$0xff] }
 0x4fd   : > { %v6419_v3 = vpack.i.bf16 %v3230_v32, %v10855_v23  ;;  %6480 = vrot.lane.b32.xlu0 %v6479_v14, %s6735_s25  ;;  %v3536_v12 = vcombine.high %v8900_v56, %v8930_v53  ;;  %v3640_v32 = vcombine.high %v10857_v17, %v10856_v7  ;;  %v3365_v43 = vcombine.low %v9292_v61, %v9269_v10  ;;  %v10862_v14 = vld [vmem:[#allocation54_spill] sm:$0xff]  ;;  %v10863_v7 = vld [vmem:[#allocation72_spill] sm:$0xff] }
 0x4fe   : > { %v9321_v40 = vrot.slane %v3552_v18, %v7031_v47  ;;  %v10860_v36 = vcombine.low %v10858_v62, %v10859_v4  ;;  %v4450_v21 = vcombine.high %v4398_v46, %v9236_v15  ;;  %v4720_v56 = vcombine.high %v10862_v14, %v10861_v45  ;;  %v10864_v18 = vld [vmem:[#allocation69_spill] sm:$0xff]  ;;  %v10865_v46 = vld [vmem:[#allocation27_spill] sm:$0xff] }
 0x4ff   : > { %6420 = vrot.lane.b32.xlu1 %v6419_v3, %s6738_s28  ;;  %v9331_v53 = vrot.slane %v3656_v30, %v7031_v47  ;;  %v9334_v23 = vrot.slane %v3688_v31, %v7031_v47  ;;  %v3520_v17 = vcombine.high %v10864_v18, %v10863_v7  ;;  %v9338_v20 = vpop.permute.xlu0 %2865  ;;  %v4451_v3 = vcombine.low %v9305_v60, %v9297_v41  ;;  %v9345_v15 = vpop.permute.xlu1 %2769  ;;  %v10866_v30 = vld [vmem:[#allocation14_spill] sm:$0xff] }
 0x500   : > { %v6484_v35 = vpack.i.bf16 %v4449_v50, %v10860_v36  ;;  %v9343_v50 = vrot.slane %v3672_v57, %v7031_v47  ;;  %v10867_v36 = vcombine.low %v10865_v46, %v10866_v30  ;;  %v10868_v45 = vcombine.high %v10865_v46, %v10866_v30 }
 0x501   : > { %v3366_v18 = vcombine.high %v9292_v61, %v9269_v10  ;;  %v9357_v14 = vrot.slane %v3504_v44, %v7031_v47  ;;  %v9360_v57 = vrot.slane %v3536_v12, %v7031_v47  ;;  %v9363_v58 = vrot.slane %v3640_v32, %v7031_v47  ;;  %v10873_v32 = vld [vmem:[#allocation33_spill] sm:$0xff] }
 0x502   : > { %6485 = vrot.lane.b32.xlu0 %v6484_v35, %s6732_s22  ;;  %v6424_v31 = vpack.i.bf16 %v10867_v36, %v3363_v16  ;;  %v6434_v7 = vpack.i.bf16 %v10868_v45, %v3364_v11  ;;  %v10869_v35 = vld [vmem:[#allocation32_spill] sm:$0xff]  ;;  %v4504_v46 = vcombine.high %v9083_v28, %v9155_v1  ;;  %v4552_v11 = vcombine.high %v9180_v54, %v9183_v2  ;;  %v10874_v28 = vld [vmem:[#allocation13_spill] sm:$0xff]  ;;  %v10875_v54 = vld [vmem:[#allocation15_spill] sm:$0xff] }
 0x503   : > { %v10871_v13 = vcombine.low %v10869_v35, %v10870_v42  ;;  %v4743_v10 = vcombine.low %v9225_v37, %v9309_v38  ;;  %v10872_v61 = vcombine.high %v10858_v62, %v10859_v4  ;;  %v9379_v12 = vrot.slane %v3520_v17, %v7031_v47  ;;  %v10876_v2 = vld [vmem:[#allocation39_spill] sm:$0xff] }
 0x504   : > { %6425 = vrot.lane.b32.xlu1 %v6424_v31, %s6733_s23  ;;  %v4775_v1 = vcombine.low %v10874_v28, %v10873_v32  ;;  %v10877_v45 = vcombine.low %v10875_v54, %v10876_v2  ;;  %v4520_v36 = vcombine.high %v9189_v29, %v9172_v48  ;;  %v3751_v62 = vcombine.low %v9343_v50, %v9334_v23  ;;  %v10878_v4 = vld [vmem:[#allocation11_spill] sm:$0xff] }
 0x505   : > { %v6444_v16 = vpack.i.bf16 %v10871_v13, %v3365_v43  ;;  %v6489_v44 = vpack.i.bf16 %v4450_v21, %v10872_v61  ;;  %v4472_v13 = vcombine.high %v8940_v6, %v9021_v19  ;;  %v9385_v43 = vpop.permute.xlu0 %2873  ;;  %v10879_v21 = vld [vmem:[#allocation5_spill] sm:$0xff]  ;;  %v4727_v6 = vcombine.low %v9191_v25, %v9261_v34  ;;  %v9398_v19 = vpop.permute.xlu1 %2777 }
 0x506   : > { %v6494_v30 = vpack.i.bf16 %v4451_v3, %v10877_v45  ;;  %v4488_v17 = vcombine.high %v10879_v21, %v10878_v4  ;;  %v3615_v31 = vcombine.low %v9360_v57, %v9321_v40  ;;  %v10880_v3 = vld [vmem:[#allocation79_spill] sm:$0xff]  ;;  %v10881_v61 = vld [vmem:[#allocation37_spill] sm:$0xff]  ;;  %v3719_v48 = vcombine.low %v9363_v58, %v9331_v53 }
 0x507   : > { %6490 = vrot.lane.b32.xlu0 %v6489_v44, %s6736_s26  ;;  %v4456_v45 = vcombine.high %v10881_v61, %v10880_v3  ;;  %v4759_v29 = vcombine.low %v9345_v15, %v9398_v19  ;;  %v9410_v4 = vrot.slane %v4504_v46, %v7031_v47  ;;  %v4566_v21 = vrot.slane %v4552_v11, %v7228_v49 }
 0x508   : > { %v9414_v33 = vrot.slane %v4743_v10, %v7031_v47  ;;  %6435 = vrot.lane.b32.xlu1 %v6434_v7, %s6737_s27  ;;  %v4584_v44 = vcombine.high %v9239_v52, %v9223_v0  ;;  %v3583_v3 = vcombine.low %v9357_v14, %v9379_v12  ;;  %v9422_v61 = vrot.slane %v4472_v13, %v7031_v47 }
 0x509   : > { %10882 = vst [vmem:[#allocation65_spill] sm:$0xff] %v9410_v4  ;;  %v9425_v5 = vrot.slane %v4775_v1, %v7031_v47  ;;  %v9428_v46 = vrot.slane %v4759_v29, %v7031_v47  ;;  %v9430_v11 = vpop.permute.xlu0 %2881  ;;  %v4534_v10 = vrot.slane %v4520_v36, %v7228_v49  ;;  %v9434_v7 = vrot.slane %v3751_v62, %v7228_v49  ;;  %v9442_v13 = vpop.permute.xlu1 %2801 }
 0x50a   : > { %10883 = vst [vmem:[#allocation62_spill] sm:$0xff] %v9422_v61  ;;  %10884 = vst [vmem:[#allocation31_spill] sm:$0xff] %v9430_v11  ;;  %v9437_v0 = vrot.slane %v4488_v17, %v7031_v47  ;;  %v9440_v52 = vrot.slane %v4727_v6, %v7031_v47  ;;  %v3623_v1 = vrot.slane %v3615_v31, %v7228_v49 }
 0x50b   : > { %6495 = vrot.lane.b32.xlu0 %v6494_v30, %s6733_s23  ;;  %v9447_v29 = vrot.slane %v4456_v45, %v7031_v47  ;;  %v3727_v36 = vrot.slane %v3719_v48, %v7228_v49  ;;  %v4823_v62 = vcombine.low %v9428_v46, %v9425_v5  ;;  %v6499_v11 = vpack.i.bf16 %v4720_v56, %v4584_v44  ;;  %v10887_v48 = vld [vmem:[#allocation59_spill] sm:$0xff] }
 0x50c   : > { %10885 = vst [vmem:[#allocation38_spill] sm:$0xff] %v9437_v0  ;;  %v4567_v17 = vcombine.low %v9437_v0, %v9410_v4  ;;  %v4791_v6 = vcombine.low %v9440_v52, %v9414_v33  ;;  %6445 = vrot.lane.b32.xlu1 %v6444_v16, %s6734_s24  ;;  %v4585_v30 = vcombine.low %v4534_v10, %v4566_v21 }
 0x50d   : > { %10886 = vst [vmem:[#allocation4_spill] sm:$0xff] %v9447_v29  ;;  %v3591_v31 = vrot.slane %v3583_v3, %v7228_v49  ;;  %v4535_v45 = vcombine.low %v9447_v29, %v9422_v61  ;;  %v9460_v2 = vpop.permute.xlu0 %2889  ;;  %v4721_v54 = vcombine.low %v10887_v48, %v9275_v8  ;;  %v4722_v0 = vcombine.high %v10887_v48, %v9275_v8  ;;  %v9471_v56 = vpop.permute.xlu1 %2809 }
 0x50e   : > { %v3752_v4 = vcombine.high %v9343_v50, %v9334_v23  ;;  %v9469_v16 = vrot.slane %v4823_v62, %v7228_v49  ;;  %v10889_v44 = vcombine.high %v10869_v35, %v10870_v42  ;;  %v3771_v29 = vcombine.low %v3727_v36, %v9434_v7 }
 0x50f   : > { %6500 = vrot.lane.b32.xlu0 %v6499_v11, %s6735_s25  ;;  %v4400_v61 = vcombine.high %v9230_v24, %v9210_v27  ;;  %v3616_v8 = vcombine.high %v9360_v57, %v9321_v40  ;;  %v3720_v23 = vcombine.high %v9363_v58, %v9331_v53  ;;  %v3635_v50 = vcombine.low %v3591_v31, %v3623_v1 }
 0x510   : > { %10888 = vst [vmem:[#allocation22_spill] sm:$0xff] %v9469_v16  ;;  %v6454_v3 = vpack.i.bf16 %v10889_v44, %v3366_v18  ;;  %v9485_v62 = vrot.slane %v4567_v17, %v7228_v49  ;;  %v9488_v11 = vrot.slane %v4791_v6, %v7228_v49  ;;  %v6509_v42 = vpack.i.bf16 %v4721_v54, %v4585_v30  ;;  %v10893_v17 = vld [vmem:[#allocation74_spill] sm:$0xff] }
 0x511   : > { %v4586_v18 = vcombine.high %v4534_v10, %v4566_v21  ;;  %v3584_v27 = vcombine.high %v9357_v14, %v9379_v12  ;;  %v4432_v24 = vcombine.high %v9233_v59, %v9213_v22  ;;  %v9496_v40 = vrot.slane %v4535_v45, %v7228_v49  ;;  %v9500_v53 = vpop.permute.xlu0 %2863  ;;  %v2818_v35 = vpop.permute.xlu1 %2817  ;;  %v10892_v12 = vld [vmem:[#allocation17_spill] sm:$0xff] }
 0x512   : > { %10890 = vst [vmem:[#allocation63_spill] sm:$0xff] %v9488_v11  ;;  %6455 = vrot.lane.b32.xlu1 %v6454_v3, %s6738_s28  ;;  %v4863_v58 = vcombine.low %v9442_v13, %v9471_v56  ;;  %10891 = vst [vmem:[#allocation60_spill] sm:$0xff] %v9500_v53  ;;  %v3766_v57 = vrot.slane %v3752_v4, %v7228_v49  ;;  %v6459_v54 = vpack.i.bf16 %v3771_v29, %v3635_v50  ;;  %v10894_v4 = vld [vmem:[#allocation16_spill] sm:$0xff] }
 0x513   : > { %6510 = vrot.lane.b32.xlu0 %v6509_v42, %s6732_s22  ;;  %v3772_v21 = vcombine.high %v3727_v36, %v9434_v7  ;;  %v3630_v59 = vrot.slane %v3616_v8, %v7228_v49  ;;  %v4879_v10 = vcombine.low %v10892_v12, %v9215_v9  ;;  %v10895_v6 = vcombine.low %v10893_v17, %v10894_v4 }
 0x514   : > { %v3734_v29 = vrot.slane %v3720_v23, %v7228_v49  ;;  %v6519_v7 = vpack.i.bf16 %v4722_v0, %v4586_v18  ;;  %v3636_v36 = vcombine.high %v3591_v31, %v3623_v1  ;;  %v4587_v45 = vcombine.low %v9496_v40, %v9485_v62 }
 0x515   : > { %v9516_v30 = vrot.slane %v10895_v6, %v7228_v49  ;;  %v3598_v48 = vrot.slane %v3584_v27, %v7228_v49  ;;  %v4911_v44 = vcombine.low %v9247_v55, %v9299_v63  ;;  %v4871_v3 = vrot.slane %v4863_v58, %v7031_v47  ;;  %v9526_v8 = vpop.permute.xlu0 %2871  ;;  %v2826_v1 = vpop.permute.xlu1 %2825 }
 0x516   : > { %6460 = vrot.lane.b32.xlu1 %v6459_v54, %s6733_s23  ;;  %v9531_v23 = vrot.slane %v4400_v61, %v7228_v49  ;;  %v9534_v0 = vrot.slane %v4432_v24, %v7228_v49  ;;  %v6464_v31 = vpack.i.bf16 %v3772_v21, %v3636_v36  ;;  %v3773_v42 = vcombine.low %v3734_v29, %v3766_v57 }
 0x517   : > { %v4723_v50 = vcombine.low %v9516_v30, %v9281_v26  ;;  %6520 = vrot.lane.b32.xlu0 %v6519_v7, %s6736_s26  ;;  %v4887_v18 = vrot.slane %v4879_v10, %v7031_v47  ;;  %v4895_v27 = vcombine.low %v2818_v35, %v2826_v1  ;;  %v3637_v58 = vcombine.low %v3598_v48, %v3630_v59 }
 0x518   : > { %v4452_v54 = vcombine.high %v9305_v60, %v9297_v41  ;;  %v4776_v6 = vcombine.high %v10874_v28, %v10873_v32  ;;  %v3638_v24 = vcombine.high %v3598_v48, %v3630_v59  ;;  %v3774_v14 = vcombine.high %v3734_v29, %v3766_v57 }
 0x519   : > { %v6529_v61 = vpack.i.bf16 %v4723_v50, %v4587_v45  ;;  %v4919_v22 = vrot.slane %v4911_v44, %v7031_v47  ;;  %v4927_v7 = vcombine.low %v4871_v3, %v4887_v18  ;;  %v4896_v21 = vcombine.high %v2818_v35, %v2826_v1  ;;  %v9545_v10 = vpop.permute.xlu0 %2879  ;;  %v9553_v32 = vpop.permute.xlu1 %2869 }
 0x51a   : > { %6465 = vrot.lane.b32.xlu1 %v6464_v31, %s6737_s27  ;;  %v4903_v36 = vrot.slane %v4895_v27, %v7031_v47  ;;  %v4912_v53 = vcombine.high %v9247_v55, %v9299_v63  ;;  %v4760_v41 = vcombine.high %v9345_v15, %v9398_v19  ;;  %v4824_v60 = vcombine.high %v9428_v46, %v9425_v5 }
 0x51b   : > { %6530 = vrot.lane.b32.xlu0 %v6529_v61, %s6733_s23  ;;  %v6469_v28 = vpack.i.bf16 %v3773_v42, %v3637_v58  ;;  %v4864_v57 = vcombine.high %v9442_v13, %v9471_v56  ;;  %v4928_v35 = vcombine.high %v4871_v3, %v4887_v18  ;;  %v4880_v55 = vcombine.high %v10892_v12, %v9215_v9  ;;  %v10898_v58 = vld [vmem:[#allocation15_spill] sm:$0xff] }
 0x51c   : > { %v4959_v59 = vcombine.low %v4903_v36, %v4919_v22  ;;  %v4960_v29 = vcombine.high %v4903_v36, %v4919_v22  ;;  %v4744_v63 = vcombine.high %v9225_v37, %v9309_v38  ;;  %v4792_v5 = vcombine.high %v9440_v52, %v9414_v33  ;;  %v10902_v36 = vld [vmem:[#allocation28_spill] sm:$0xff] }
 0x51d   : > { %v6474_v15 = vpack.i.bf16 %v3774_v14, %v3638_v24  ;;  %v9566_v19 = vrot.slane %v4927_v7, %v7228_v49  ;;  %v9569_v46 = vrot.slane %v4896_v21, %v7031_v47  ;;  %v4728_v37 = vcombine.high %v9191_v25, %v9261_v34  ;;  %v9584_v56 = vpop.permute.xlu0 %2887  ;;  %v9586_v14 = vpop.permute.xlu1 %2877  ;;  %v10901_v21 = vld [vmem:[#allocation24_spill] sm:$0xff] }
 0x51e   : > { %6470 = vrot.lane.b32.xlu1 %v6469_v28, %s6734_s24  ;;  %v9572_v13 = vrot.slane %v4959_v59, %v7228_v49  ;;  %v4974_v9 = vrot.slane %v4960_v29, %v7228_v49  ;;  %v9578_v38 = vrot.slane %v4912_v53, %v7031_v47  ;;  %v9581_v52 = vrot.slane %v4760_v41, %v7031_v47  ;;  %v6716_v59 = vld [vmem:[#allocation3 + $0xaa] sm:$0xff] }
 0x51f   : > { %10896 = vst [vmem:[#allocation73_spill] sm:$0xff] %v9566_v19  ;;  %v4838_v33 = vrot.slane %v4824_v60, %v7228_v49  ;;  %v9589_v22 = vrot.slane %v4864_v57, %v7031_v47  ;;  %v4942_v12 = vrot.slane %v4928_v35, %v7228_v49  ;;  %v4856_v25 = vcombine.high %v9488_v11, %v9469_v16  ;;  %v10930_v16 = vld [vmem:[#allocation44_spill] sm:$0xff] }
 0x520   : > { %10897 = vst [vmem:[#allocation70_spill] sm:$0xff] %v9572_v13  ;;  %v4992_v34 = vcombine.high %v9566_v19, %v9572_v13  ;;  %v9597_v53 = vrot.slane %v4776_v6, %v7031_v47  ;;  %v9600_v45 = vrot.slane %v4880_v55, %v7031_v47  ;;  %v9603_v48 = vrot.slane %v4744_v63, %v7031_v47  ;;  %v10899_v6 = vld [vmem:[#allocation39_spill] sm:$0xff] }
 0x521   : > { %v4806_v44 = vrot.slane %v4792_v5, %v7228_v49  ;;  %v4975_v3 = vcombine.low %v9569_v46, %v9578_v38  ;;  %v5151_v50 = vcombine.low %v9553_v32, %v9586_v14  ;;  %v4993_v31 = vcombine.low %v4942_v12, %v4974_v9  ;;  %v9616_v27 = vpop.permute.xlu1 %2885  ;;  %v10905_v63 = vld [vmem:[#allocation31_spill] sm:$0xff] }
 0x522   : > { %6475 = vrot.lane.b32.xlu1 %v6474_v15, %s6738_s28  ;;  %v6534_v1 = vpack.i.bf16 %v4992_v34, %v4856_v25  ;;  %v9612_v42 = vrot.slane %v4728_v37, %v7031_v47  ;;  %v5135_v18 = vcombine.low %v9338_v20, %v9385_v43  ;;  %v10900_v61 = vcombine.high %v10898_v58, %v10899_v6  ;;  %v9638_v15 = vpop.permute.xlu0 %2913  ;;  %v10906_v6 = vld [vmem:[#allocation65_spill] sm:$0xff] }
 0x523   : > { %v4453_v7 = vcombine.low %v9531_v23, %v9534_v0  ;;  %v10903_v41 = vcombine.high %v10901_v21, %v10902_v36  ;;  %v4839_v28 = vcombine.low %v9581_v52, %v9597_v53  ;;  %v4943_v57 = vcombine.low %v9589_v22, %v9600_v45 }
 0x524   : > { %v6504_v24 = vpack.i.bf16 %v4452_v54, %v10900_v61  ;;  %6535 = vrot.lane.b32.xlu0 %v6534_v1, %s6735_s25  ;;  %v4857_v35 = vcombine.low %v4806_v44, %v4838_v33  ;;  %v6717_v54 = vld [vmem:[#allocation3 + $0x7a] sm:$0xff]  ;;  %v4807_v55 = vcombine.low %v9612_v42, %v9603_v48  ;;  %v5167_v5 = vcombine.low %v10905_v63, %v9460_v2  ;;  %v10907_v61 = vld [vmem:[#allocation38_spill] sm:$0xff] }
 0x525   : > { %v9627_v60 = vrot.slane %v10903_v41, %v7031_v47  ;;  %v3824_v29 = vcombine.high %v6717_v54, %v6716_v59  ;;  %v9644_v25 = vrot.slane %v4975_v3, %v7228_v49  ;;  %v9647_v34 = vrot.slane %v5151_v50, %v7031_v47  ;;  %v9654_v41 = vpop.permute.xlu1 %2893  ;;  %v10909_v59 = vld [vmem:[#allocation46_spill] sm:$0xff] }
 0x526   : > { %6505 = vrot.lane.b32.xlu1 %v6504_v24, %s6737_s27  ;;  %v6544_v1 = vpack.i.bf16 %v4993_v31, %v4857_v35  ;;  %v4994_v58 = vcombine.high %v4942_v12, %v4974_v9  ;;  %v4568_v21 = vcombine.high %v10907_v61, %v10906_v6  ;;  %v9652_v36 = vrot.slane %v5135_v18, %v7031_v47  ;;  %v10908_v24 = vld [vmem:[#allocation45_spill] sm:$0xff]  ;;  %v10912_v35 = vld [vmem:[#allocation34_spill] sm:$0xff] }
 0x527   : > { %10904 = vst [vmem:[#allocation64_spill] sm:$0xff] %v9627_v60  ;;  %v10910_v54 = vcombine.low %v10908_v24, %v10909_v59  ;;  %v4454_v3 = vcombine.high %v9531_v23, %v9534_v0  ;;  %v9662_v50 = vrot.slane %v4839_v28, %v7228_v49  ;;  %v9665_v9 = vrot.slane %v4943_v57, %v7228_v49  ;;  %v10911_v18 = vld [vmem:[#allocation29_spill] sm:$0xff]  ;;  %v10914_v61 = vld [vmem:[#allocation62_spill] sm:$0xff]  ;;  %v10915_v23 = vld [vmem:[#allocation4_spill] sm:$0xff] }
 0x528   : > { %v5183_v12 = vcombine.low %v9616_v27, %v9654_v41  ;;  %6545 = vrot.lane.b32.xlu0 %v6544_v1, %s6732_s22  ;;  %v4858_v31 = vcombine.high %v4806_v44, %v4838_v33  ;;  %v10913_v6 = vcombine.high %v10911_v18, %v10912_v35  ;;  %v4536_v0 = vcombine.high %v10915_v23, %v10914_v61  ;;  %v10916_v18 = vld [vmem:[#allocation43_spill] sm:$0xff]  ;;  %v9695_v61 = vpop.permute.xlu0 %2921 }
 0x529   : > { %v6514_v37 = vpack.i.bf16 %v4453_v7, %v10910_v54  ;;  %v9679_v28 = vrot.slane %v4807_v55, %v7228_v49  ;;  %v9682_v57 = vrot.slane %v5167_v5, %v7031_v47  ;;  %v5199_v33 = vcombine.low %v9652_v36, %v9647_v34  ;;  %v10917_v35 = vld [vmem:[#allocation47_spill] sm:$0xff]  ;;  %v9697_v5 = vpop.permute.xlu1 %2867 }
 0x52a   : > { %v9674_v7 = vrot.slane %v10913_v6, %v7031_v47  ;;  %v9688_v44 = vrot.slane %v5183_v12, %v7031_v47  ;;  %v6554_v1 = vpack.i.bf16 %v4994_v58, %v4858_v31  ;;  %v4995_v54 = vcombine.low %v9665_v9, %v9644_v25 }
 0x52b   : > { %6515 = vrot.lane.b32.xlu1 %v6514_v37, %s6734_s24  ;;  %v5096_v6 = vcombine.high %v10917_v35, %v10916_v18  ;;  %v4582_v55 = vrot.slane %v4568_v21, %v7228_v49  ;;  %v10918_v37 = vcombine.high %v10908_v24, %v10909_v59  ;;  %v4588_v12 = vcombine.high %v9496_v40, %v9485_v62 }
 0x52c   : > { %v9707_v13 = vrot.slane %v3824_v29, %v7031_v47  ;;  %v5231_v21 = vcombine.low %v9682_v57, %v9688_v44  ;;  %6555 = vrot.lane.b32.xlu0 %v6554_v1, %s6736_s26  ;;  %v4859_v18 = vcombine.low %v9679_v28, %v9662_v50  ;;  %v4550_v59 = vrot.slane %v4536_v0, %v7228_v49  ;;  %v10922_v1 = vld [vmem:[#allocation52_spill] sm:$0xff]  ;;  %v9753_v11 = vpop.permute.xlu0 %2929 }
 0x52d   : > { %v6524_v23 = vpack.i.bf16 %v4454_v3, %v10918_v37  ;;  %v4724_v62 = vcombine.high %v9516_v30, %v9281_v26  ;;  %v10920_v40 = vcombine.high %v9014_v51, %v9049_v39  ;;  %v10921_v3 = vld [vmem:[#allocation50_spill] sm:$0xff]  ;;  %v9727_v37 = vrot.slane %v5199_v33, %v7228_v49  ;;  %v2876_v19 = vpop.permute.xlu1 %2875 }
 0x52e   : > { %v9730_v31 = vrot.slane %v5231_v21, %v7228_v49  ;;  %v6564_v0 = vpack.i.bf16 %v4995_v54, %v4859_v18  ;;  %v4589_v30 = vcombine.low %v4550_v59, %v4582_v55  ;;  %v10926_v51 = vcombine.high %v10893_v17, %v10894_v4  ;;  %v10928_v54 = vld [vmem:[#allocation55_spill] sm:$0xff]  ;;  %v10929_v21 = vld [vmem:[#allocation57_spill] sm:$0xff]  ;;  %v10931_v17 = vld [vmem:[#allocation48_spill] sm:$0xff] }
 0x52f   : > { %6525 = vrot.lane.b32.xlu1 %v6524_v23, %s6738_s28  ;;  %v4718_v29 = vrot.slane %v10920_v40, %v7228_v49  ;;  %10923 = vst [vmem:[#allocation61_spill] sm:$0xff] %v9727_v37  ;;  %v10925_v23 = vld [vmem:[#allocation76_spill] sm:$0xff]  ;;  %v6539_v26 = vpack.i.bf16 %v4724_v62, %v4588_v12  ;;  %v10927_v40 = vld [vmem:[#allocation83_spill] sm:$0xff]  ;;  %v5128_v18 = vcombine.high %v10929_v21, %v10928_v54 }
 0x530   : > { %10924 = vst [vmem:[#allocation71_spill] sm:$0xff] %v9730_v31  ;;  %v3855_v24 = vcombine.low %v10925_v23, %v9674_v7  ;;  %v4686_v39 = vrot.slane %v10926_v51, %v7228_v49  ;;  %v3887_v35 = vcombine.low %v10927_v40, %v9707_v13  ;;  %6565 = vrot.lane.b32.xlu0 %v6564_v0, %s6733_s23 }
 0x531   : > { %v5264_v12 = vcombine.high %v9727_v37, %v9730_v31  ;;  %v3872_v4 = vcombine.high %v10931_v17, %v10930_v16  ;;  %v3927_v33 = vcombine.low %v9697_v5, %v2876_v19  ;;  %v4590_v21 = vcombine.high %v4550_v59, %v4582_v55  ;;  %v10932_v31 = vld [vmem:[#allocation51_spill] sm:$0xff]  ;;  %v10933_v37 = vld [vmem:[#allocation49_spill] sm:$0xff]  ;;  %v2884_v51 = vpop.permute.xlu1 %2883 }
 0x532   : > { %v4725_v0 = vcombine.low %v4686_v39, %v4718_v29  ;;  %v10934_v60 = vcombine.high %v10932_v31, %v10933_v37  ;;  %v4840_v16 = vcombine.high %v9581_v52, %v9597_v53  ;;  %v4976_v17 = vcombine.high %v9569_v46, %v9578_v38  ;;  %v10937_v37 = vld [vmem:[#allocation58_spill] sm:$0xff] }
 0x533   : > { %6540 = vrot.lane.b32.xlu1 %v6539_v26, %s6737_s27  ;;  %v6569_v54 = vpack.i.bf16 %v5264_v12, %v5128_v18  ;;  %v9768_v26 = vrot.slane %v5096_v6, %v7228_v49  ;;  %v10935_v18 = vld [vmem:[#allocation60_spill] sm:$0xff]  ;;  %v4726_v59 = vcombine.high %v4686_v39, %v4718_v29  ;;  %v9777_v31 = vrot.slane %v3887_v35, %v7228_v49 }
 0x534   : > { %v9761_v62 = vrot.slane %v10934_v60, %v7228_v49  ;;  %v6549_v58 = vpack.i.bf16 %v4725_v0, %v4589_v30  ;;  %v3911_v55 = vcombine.low %v10935_v18, %v9526_v8  ;;  %v9774_v60 = vrot.slane %v3855_v24, %v7228_v49  ;;  %v10936_v35 = vld [vmem:[#allocation56_spill] sm:$0xff] }
 0x535   : > { %6570 = vrot.lane.b32.xlu0 %v6569_v54, %s6735_s25  ;;  %v4944_v46 = vcombine.high %v9589_v22, %v9600_v45  ;;  %v3943_v38 = vcombine.low %v9545_v10, %v9584_v56  ;;  %v3944_v52 = vcombine.high %v9545_v10, %v9584_v56  ;;  %v3928_v53 = vcombine.high %v9697_v5, %v2876_v19  ;;  %v9798_v19 = vpop.permute.xlu0 %2937  ;;  %v2892_v56 = vpop.permute.xlu1 %2891 }
 0x536   : > { %v4808_v6 = vcombine.high %v9612_v42, %v9603_v48  ;;  %v9790_v24 = vrot.slane %v3927_v33, %v7031_v47  ;;  %v6559_v29 = vpack.i.bf16 %v4726_v59, %v4590_v21  ;;  %v3904_v22 = vcombine.high %v10937_v37, %v10936_v35 }
 0x537   : > { %6550 = vrot.lane.b32.xlu1 %v6549_v58, %s6734_s24  ;;  %v4854_v45 = vrot.slane %v4840_v16, %v7228_v49  ;;  %v3912_v30 = vcombine.high %v10935_v18, %v9526_v8  ;;  %v4990_v10 = vrot.slane %v4976_v17, %v7228_v49  ;;  %v4996_v48 = vcombine.high %v9665_v9, %v9644_v25 }
 0x538   : > { %v3919_v42 = vrot.slane %v3911_v55, %v7031_v47  ;;  %v3959_v5 = vcombine.low %v2884_v51, %v2892_v56  ;;  %v3960_v58 = vcombine.high %v2884_v51, %v2892_v56  ;;  %v4860_v39 = vcombine.high %v9679_v28, %v9662_v50 }
 0x539   : > { %v4958_v33 = vrot.slane %v4944_v46, %v7228_v49  ;;  %v3951_v54 = vrot.slane %v3943_v38, %v7031_v47  ;;  %v9808_v8 = vrot.slane %v3944_v52, %v7031_v47  ;;  %v9811_v21 = vrot.slane %v3928_v53, %v7031_v47  ;;  %v9823_v0 = vpop.permute.xlu1 %2917  ;;  %v9832_v46 = vpop.permute.xlu0 %2911 }
 0x53a   : > { %v5232_v25 = vcombine.high %v9682_v57, %v9688_v44  ;;  %v3975_v9 = vcombine.low %v3919_v42, %v9790_v24  ;;  %v3967_v12 = vrot.slane %v3959_v5, %v7031_v47  ;;  %v3974_v50 = vrot.slane %v3960_v58, %v7031_v47 }
 0x53b   : > { %6560 = vrot.lane.b32.xlu1 %v6559_v29, %s6738_s28  ;;  %v4822_v28 = vrot.slane %v4808_v6, %v7228_v49  ;;  %v9821_v51 = vrot.slane %v3912_v30, %v7031_v47  ;;  %v6574_v16 = vpack.i.bf16 %v4996_v48, %v4860_v39  ;;  %v4997_v17 = vcombine.low %v4958_v33, %v4990_v10 }
 0x53c   : > { %v5200_v18 = vcombine.high %v9652_v36, %v9647_v34  ;;  %v4007_v55 = vcombine.low %v3951_v54, %v3967_v12  ;;  %v4023_v57 = vcombine.low %v9808_v8, %v3974_v50  ;;  %v5129_v44 = vcombine.low %v9761_v62, %v9768_v26 }
 0x53d   : > { %v3991_v59 = vcombine.low %v9821_v51, %v9811_v21  ;;  %v4861_v38 = vcombine.low %v4822_v28, %v4854_v45  ;;  %v10938_v52 = vcombine.high %v10922_v1, %v10921_v3  ;;  %v9842_v34 = vrot.slane %v3872_v4, %v7228_v49  ;;  %v9856_v1 = vpop.permute.xlu1 %2925 }
 0x53e   : > { %v9845_v36 = vrot.slane %v5232_v25, %v7228_v49  ;;  %v9848_v6 = vrot.slane %v3975_v9, %v7228_v49  ;;  %v4008_v29 = vcombine.high %v3951_v54, %v3967_v12  ;;  %v9851_v30 = vrot.slane %v4007_v55, %v7228_v49 }
 0x53f   : > { %6575 = vrot.lane.b32.xlu1 %v6574_v16, %s6737_s27  ;;  %v9839_v53 = vrot.slane %v10938_v52, %v7228_v49  ;;  %v5184_v56 = vcombine.high %v9616_v27, %v9654_v41  ;;  %v4031_v3 = vrot.slane %v4023_v57, %v7228_v49  ;;  %v6589_v48 = vpack.i.bf16 %v4997_v17, %v4861_v38 }
 0x540   : > { %v4998_v4 = vcombine.high %v4958_v33, %v4990_v10  ;;  %v9859_v5 = vrot.slane %v5200_v18, %v7228_v49  ;;  %v3976_v58 = vcombine.high %v3919_v42, %v9790_v24  ;;  %v4039_v39 = vcombine.low %v9848_v6, %v9851_v30 }
 0x541   : > { %v4040_v54 = vcombine.high %v9848_v6, %v9851_v30  ;;  %v5168_v27 = vcombine.high %v10905_v63, %v9460_v2  ;;  %v5152_v41 = vcombine.high %v9553_v32, %v9586_v14  ;;  %v3999_v25 = vrot.slane %v3991_v59, %v7228_v49  ;;  %v9880_v63 = vpop.permute.xlu0 %2919  ;;  %v9883_v14 = vpop.permute.xlu1 %2933 }
 0x542   : > { %v4862_v10 = vcombine.high %v4822_v28, %v4854_v45  ;;  %v5136_v24 = vcombine.high %v9338_v20, %v9385_v43  ;;  %v9875_v42 = vrot.slane %v4008_v29, %v7228_v49  ;;  %v5265_v9 = vcombine.low %v9859_v5, %v9845_v36 }
 0x543   : > { %6590 = vrot.lane.b32.xlu1 %v6589_v48, %s6734_s24  ;;  %v6579_v33 = vpack.i.bf16 %v4040_v54, %v3904_v22  ;;  %v5198_v2 = vrot.slane %v5184_v56, %v7031_v47  ;;  %v4024_v32 = vcombine.high %v9808_v8, %v3974_v50  ;;  %v4043_v45 = vcombine.low %v3999_v25, %v4031_v3 }
 0x544   : > { %v6604_v12 = vpack.i.bf16 %v4998_v4, %v4862_v10  ;;  %v9886_v28 = vrot.slane %v3976_v58, %v7228_v49  ;;  %v5287_v20 = vcombine.low %v9823_v0, %v9856_v1  ;;  %v3907_v43 = vcombine.low %v9774_v60, %v9777_v31 }
 0x545   : > { %6580 = vrot.lane.b32.xlu0 %v6579_v33, %s6735_s25  ;;  %v3908_v22 = vcombine.high %v9774_v60, %v9777_v31  ;;  %v5182_v8 = vrot.slane %v5168_v27, %v7031_v47  ;;  %v5166_v50 = vrot.slane %v5152_v41, %v7031_v47  ;;  %v5271_v16 = vcombine.low %v9638_v15, %v9695_v61  ;;  %v9910_v38 = vpop.permute.xlu1 %2941  ;;  %v9928_v27 = vpop.permute.xlu0 %2927 }
 0x546   : > { %v3992_v17 = vcombine.high %v9821_v51, %v9811_v21  ;;  %v5150_v18 = vrot.slane %v5136_v24, %v7031_v47  ;;  %v5303_v55 = vcombine.low %v9753_v11, %v9798_v19  ;;  %v6584_v57 = vpack.i.bf16 %v5265_v9, %v5129_v44 }
 0x547   : > { %6605 = vrot.lane.b32.xlu1 %v6604_v12, %s6738_s28  ;;  %v4041_v60 = vcombine.low %v9886_v28, %v9875_v42  ;;  %v5248_v31 = vcombine.high %v5182_v8, %v5198_v2  ;;  %v9908_v59 = vrot.slane %v4024_v32, %v7228_v49  ;;  %v6619_v52 = vpack.i.bf16 %v4043_v45, %v3907_v43  ;;  %v10942_v43 = vld [vmem:[#allocation75_spill] sm:$0xff] }
 0x548   : > { %v4044_v29 = vcombine.high %v3999_v25, %v4031_v3  ;;  %v9913_v21 = vrot.slane %v5287_v20, %v7031_v47  ;;  %v5319_v51 = vcombine.low %v9883_v14, %v9910_v38  ;;  %v3905_v44 = vcombine.low %v9839_v53, %v9842_v34  ;;  %v10941_v20 = vld [vmem:[#allocation84_spill] sm:$0xff] }
 0x549   : > { %6585 = vrot.lane.b32.xlu0 %v6584_v57, %s6732_s22  ;;  %v10939_v56 = vcombine.high %v10927_v40, %v9707_v13  ;;  %v5216_v4 = vcombine.high %v5150_v18, %v5166_v50  ;;  %v9925_v58 = vrot.slane %v5271_v16, %v7031_v47  ;;  %v5247_v3 = vcombine.low %v5182_v8, %v5198_v2  ;;  %v9942_v24 = vpop.permute.xlu1 %2915  ;;  %v10943_v8 = vld [vmem:[#allocation82_spill] sm:$0xff]  ;;  %v2936_v57 = vpop.permute.xlu0 %2935 }
 0x54a   : > { %v4006_v54 = vrot.slane %v3992_v17, %v7228_v49  ;;  %v9932_v41 = vrot.slane %v5303_v55, %v7031_v47  ;;  %v9935_v25 = vrot.slane %v5319_v51, %v7031_v47  ;;  %v6594_v10 = vpack.i.bf16 %v4041_v60, %v3905_v44 }
 0x54b   : > { %v3902_v48 = vrot.slane %v10939_v56, %v7228_v49  ;;  %6620 = vrot.lane.b32.xlu1 %v6619_v52, %s6733_s23  ;;  %v5266_v13 = vcombine.high %v9859_v5, %v9845_v36  ;;  %v9940_v40 = vrot.slane %v5248_v31, %v7228_v49  ;;  %v6629_v33 = vpack.i.bf16 %v4044_v29, %v3908_v22 }
 0x54c   : > { %v10940_v9 = vcombine.high %v10925_v23, %v9674_v7  ;;  %v4045_v32 = vcombine.low %v4006_v54, %v9908_v59  ;;  %v5215_v12 = vcombine.low %v5150_v18, %v5166_v50  ;;  %v5335_v45 = vcombine.low %v9925_v58, %v9913_v21  ;;  %v10944_v50 = vld [vmem:[#allocation64_spill] sm:$0xff] }
 0x54d   : > { %v5367_v36 = vcombine.low %v9932_v41, %v9935_v25  ;;  %6595 = vrot.lane.b32.xlu0 %v6594_v10, %s6732_s22  ;;  %v5130_v5 = vcombine.high %v9761_v62, %v9768_v26  ;;  %v5079_v22 = vcombine.low %v10942_v43, %v10941_v20  ;;  %v9959_v7 = vrot.slane %v5216_v4, %v7228_v49  ;;  %v2924_v60 = vpop.permute.xlu1 %2923 }
 0x54e   : > { %v3870_v2 = vrot.slane %v10940_v9, %v7228_v49  ;;  %v10945_v16 = vcombine.high %v10943_v8, %v10944_v50  ;;  %v5255_v18 = vrot.slane %v5247_v3, %v7228_v49  ;;  %v4042_v26 = vcombine.high %v9886_v28, %v9875_v42 }
 0x54f   : > { %6630 = vrot.lane.b32.xlu1 %v6629_v33, %s6737_s27  ;;  %v9968_v55 = vrot.slane %v5367_v36, %v7228_v49  ;;  %v6599_v62 = vpack.i.bf16 %v5266_v13, %v5130_v5  ;;  %v10946_v52 = vcombine.high %v10942_v43, %v10941_v20  ;;  %v5270_v51 = vcombine.high %v9959_v7, %v9940_v40  ;;  %v9998_v5 = vpop.permute.xlu0 %6395 }
 0x550   : > { %v3909_v23 = vcombine.low %v3870_v2, %v3902_v48  ;;  %v5126_v17 = vrot.slane %v10945_v16, %v7228_v49  ;;  %v5223_v44 = vrot.slane %v5215_v12, %v7228_v49  ;;  %v9980_v56 = vrot.slane %v5335_v45, %v7228_v49 }
 0x551   : > { %v5094_v29 = vrot.slane %v10946_v52, %v7228_v49  ;;  %6600 = vrot.lane.b32.xlu0 %v6599_v62, %s6736_s26  ;;  %v3906_v42 = vcombine.high %v9839_v53, %v9842_v34  ;;  %v10947_v28 = vcombine.low %v10943_v8, %v10944_v50  ;;  %v5087_v10 = vrot.slane %v5079_v22, %v7228_v49  ;;  %v2932_v12 = vpop.permute.xlu1 %2931 }
 0x552   : > { %v6639_v31 = vpack.i.bf16 %v4045_v32, %v3909_v23  ;;  %v4063_v13 = vcombine.low %v9942_v24, %v2924_v60  ;;  %v5267_v9 = vcombine.low %v5223_v44, %v5255_v18  ;;  %v5399_v32 = vcombine.low %v9980_v56, %v9968_v55 }
 0x553   : > { %v5119_v4 = vrot.slane %v10947_v28, %v7228_v49  ;;  %v5134_v3 = vcombine.high %v5094_v29, %v5126_v17  ;;  %v6609_v33 = vpack.i.bf16 %v4042_v26, %v3906_v42  ;;  %v4046_v53 = vcombine.high %v4006_v54, %v9908_v59  ;;  %v10014_v28 = vpop.permute.xlu0 %6405 }
 0x554   : > { %6640 = vrot.lane.b32.xlu1 %v6639_v31, %s6734_s24  ;;  %v4047_v34 = vcombine.low %v9832_v46, %v9880_v63  ;;  %v3910_v20 = vcombine.high %v3870_v2, %v3902_v48  ;;  %v5268_v43 = vcombine.high %v5223_v44, %v5255_v18  ;;  %v4079_v22 = vcombine.low %v9928_v27, %v2936_v57 }
 0x555   : > { %v6644_v45 = vpack.i.bf16 %v5270_v51, %v5134_v3  ;;  %6610 = vrot.lane.b32.xlu0 %v6609_v33, %s6736_s26  ;;  %v5131_v36 = vcombine.low %v5087_v10, %v5119_v4  ;;  %v4071_v23 = vrot.slane %v4063_v13, %v7031_v47  ;;  %v2940_v50 = vpop.permute.xlu1 %2939  ;;  %v5132_v59 = vcombine.high %v5087_v10, %v5119_v4 }
 0x556   : > { %v6649_v16 = vpack.i.bf16 %v4046_v53, %v3910_v20  ;;  %v4055_v54 = vrot.slane %v4047_v34, %v7031_v47  ;;  %v4095_v62 = vcombine.low %v2932_v12, %v2940_v50  ;;  %v4096_v26 = vcombine.high %v2932_v12, %v2940_v50 }
 0x557   : > { %v6614_v8 = vpack.i.bf16 %v5267_v9, %v5131_v36  ;;  %v4080_v31 = vcombine.high %v9928_v27, %v2936_v57  ;;  %v6624_v48 = vpack.i.bf16 %v5268_v43, %v5132_v59  ;;  %v5269_v2 = vcombine.low %v9959_v7, %v9940_v40  ;;  %v10036_v53 = vpop.permute.xlu0 %6415 }
 0x558   : > { %6645 = vrot.lane.b32.xlu1 %v6644_v45, %s6738_s28  ;;  %v4087_v18 = vrot.slane %v4079_v22, %v7031_v47  ;;  %v4064_v52 = vcombine.high %v9942_v24, %v2924_v60  ;;  %v4112_v51 = vcombine.high %v4055_v54, %v4071_v23  ;;  %v4103_v44 = vrot.slane %v4095_v62, %v7031_v47 }
 0x559   : > { %6615 = vrot.lane.b32.xlu0 %v6614_v8, %s6733_s23  ;;  %v4048_v42 = vcombine.high %v9832_v46, %v9880_v63  ;;  %v10016_v4 = vpop.permute.xlu1 %6375  ;;  %v5133_v27 = vcombine.low %v5094_v29, %v5126_v17  ;;  %v4111_v57 = vcombine.low %v4055_v54, %v4071_v23  ;;  %v4110_v3 = vrot.slane %v4096_v26, %v7031_v47 }
 0x55a   : > { %v4143_v10 = vcombine.low %v4087_v18, %v4103_v44  ;;  %v4144_v40 = vcombine.high %v4087_v18, %v4103_v44  ;;  %v4094_v24 = vrot.slane %v4080_v31, %v7031_v47  ;;  %v4078_v60 = vrot.slane %v4064_v52, %v7031_v47 }
 0x55b   : > { %v6634_v7 = vpack.i.bf16 %v5269_v2, %v5133_v27  ;;  %v4126_v13 = vrot.slane %v4112_v51, %v7228_v49  ;;  %v4062_v29 = vrot.slane %v4048_v42, %v7031_v47  ;;  %v10031_v33 = vrot.slane %v4111_v57, %v7228_v49 }
 0x55c   : > { %6650 = vrot.lane.b32.xlu1 %v6649_v16, %s6738_s28  ;;  %v10024_v46 = vrot.slane %v4143_v10, %v7228_v49  ;;  %v4158_v63 = vrot.slane %v4144_v40, %v7228_v49  ;;  %v4159_v9 = vcombine.low %v4094_v24, %v4110_v3  ;;  %v5320_v45 = vcombine.high %v9883_v14, %v9910_v38 }
 0x55d   : > { %6625 = vrot.lane.b32.xlu0 %v6624_v48, %s6737_s27  ;;  %v10027_v17 = vpop.permute.xlu1 %6380  ;;  %v5368_v34 = vcombine.high %v9932_v41, %v9935_v25  ;;  %v4127_v36 = vcombine.low %v4062_v29, %v4078_v60  ;;  %v5400_v20 = vcombine.high %v9980_v56, %v9968_v55  ;;  %v5304_v22 = vcombine.high %v9753_v11, %v9798_v19 }
 0x55e   : > { %v4177_v12 = vcombine.low %v4126_v13, %v4158_v63  ;;  %v4175_v43 = vcombine.low %v10031_v33, %v10024_v46  ;;  %v5288_v14 = vcombine.high %v9823_v0, %v9856_v1  ;;  %v5336_v23 = vcombine.high %v9925_v58, %v9913_v21 }
 0x55f   : > { %v4167_v41 = vrot.slane %v4159_v9, %v7228_v49  ;;  %v4178_v25 = vcombine.high %v4126_v13, %v4158_v63  ;;  %v5272_v8 = vcombine.high %v9638_v15, %v9695_v61  ;;  %v10056_v50 = vrot.slane %v5320_v45, %v7031_v47  ;;  %v10949_v13 = vld [vmem:[#allocation7_spill] sm:$0xff] }
 0x560   : > { %5468 = vrot.lane.b32.xlu1 %v4177_v12, %s6732_s22  ;;  %v5382_v11 = vrot.slane %v5368_v34, %v7228_v49  ;;  %v4135_v19 = vrot.slane %v4127_v36, %v7228_v49  ;;  %v4176_v0 = vcombine.high %v10031_v33, %v10024_v46  ;;  %v10066_v1 = vrot.slane %v5304_v22, %v7031_v47  ;;  %v10952_v34 = vld [vmem:[#allocation26_spill] sm:$0xff] }
 0x561   : > { %6635 = vrot.lane.b32.xlu0 %v6634_v7, %s6734_s24  ;;  %v6386_v38 = vpop.permute.xlu1 %6385  ;;  %v10069_v21 = vrot.slane %v5288_v14, %v7031_v47  ;;  %v5350_v61 = vrot.slane %v5336_v23, %v7228_v49  ;;  %v4160_v58 = vcombine.high %v4094_v24, %v4110_v3  ;;  %v10074_v54 = vrot.slane %v5272_v8, %v7031_v47 }
 0x562   : > { %v10058_v16 = vpop.permute.xlu0 %6430  ;;  %v4179_v59 = vcombine.low %v4135_v19, %v4167_v41  ;;  %v5383_v62 = vcombine.low %v10066_v1, %v10056_v50  ;;  %v4128_v31 = vcombine.high %v4062_v29, %v4078_v60  ;;  %v6378_v18 = vunpack.i.h.bf16 %v10016_v4  ;;  %v10948_v60 = vld [vmem:[#allocation36_spill] sm:$0xff] }
 0x563   : > { %v5401_v48 = vcombine.low %v5350_v61, %v5382_v11  ;;  %v5351_v2 = vcombine.low %v10074_v54, %v10069_v21  ;;  %v4174_v51 = vrot.slane %v4160_v58, %v7228_v49  ;;  %v6377_v47 = vunpack.i.l.bf16 %v10016_v4 }
 0x564   : > { %5504 = vrot.lane.b32.xlu1 %v4178_v25, %s6736_s26  ;;  %v4180_v44 = vcombine.high %v4135_v19, %v4167_v41  ;;  %v5391_v42 = vrot.slane %v5383_v62, %v7228_v49  ;;  %v6383_v27 = vunpack.i.h.bf16 %v10027_v17  ;;  %v6382_v57 = vunpack.i.l.bf16 %v10027_v17  ;;  %v10951_v17 = vld [vmem:[#allocation6_spill] sm:$0xff] }
 0x565   : > { %5684 = vrot.lane.b32.xlu0 %v5400_v20, %s6735_s25  ;;  %v6391_v15 = vpop.permute.xlu1 %6390  ;;  %v4142_v10 = vrot.slane %v4128_v31, %v7228_v49  ;;  %v6388_v40 = vunpack.i.h.bf16 %v6386_v38  ;;  %v6387_v24 = vunpack.i.l.bf16 %v6386_v38  ;;  %v5402_v7 = vcombine.high %v5350_v61, %v5382_v11 }
 0x566   : > { %v10078_v26 = vpop.permute.xlu0 %6440  ;;  %v5359_v4 = vrot.slane %v5351_v2, %v7228_v49  ;;  %v10950_v63 = vcombine.low %v10948_v60, %v10949_v13  ;;  %v6393_v9 = vunpack.i.h.bf16 %v6391_v15  ;;  %v6392_v12 = vunpack.i.l.bf16 %v6391_v15 }
 0x567   : > { %v10953_v36 = vcombine.low %v10951_v17, %v10952_v34  ;;  %v4181_v38 = vcombine.low %v4142_v10, %v4174_v51  ;;  %v5384_v19 = vcombine.high %v10066_v1, %v10056_v50  ;;  %v5352_v58 = vcombine.high %v10074_v54, %v10069_v21 }
 0x568   : > { %5540 = vrot.lane.b32.xlu1 %v4179_v59, %s6733_s23  ;;  %v5912_v29 = vsel %vm1953_vm6, %v10950_v63, %v6378_v18  ;;  %v5403_v61 = vcombine.low %v5359_v4, %v5391_v42  ;;  %v6408_v13 = vunpack.i.h.bf16 %v10014_v28  ;;  %v6407_v63 = vunpack.i.l.bf16 %v10014_v28 }
 0x569   : > { %5432 = vrot.lane.b32.xlu0 %v4176_v0, %s6735_s25  ;;  %v6401_v52 = vpop.permute.xlu1 %6400  ;;  %v5911_v20 = vsel %vm1953_vm6, %v10953_v36, %v6377_v47  ;;  %v5921_v41 = vsel %vm1959_vm7, %v5912_v29, %v6383_v27  ;;  %v5398_v54 = vrot.slane %v5384_v19, %v7228_v49  ;;  %v6418_v29 = vunpack.i.h.bf16 %v10036_v53  ;;  %v10954_v36 = vld [vmem:[#allocation12_spill] sm:$0xff] }
 0x56a   : > { %v10090_v3 = vpop.permute.xlu0 %6450  ;;  %v6403_v22 = vunpack.i.h.bf16 %v6401_v52  ;;  %v6402_v14 = vunpack.i.l.bf16 %v6401_v52  ;;  %v5920_v23 = vsel %vm1959_vm7, %v5911_v20, %v6382_v57  ;;  %v5930_v15 = vsel %vm1965_vm8, %v5921_v41, %v6388_v40  ;;  %v10955_v20 = vld [vmem:[#allocation19_spill] sm:$0xff] }
 0x56b   : > { %v5929_v0 = vsel %vm1965_vm8, %v5920_v23, %v6387_v24  ;;  %v5939_v62 = vsel %vm1971_vm9, %v5930_v15, %v6393_v9  ;;  %v5366_v40 = vrot.slane %v5352_v58, %v7228_v49  ;;  %v6417_v49 = vunpack.i.l.bf16 %v10036_v53 }
 0x56c   : > { %5576 = vrot.lane.b32.xlu1 %v4180_v44, %s6737_s27  ;;  %v5938_v59 = vsel %vm1971_vm9, %v5929_v0, %v6392_v12  ;;  %v5948_v50 = vsel %vm1977_vm10, %v5939_v62, %v6403_v22  ;;  %v5404_v44 = vcombine.high %v5359_v4, %v5391_v42  ;;  %v6398_v42 = vunpack.i.h.bf16 %v9998_v5 }
 0x56d   : > { %5720 = vrot.lane.b32.xlu0 %v5401_v48, %s6732_s22  ;;  %v6411_v45 = vpop.permute.xlu1 %6410  ;;  %v4182_v48 = vcombine.high %v4142_v10, %v4174_v51  ;;  %v5947_v2 = vsel %vm1977_vm10, %v5938_v59, %v6402_v14  ;;  %v6397_v4 = vunpack.i.l.bf16 %v9998_v5  ;;  %v5406_v12 = vcombine.high %v5366_v40, %v5398_v54  ;;  %v10957_v14 = vld [vmem:[#allocation68_spill] sm:$0xff] }
 0x56e   : > { %v6413_v25 = vunpack.i.h.bf16 %v6411_v45  ;;  %v6412_v8 = vunpack.i.l.bf16 %v6411_v45  ;;  %v10956_v22 = vcombine.low %v10954_v36, %v10955_v20 }
 0x56f   : > { %v10106_v11 = vpop.permute.xlu0 %6480 }
 0x570   : > { %5612 = vrot.lane.b32.xlu1 %v4181_v38, %s6734_s24  ;;  %v5956_v47 = vsel %vm1983_vm11, %v5947_v2, %v6412_v8  ;;  %v5957_v21 = vsel %vm1983_vm11, %v5948_v50, %v6413_v25  ;;  %v5914_v5 = vsel %vm1953_vm6, %v10956_v22, %v6398_v42  ;;  %v10958_v38 = vld [vmem:[#allocation67_spill] sm:$0xff]  ;;  %v6432_v42 = vunpack.i.l.bf16 %v10058_v16  ;;  %v10963_v22 = vld [vmem:[#allocation41_spill] sm:$0xff] }
 0x571   : > { %5756 = vrot.lane.b32.xlu0 %v5402_v7, %s6736_s26  ;;  %v6421_v31 = vpop.permute.xlu1 %6420  ;;  %v5405_v7 = vcombine.low %v5366_v40, %v5398_v54  ;;  %v10959_v23 = vcombine.low %v10957_v14, %v10958_v38  ;;  %v5923_v8 = vsel %vm1959_vm7, %v5914_v5, %v6408_v13  ;;  %v6442_v13 = vunpack.i.l.bf16 %v10078_v26  ;;  %v10964_v5 = vld [vmem:[#allocation42_spill] sm:$0xff] }
 0x572   : > { %v6423_v1 = vunpack.i.h.bf16 %v6421_v31  ;;  %v6422_v18 = vunpack.i.l.bf16 %v6421_v31  ;;  %v10965_v14 = vcombine.low %v10963_v22, %v10964_v5  ;;  %v10970_v22 = vld [vmem:[#allocation77_spill] sm:$0xff] }
 0x573   : > { %v5913_v28 = vsel %vm1953_vm6, %v10959_v23, %v6397_v4  ;;  %v6443_v4 = vunpack.i.h.bf16 %v10078_v26 }
 0x574   : > { %v10120_v52 = vpop.permute.xlu0 %6485  ;;  %5648 = vrot.lane.b32.xlu1 %v4182_v48, %s6738_s28  ;;  %v10127_v51 = vsel %vm1989_vm12, %v5956_v47, %v6422_v18  ;;  %v10130_v27 = vsel %vm1989_vm12, %v5957_v21, %v6423_v1  ;;  %v5922_v53 = vsel %vm1959_vm7, %v5913_v28, %v6407_v63  ;;  %v6453_v63 = vunpack.i.h.bf16 %v10090_v3 }
 0x575   : > { %5792 = vrot.lane.b32.xlu0 %v5403_v61, %s6733_s23  ;;  %v6199_v10 = vpack.c.bf16 %v10130_v27, %v10127_v51  ;;  %v5931_v15 = vsel %vm1965_vm8, %v5922_v53, %v6417_v49  ;;  %v5932_v61 = vsel %vm1965_vm8, %v5923_v8, %v6418_v29  ;;  %v6452_v29 = vunpack.i.l.bf16 %v10090_v3 }
 0x576   : > { %v6426_v57 = vpop.permute.xlu1 %6425 }
 0x577   : > { %v6428_v45 = vunpack.i.h.bf16 %v6426_v57  ;;  %v6427_v17 = vunpack.i.l.bf16 %v6426_v57 }
 0x579   : > { %5828 = vrot.lane.b32.xlu0 %v5404_v44, %s6737_s27  ;;  %v10136_v24 = vpop.permute.xlu0 %6490  ;;  %v5941_v58 = vsel %vm1971_vm9, %v5932_v61, %v6428_v45  ;;  %v5940_v59 = vsel %vm1971_vm9, %v5931_v15, %v6427_v17  ;;  %v10960_v17 = vld [vmem:[#allocation21_spill] sm:$0xff] }
 0x57a   : > { %v6436_v60 = vpop.permute.xlu1 %6435 }
 0x57b   : > { %v6438_v41 = vunpack.i.h.bf16 %v6436_v60  ;;  %v6437_v25 = vunpack.i.l.bf16 %v6436_v60  ;;  %v6433_v60 = vunpack.i.h.bf16 %v10058_v16 }
 0x57d   : > { %5864 = vrot.lane.b32.xlu0 %v5405_v7, %s6734_s24  ;;  %v10145_v9 = vpop.permute.xlu0 %6495  ;;  %v5949_v31 = vsel %vm1977_vm10, %v5940_v59, %v6437_v25  ;;  %v5950_v48 = vsel %vm1977_vm10, %v5941_v58, %v6438_v41  ;;  %v5916_v16 = vsel %vm1953_vm6, %v10965_v14, %v6433_v60  ;;  %v6482_v60 = vunpack.i.l.bf16 %v10106_v11 }
 0x57e   : > { %v6446_v34 = vpop.permute.xlu1 %6445  ;;  %v5925_v3 = vsel %vm1959_vm7, %v5916_v16, %v6443_v4  ;;  %v6487_v4 = vunpack.i.l.bf16 %v10120_v52 }
 0x57f   : > { %v6448_v19 = vunpack.i.h.bf16 %v6446_v34  ;;  %v6447_v0 = vunpack.i.l.bf16 %v6446_v34  ;;  %v10961_v34 = vld [vmem:[#allocation8_spill] sm:$0xff]  ;;  %v5934_v8 = vsel %vm1965_vm8, %v5925_v3, %v6453_v63  ;;  %v6492_v63 = vunpack.i.l.bf16 %v10136_v24 }
 0x580   : > { %v10962_v36 = vcombine.low %v10960_v17, %v10961_v34  ;;  %v10966_v17 = vld [vmem:[#allocation10_spill] sm:$0xff]  ;;  %v10967_v34 = vld [vmem:[#allocation9_spill] sm:$0xff] }
 0x581   : > { %5900 = vrot.lane.b32.xlu0 %v5406_v12, %s6738_s28  ;;  %v10164_v2 = vpop.permute.xlu0 %6500  ;;  %v5958_v18 = vsel %vm1983_vm11, %v5949_v31, %v6447_v0  ;;  %v5959_v47 = vsel %vm1983_vm11, %v5950_v48, %v6448_v19 }
 0x582   : > { %v5915_v20 = vsel %vm1953_vm6, %v10962_v36, %v6432_v42  ;;  %v6488_v42 = vunpack.i.h.bf16 %v10120_v52  ;;  %v10968_v36 = vcombine.low %v10966_v17, %v10967_v34  ;;  %v10973_v34 = vld [vmem:[#allocation53_spill] sm:$0xff] }
 0x583   : > { %v5924_v28 = vsel %vm1959_vm7, %v5915_v20, %v6442_v13  ;;  %v6493_v13 = vunpack.i.h.bf16 %v10136_v24  ;;  %v10969_v20 = vld [vmem:[#allocation80_spill] sm:$0xff] }
 0x584   : > { %v6456_v62 = vpop.permute.xlu1 %6455  ;;  %v5933_v53 = vsel %vm1965_vm8, %v5924_v28, %v6452_v29  ;;  %v10971_v5 = vcombine.low %v10969_v20, %v10970_v22  ;;  %v10976_v20 = vld [vmem:[#allocation30_spill] sm:$0xff] }
 0x585   : > { %v6458_v50 = vunpack.i.h.bf16 %v6456_v62  ;;  %v6457_v1 = vunpack.i.l.bf16 %v6456_v62  ;;  %v10176_v40 = vpop.permute.xlu0 %6510 }
 0x587   : > { %v10169_v21 = vsel %vm1989_vm12, %v5958_v18, %v6457_v1  ;;  %v10172_v54 = vsel %vm1989_vm12, %v5959_v47, %v6458_v50 }
 0x588   : > { %v6461_v44 = vpop.permute.xlu1 %6460  ;;  %v6203_v57 = vpack.c.bf16 %v10172_v54, %v10169_v21 }
 0x589   : > { %v6463_v49 = vunpack.i.h.bf16 %v6461_v44  ;;  %v6462_v12 = vunpack.i.l.bf16 %v6461_v44  ;;  %v10192_v38 = vpop.permute.xlu0 %6520 }
 0x58b   : > { %v5943_v19 = vsel %vm1971_vm9, %v5934_v8, %v6463_v49  ;;  %v5942_v0 = vsel %vm1971_vm9, %v5933_v53, %v6462_v12  ;;  %v6498_v49 = vunpack.i.h.bf16 %v10145_v9  ;;  %v6497_v12 = vunpack.i.l.bf16 %v10145_v9 }
 0x58c   : > { %v6466_v7 = vpop.permute.xlu1 %6465 }
 0x58d   : > { %v6468_v26 = vunpack.i.h.bf16 %v6466_v7  ;;  %v6467_v23 = vunpack.i.l.bf16 %v6466_v7  ;;  %v10204_v50 = vpop.permute.xlu0 %6530  ;;  %v6483_v7 = vunpack.i.h.bf16 %v10106_v11  ;;  %v5974_v11 = vsel %vm1953_vm6, %v10968_v36, %v6482_v60 }
 0x58e   : > { %v5983_v24 = vsel %vm1959_vm7, %v5974_v11, %v6487_v4  ;;  %v6502_v60 = vunpack.i.l.bf16 %v10164_v2  ;;  %v6512_v4 = vunpack.i.l.bf16 %v10176_v40  ;;  %v10975_v11 = vld [vmem:[#allocation35_spill] sm:$0xff] }
 0x58f   : > { %v5951_v61 = vsel %vm1977_vm10, %v5942_v0, %v6467_v23  ;;  %v5952_v58 = vsel %vm1977_vm10, %v5943_v19, %v6468_v26  ;;  %v5975_v52 = vsel %vm1953_vm6, %v10971_v5, %v6483_v7  ;;  %v5992_v9 = vsel %vm1965_vm8, %v5983_v24, %v6492_v63 }
 0x590   : > { %v6471_v45 = vpop.permute.xlu1 %6470  ;;  %v5984_v26 = vsel %vm1959_vm7, %v5975_v52, %v6488_v42  ;;  %v6503_v7 = vunpack.i.h.bf16 %v10164_v2  ;;  %v6513_v42 = vunpack.i.h.bf16 %v10176_v40  ;;  %v6522_v63 = vunpack.i.l.bf16 %v10192_v38  ;;  %v10972_v2 = vld [vmem:[#allocation54_spill] sm:$0xff] }
 0x591   : > { %v6473_v41 = vunpack.i.h.bf16 %v6471_v45  ;;  %v6472_v25 = vunpack.i.l.bf16 %v6471_v45  ;;  %v5993_v3 = vsel %vm1965_vm8, %v5984_v26, %v6493_v13  ;;  %v6523_v13 = vunpack.i.h.bf16 %v10192_v38 }
 0x592   : > { %v10974_v36 = vcombine.low %v10972_v2, %v10973_v34  ;;  %v10977_v22 = vcombine.low %v10975_v11, %v10976_v20  ;;  %v10982_v2 = vld [vmem:[#allocation70_spill] sm:$0xff] }
 0x593   : > { %v5960_v31 = vsel %vm1983_vm11, %v5951_v61, %v6472_v25  ;;  %v5961_v48 = vsel %vm1983_vm11, %v5952_v58, %v6473_v41  ;;  %v6001_v41 = vsel %vm1971_vm9, %v5992_v9, %v6497_v12  ;;  %v6002_v25 = vsel %vm1971_vm9, %v5993_v3, %v6498_v49 }
 0x594   : > { %v6476_v15 = vpop.permute.xlu1 %6475  ;;  %v6533_v12 = vunpack.i.h.bf16 %v10204_v50  ;;  %v5977_v40 = vsel %vm1953_vm6, %v10974_v36, %v6503_v7  ;;  %v5976_v38 = vsel %vm1953_vm6, %v10977_v22, %v6502_v60 }
 0x595   : > { %v6478_v59 = vunpack.i.h.bf16 %v6476_v15  ;;  %v6477_v62 = vunpack.i.l.bf16 %v6476_v15  ;;  %v5985_v51 = vsel %vm1959_vm7, %v5976_v38, %v6512_v4  ;;  %v5986_v27 = vsel %vm1959_vm7, %v5977_v40, %v6513_v42 }
 0x596   : > { %v10220_v29 = vpop.permute.xlu0 %6535 }
 0x597   : > { %v10207_v1 = vsel %vm1989_vm12, %v5960_v31, %v6477_v62  ;;  %v10210_v18 = vsel %vm1989_vm12, %v5961_v48, %v6478_v59 }
 0x598   : > { %v6506_v47 = vpop.permute.xlu1 %6505  ;;  %v6207_v44 = vpack.c.bf16 %v10210_v18, %v10207_v1 }
 0x599   : > { %v6508_v14 = vunpack.i.h.bf16 %v6506_v47  ;;  %v6507_v16 = vunpack.i.l.bf16 %v6506_v47 }
 0x59a   : > { %v10238_v8 = vpop.permute.xlu0 %6545 }
 0x59b   : > { %v6010_v15 = vsel %vm1977_vm10, %v6001_v41, %v6507_v16  ;;  %v6011_v61 = vsel %vm1977_vm10, %v6002_v25, %v6508_v14  ;;  %v5995_v16 = vsel %vm1965_vm8, %v5986_v27, %v6523_v13 }
 0x59c   : > { %v6004_v26 = vsel %vm1971_vm9, %v5995_v16, %v6533_v12  ;;  %v10979_v12 = vld [vmem:[#allocation22_spill] sm:$0xff] }
 0x59d   : > { %v6516_v45 = vpop.permute.xlu1 %6515 }
 0x59e   : > { %v6518_v23 = vunpack.i.h.bf16 %v6516_v45  ;;  %v6517_v28 = vunpack.i.l.bf16 %v6516_v45  ;;  %v6556_v49 = vpop.permute.xlu0 %6555  ;;  %v6532_v45 = vunpack.i.l.bf16 %v10204_v50  ;;  %v5994_v50 = vsel %vm1965_vm8, %v5985_v51, %v6522_v63  ;;  %v10978_v63 = vld [vmem:[#allocation63_spill] sm:$0xff] }
 0x59f   : > { %v6557_v7 = vunpack.i.l.bf16 %v6556_v49 }
 0x5a0   : > { %v6019_v58 = vsel %vm1983_vm11, %v6010_v15, %v6517_v28  ;;  %v6020_v59 = vsel %vm1983_vm11, %v6011_v61, %v6518_v23  ;;  %v6003_v24 = vsel %vm1971_vm9, %v5994_v50, %v6532_v45  ;;  %v10980_v45 = vcombine.low %v10978_v63, %v10979_v12 }
 0x5a1   : > { %v6526_v53 = vpop.permute.xlu1 %6525 }
 0x5a2   : > { %v6528_v19 = vunpack.i.h.bf16 %v6526_v53  ;;  %v6527_v0 = vunpack.i.l.bf16 %v6526_v53  ;;  %v6566_v28 = vpop.permute.xlu0 %6565 }
 0x5a3   : > { %v6568_v42 = vunpack.i.h.bf16 %v6566_v28  ;;  %v6567_v4 = vunpack.i.l.bf16 %v6566_v28 }
 0x5a4   : > { %v6028_v62 = vsel %vm1989_vm12, %v6019_v58, %v6527_v0  ;;  %v6029_v31 = vsel %vm1989_vm12, %v6020_v59, %v6528_v19  ;;  %v6538_v59 = vunpack.i.h.bf16 %v10220_v29 }
 0x5a5   : > { %v6541_v48 = vpop.permute.xlu1 %6540  ;;  %v6197_v47 = vpack.c.bf16 %v6029_v31, %v6028_v62  ;;  %v6537_v62 = vunpack.i.l.bf16 %v10220_v29  ;;  %v6548_v31 = vunpack.i.h.bf16 %v10238_v8 }
 0x5a6   : > { %v6543_v5 = vunpack.i.h.bf16 %v6541_v48  ;;  %v6542_v52 = vunpack.i.l.bf16 %v6541_v48  ;;  %v6547_v48 = vunpack.i.l.bf16 %v10238_v8 }
 0x5a7   : > { %6198 = vmatprep.subr.bf16.mxu1 %v6197_v47  ;;  %v6558_v47 = vunpack.i.h.bf16 %v6556_v49  ;;  %v10281_v60 = vpop.permute.xlu0 %6570  ;;  %v5978_v29 = vsel %vm1953_vm6, %v10980_v45, %v6537_v62 }
 0x5a8   : > { %6200 = vmatpush1.bf16.msra.mxu1 %v6199_v10  ;;  %v6013_v9 = vsel %vm1977_vm10, %v6004_v26, %v6543_v5  ;;  %v6012_v3 = vsel %vm1977_vm10, %v6003_v24, %v6542_v52  ;;  %v5987_v40 = vsel %vm1959_vm7, %v5978_v29, %v6547_v48  ;;  %v6573_v45 = vunpack.i.h.bf16 %v10281_v60 }
 0x5a9   : > { %v6551_v17 = vpop.permute.xlu1 %6550  ;;  %v5996_v11 = vsel %vm1965_vm8, %v5987_v40, %v6557_v7  ;;  %v6572_v29 = vunpack.i.l.bf16 %v10281_v60 }
 0x5aa   : > { %v6553_v10 = vunpack.i.h.bf16 %v6551_v17  ;;  %v6552_v14 = vunpack.i.l.bf16 %v6551_v17  ;;  %v10981_v17 = vld [vmem:[#allocation73_spill] sm:$0xff]  ;;  %v6005_v38 = vsel %vm1971_vm9, %v5996_v11, %v6567_v4 }
 0x5ab   : > { %v10983_v8 = vcombine.low %v10981_v17, %v10982_v2 }
 0x5ac   : > { %v6021_v53 = vsel %vm1983_vm11, %v6012_v3, %v6552_v14  ;;  %v6022_v19 = vsel %vm1983_vm11, %v6013_v9, %v6553_v10 }
 0x5ad   : > { %v6561_v23 = vpop.permute.xlu1 %6560  ;;  %v5979_v34 = vsel %vm1953_vm6, %v10983_v8, %v6538_v59  ;;  %v10984_v59 = vcombine.low %v10937_v37, %v10936_v35 }
 0x5ae   : > { %v6563_v41 = vunpack.i.h.bf16 %v6561_v23  ;;  %v6562_v25 = vunpack.i.l.bf16 %v6561_v23  ;;  %v5988_v21 = vsel %vm1959_vm7, %v5979_v34, %v6548_v31 }
 0x5af   : > { %v5997_v20 = vsel %vm1965_vm8, %v5988_v21, %v6558_v47 }
 0x5b0   : > { %v6030_v0 = vsel %vm1989_vm12, %v6021_v53, %v6562_v25  ;;  %v6031_v15 = vsel %vm1989_vm12, %v6022_v19, %v6563_v41  ;;  %v6006_v5 = vsel %vm1971_vm9, %v5997_v20, %v6568_v42 }
 0x5b1   : > { %v6576_v61 = vpop.permute.xlu1 %6575  ;;  %v6201_v58 = vpack.c.bf16 %v6031_v15, %v6030_v0 }
 0x5b2   : > { %v6578_v49 = vunpack.i.h.bf16 %v6576_v61  ;;  %v6577_v36 = vunpack.i.l.bf16 %v6576_v61 }
 0x5b3   : > { %6202 = vmatprep.subr.bf16.mxu1 %v6201_v58 }
 0x5b4   : > { %6204 = vmatpush1.bf16.msra.mxu1 %v6203_v57  ;;  %v6015_v51 = vsel %vm1977_vm10, %v6006_v5, %v6578_v49  ;;  %v6014_v27 = vsel %vm1977_vm10, %v6005_v38, %v6577_v36 }
 0x5b5   : > { %v6591_v13 = vpop.permute.xlu1 %6590 }
 0x5b6   : > { %v6593_v54 = vunpack.i.h.bf16 %v6591_v13  ;;  %v6592_v57 = vunpack.i.l.bf16 %v6591_v13 }
 0x5b7   : > { %v6581_v22 = vpop.permute.xlu0 %6580 }
 0x5b8   : > { %v6023_v50 = vsel %vm1983_vm11, %v6014_v27, %v6592_v57  ;;  %v6024_v16 = vsel %vm1983_vm11, %v6015_v51, %v6593_v54  ;;  %v6583_v53 = vunpack.i.h.bf16 %v6581_v22  ;;  %v6582_v19 = vunpack.i.l.bf16 %v6581_v22  ;;  %v10985_v51 = vld [vmem:[#allocation57_spill] sm:$0xff]  ;;  %v10986_v27 = vld [vmem:[#allocation55_spill] sm:$0xff] }
 0x5b9   : > { %v6606_v52 = vpop.permute.xlu1 %6605 }
 0x5ba   : > { %v6608_v10 = vunpack.i.h.bf16 %v6606_v52  ;;  %v6607_v14 = vunpack.i.l.bf16 %v6606_v52  ;;  %v5917_v62 = vsel %vm1953_vm6, %v10984_v59, %v6582_v19  ;;  %v5918_v31 = vsel %vm1953_vm6, %v4039_v39, %v6583_v53 }
 0x5bb   : > { %v6586_v24 = vpop.permute.xlu0 %6585 }
 0x5bc   : > { %v6032_v26 = vsel %vm1989_vm12, %v6023_v50, %v6607_v14  ;;  %v6033_v23 = vsel %vm1989_vm12, %v6024_v16, %v6608_v10  ;;  %v6588_v21 = vunpack.i.h.bf16 %v6586_v24  ;;  %v6587_v54 = vunpack.i.l.bf16 %v6586_v24  ;;  %v10988_v50 = vld [vmem:[#allocation61_spill] sm:$0xff]  ;;  %v10989_v16 = vld [vmem:[#allocation71_spill] sm:$0xff] }
 0x5bd   : > { %v6621_v28 = vpop.permute.xlu1 %6620  ;;  %v6205_v9 = vpack.c.bf16 %v6033_v23, %v6032_v26  ;;  %v10987_v10 = vcombine.low %v10985_v51, %v10986_v27  ;;  %v10990_v26 = vcombine.low %v10988_v50, %v10989_v16 }
 0x5be   : > { %v6623_v48 = vunpack.i.h.bf16 %v6621_v28  ;;  %v6622_v47 = vunpack.i.l.bf16 %v6621_v28 }
 0x5bf   : > { %6206 = vmatprep.subr.bf16.mxu1 %v6205_v9  ;;  %v6596_v3 = vpop.permute.xlu0 %6595  ;;  %v5980_v14 = vsel %vm1953_vm6, %v10987_v10, %v6572_v29  ;;  %v5981_v24 = vsel %vm1953_vm6, %v10990_v26, %v6573_v45 }
 0x5c0   : > { %6208 = vmatpush1.bf16.msra.mxu1 %v6207_v44  ;;  %v6598_v15 = vunpack.i.h.bf16 %v6596_v3  ;;  %v6597_v61 = vunpack.i.l.bf16 %v6596_v3  ;;  %v5990_v9 = vsel %vm1959_vm7, %v5981_v24, %v6588_v21  ;;  %v5989_v3 = vsel %vm1959_vm7, %v5980_v14, %v6587_v54  ;;  %v6037_v54 = vld [vmem:[%s10383_s2] sm:$0xff] }
 0x5c1   : > { %v6631_v41 = vpop.permute.xlu1 %6630 }
 0x5c2   : > { %v5926_v7 = vsel %vm1959_vm7, %v5917_v62, %v6597_v61  ;;  %v5927_v42 = vsel %vm1959_vm7, %v5918_v31, %v6598_v15  ;;  %v6633_v4 = vunpack.i.h.bf16 %v6631_v41  ;;  %v6632_v13 = vunpack.i.l.bf16 %v6631_v41 }
 0x5c3   : > { %v6601_v25 = vpop.permute.xlu0 %6600 }
 0x5c4   : > { %v6603_v57 = vunpack.i.h.bf16 %v6601_v25  ;;  %v6602_v11 = vunpack.i.l.bf16 %v6601_v25 }
 0x5c6   : > { %v6641_v0 = vpop.permute.xlu1 %6640  ;;  %v5998_v41 = vsel %vm1965_vm8, %v5989_v3, %v6602_v11  ;;  %v5999_v25 = vsel %vm1965_vm8, %v5990_v9, %v6603_v57 }
 0x5c7   : > { %v6611_v58 = vpop.permute.xlu0 %6610  ;;  %v6643_v63 = vunpack.i.h.bf16 %v6641_v0  ;;  %v6642_v12 = vunpack.i.l.bf16 %v6641_v0 }
 0x5c8   : > { %v6613_v1 = vunpack.i.h.bf16 %v6611_v58  ;;  %v6612_v18 = vunpack.i.l.bf16 %v6611_v58 }
 0x5ca   : > { %v6646_v44 = vpop.permute.xlu1 %6645  ;;  %v5935_v35 = vsel %vm1965_vm8, %v5926_v7, %v6612_v18  ;;  %v5936_v37 = vsel %vm1965_vm8, %v5927_v42, %v6613_v1 }
 0x5cb   : > { %v5944_v6 = vsel %vm1971_vm9, %v5935_v35, %v6622_v47  ;;  %v5945_v30 = vsel %vm1971_vm9, %v5936_v37, %v6623_v48  ;;  %v6616_v39 = vpop.permute.xlu0 %6615  ;;  %v6648_v58 = vunpack.i.h.bf16 %v6646_v44  ;;  %v6647_v59 = vunpack.i.l.bf16 %v6646_v44 }
 0x5cc   : > { %v5953_v2 = vsel %vm1977_vm10, %v5944_v6, %v6632_v13  ;;  %v5954_v8 = vsel %vm1977_vm10, %v5945_v30, %v6633_v4  ;;  %v6618_v38 = vunpack.i.h.bf16 %v6616_v39  ;;  %v6617_v5 = vunpack.i.l.bf16 %v6616_v39 }
 0x5cd   : > { %v5962_v36 = vsel %vm1983_vm11, %v5953_v2, %v6642_v12  ;;  %v5963_v40 = vsel %vm1983_vm11, %v5954_v8, %v6643_v63 }
 0x5ce   : > { %v6651_v17 = vpop.permute.xlu1 %6650  ;;  %v6007_v19 = vsel %vm1971_vm9, %v5998_v41, %v6617_v5  ;;  %v6008_v0 = vsel %vm1971_vm9, %v5999_v25, %v6618_v38 }
 0x5cf   : > { %v6653_v34 = vunpack.i.h.bf16 %v6651_v17  ;;  %v6652_v49 = vunpack.i.l.bf16 %v6651_v17  ;;  %v6626_v20 = vpop.permute.xlu0 %6625 }
 0x5d0   : > { %v6628_v23 = vunpack.i.h.bf16 %v6626_v20  ;;  %v6627_v28 = vunpack.i.l.bf16 %v6626_v20 }
 0x5d1   : > { %v5971_v22 = vsel %vm1989_vm12, %v5962_v36, %v6652_v49  ;;  %v5972_v60 = vsel %vm1989_vm12, %v5963_v40, %v6653_v34 }
 0x5d2   : > { %v6211_v52 = vpack.c.bf16 %v5972_v60, %v5971_v22  ;;  %v6016_v62 = vsel %vm1977_vm10, %v6007_v19, %v6627_v28  ;;  %v6017_v31 = vsel %vm1977_vm10, %v6008_v0, %v6628_v23  ;;  %v5469_v1 = vpop.permute.xlu1 %5468 }
 0x5d3   : > { %v6636_v53 = vpop.permute.xlu0 %6635 }
 0x5d4   : > { %v6638_v15 = vunpack.i.h.bf16 %v6636_v53  ;;  %v6637_v61 = vunpack.i.l.bf16 %v6636_v53 }
 0x5d6   : > { %v6025_v18 = vsel %vm1983_vm11, %v6016_v62, %v6637_v61  ;;  %v6026_v48 = vsel %vm1983_vm11, %v6017_v31, %v6638_v15  ;;  %v5505_v13 = vpop.permute.xlu1 %5504 }
 0x5d7   : > { %v5685_v47 = vpop.permute.xlu0 %5684  ;;  %v6034_v7 = vsel %vm1989_vm12, %v6025_v18, %v6647_v59  ;;  %v6035_v42 = vsel %vm1989_vm12, %v6026_v48, %v6648_v58 }
 0x5d8   : > { %v6209_v4 = vpack.c.bf16 %v6035_v42, %v6034_v7  ;;  %v5982_v17 = vsel %vm1953_vm6, %v5399_v32, %v5685_v47 }
 0x5da   : > { %6210 = vmatprep.subr.bf16.mxu1 %v6209_v4  ;;  %v5541_v37 = vpop.permute.xlu1 %5540 }
 0x5db   : > { %v5433_v35 = vpop.permute.xlu0 %5432  ;;  %6212 = vmatpush1.bf16.msra.mxu1 %v6211_v52 }
 0x5dc   : > { %v5919_v30 = vsel %vm1953_vm6, %v4175_v43, %v5433_v35 }
 0x5dd   : > { %v5928_v45 = vsel %vm1959_vm7, %v5919_v30, %v5469_v1 }
 0x5de   : > { %v5577_v12 = vpop.permute.xlu1 %5576  ;;  %v5937_v2 = vsel %vm1965_vm8, %v5928_v45, %v5505_v13 }
 0x5df   : > { %v5721_v44 = vpop.permute.xlu0 %5720  ;;  %v5946_v33 = vsel %vm1971_vm9, %v5937_v2, %v5541_v37 }
 0x5e0   : > { %v5991_v8 = vsel %vm1959_vm7, %v5982_v17, %v5721_v44  ;;  %v5955_v40 = vsel %vm1977_vm10, %v5946_v33, %v5577_v12 }
 0x5e2   : > { %v5613_v29 = vpop.permute.xlu1 %5612 }
 0x5e3   : > { %v5757_v63 = vpop.permute.xlu0 %5756  ;;  %v5964_v32 = vsel %vm1983_vm11, %v5955_v40, %v5613_v29 }
 0x5e4   : > { %v6000_v49 = vsel %vm1965_vm8, %v5991_v8, %v5757_v63 }
 0x5e6   : > { %v5649_v43 = vpop.permute.xlu1 %5648 }
 0x5e7   : > { %v5793_v6 = vpop.permute.xlu0 %5792  ;;  %v5973_v57 = vsel %vm1989_vm12, %v5964_v32, %v5649_v43 }
 0x5e8   : > { %v6009_v46 = vsel %vm1971_vm9, %v6000_v49, %v5793_v6 }
 0x5eb   : > { %v5829_v39 = vpop.permute.xlu0 %5828 }
 0x5ec   : > { %v6018_v36 = vsel %vm1977_vm10, %v6009_v46, %v5829_v39 }
 0x5ef   : > { %v5865_v34 = vpop.permute.xlu0 %5864 }
 0x5f0   : > { %v6027_v55 = vsel %vm1983_vm11, %v6018_v36, %v5865_v34 }
 0x5f3   : > { %v5901_v56 = vpop.permute.xlu0 %5900 }
 0x5f4   : > { %v6036_v21 = vsel %vm1989_vm12, %v6027_v55, %v5901_v56 }
 0x5f5   : > { %6058 = vmatprep.subr.mxu1 %v6036_v21 }
 0x5f6   : > { %6059 = vmatpush1.msra.mxu1 %v5973_v57 }
 0x5f7   : > { %6184 = vmatmul.mubr.msk.f32.vlgmr.msra.gmra.mrb[0].mxu1 %vm6038_vm15, %v6037_v54 }
 0x6ca   : > { %v6108_v11 = vpop.f32.mrb[0].mxu1 }
 0x6cb   : > { %v6113_v20 = vmax.f32 %v6108_v11, 0.0  ;;  %v6110_v22 = vpop.f32.mrb[1].mxu1 }
 0x6cc   : > { %v6114_v60 = vmax.f32 %v6110_v22, 0.0 }
 0x6cd   : > { %6115 = vst [vmem:[%s170_s9] sm:$0xff] %v6113_v20 }
 0x6ce   : > { %6116 = vst [vmem:[%s170_s9 + $0x8] sm:$0xff] %v6114_v60 }
 0x6cf PF: > { %s13_s12 = sadd.s32 1, %s6724_s12  }
 0x6d0   : > { %p10_p4 = scmp.ge.s32.totalorder %s13_s12, 4  }
 0x6d2   :  { %12 = sbr.rel (!%p10_p4) target bundleno = 1 (0x1), region = 62 }

</bundles_post_ra>
